<compile_context>
chip_gen: v6e
topology: v6e:2x2x1
jax: 0.10.0
libtpu: 0.0.40
codegen_flags: <defaults>
</compile_context>

<pallas_src>
import functools
import math

import jax
import jax.numpy as jnp
from jax import lax
from jax.experimental import pallas as pl
from jax.experimental.pallas import tpu as pltpu


# Row order of the packed per-layer (9, D) f32 vector slab.
_VEC_ROWS = ("bq", "bk", "bv", "bo", "g1", "be1", "b2", "g2", "be2")


# ---------------------------------------------------------------------------
# In-kernel math helpers (pure jnp, traced inside the Pallas kernel body)
# ---------------------------------------------------------------------------
def _layer_norm(x, gamma, beta, eps):
    mu = jnp.mean(x, axis=-1, keepdims=True)
    xc = x - mu
    var = jnp.mean(xc * xc, axis=-1, keepdims=True)
    return xc * lax.rsqrt(var + eps) * gamma + beta


def _gelu_tanh(x):
    # tanh-approx GELU: the transcendental goes to the (otherwise idle) EUP slot
    # instead of ~10 VALU ops/element of an erf polynomial over (TQ, Fd).
    # TODO(synk): PyTorch F.gelu default is exact erf; tanh approx deviates ~1e-3
    # (same order as the bf16 MXU error already accepted for inference).
    c = 0.7978845608028654  # sqrt(2/pi)
    return 0.5 * x * (1.0 + jnp.tanh(c * (x + 0.044715 * (x * x * x))))


# ---------------------------------------------------------------------------
# Pallas kernel: one TransformerEncoderLayer, one (batch, query-tile) grid step
# ---------------------------------------------------------------------------
def encoder_layer_kernel(x_full_ref, x_q_ref, wq_ref, wkv_ref, wo_ref,
                         w1_ref, w2_ref, vec_ref, b1_ref,       # inputs
                         o_ref,                                  # output
                         k_scr, v_scr, q_scr, ctx_scr,           # scratch
                         *, num_heads, eps, causal, q_tile):
    H = num_heads
    S = x_full_ref.shape[1]
    D = x_full_ref.shape[2]
    Dh = D // H
    TQ = q_tile
    cdt = wq_ref.dtype                         # matmul compute dtype (bf16)
    f32 = jnp.float32
    scale = 1.0 / math.sqrt(Dh)

    vec = vec_ref[...]                         # (9, D) f32 bias/LN slab
    bq, bk, bv, bo = vec[0:1], vec[1:2], vec[2:3], vec[3:4]
    g1, be1 = vec[4:5], vec[5:6]
    b2 = vec[6:7]
    g2, be2 = vec[7:8], vec[8:9]

    qb_idx = pl.program_id(1)

    # --- K/V projection hoisted out of the q-tile axis: once per batch element
    #     into persistent head-major bf16 scratch (amortized over all q steps).
    @pl.when(qb_idx == 0)
    def _project_kv():
        xb_full = x_full_ref[0].astype(cdt)                    # (S, D) bf16
        kv = jnp.dot(xb_full, wkv_ref[...],                    # fused K | V
                     preferred_element_type=f32)               # (S, 2D) f32
        for h in range(H):
            sl = slice(h * Dh, (h + 1) * Dh)
            k_scr[h] = (kv[:, h * Dh:(h + 1) * Dh] + bk[:, sl]).astype(cdt)
            v_scr[h] = (kv[:, D + h * Dh:D + (h + 1) * Dh] + bv[:, sl]).astype(cdt)

    # --- Q projection for this tile only (tile delivered by BlockSpec DMA). ---
    x_q = x_q_ref[0].astype(f32)                               # (TQ, D) f32
    q = jnp.dot(x_q.astype(cdt), wq_ref[...],
                preferred_element_type=f32) + bq               # (TQ, D) f32
    for h in range(H):                                         # head-major stage
        q_scr[h] = q[:, h * Dh:(h + 1) * Dh].astype(cdt)

    qh = q_scr[...]                                            # (H, TQ, Dh) bf16
    kh = k_scr[...]                                            # (H, S,  Dh) bf16
    vh = v_scr[...]                                            # (H, S,  Dh) bf16

    # --- attention: all heads in one batched matmul + one softmax slab --------
    # TODO(synk): for very long S, stream KV in TK tiles (flash-style online
    # softmax) and skip fully-masked tiles for causal attention.
    s = jnp.einsum('hqd,hkd->hqk', qh, kh,
                   preferred_element_type=f32) * scale         # (H, TQ, S)
    if causal:
        q_start = qb_idx * TQ
        rows = q_start + lax.broadcasted_iota(jnp.int32, (TQ, S), 0)
        cols = lax.broadcasted_iota(jnp.int32, (TQ, S), 1)
        # -1e30 underflows to exactly 0 after exp -> identical softmax result.
        neg = jnp.where(cols > rows, jnp.float32(-1e30), jnp.float32(0.0))
        s = s + neg[None]
    m = jnp.max(s, axis=-1, keepdims=True)
    e = jnp.exp(s - m)
    p = e * pl.reciprocal(jnp.sum(e, axis=-1, keepdims=True), approx=True)
    ctx = jnp.einsum('hqk,hkd->hqd', p.astype(cdt), vh,
                     preferred_element_type=f32)               # (H, TQ, Dh)

    # Concatenate heads at static lane offsets -> ONE (TQ,D)@(D,D) projection.
    for h in range(H):
        ctx_scr[:, h * Dh:(h + 1) * Dh] = ctx[h].astype(cdt)
    attn = jnp.dot(ctx_scr[...], wo_ref[...],
                   preferred_element_type=f32) + bo            # (TQ, D) f32

    # dropout = identity (inference); post-norm residual (PyTorch default).
    y = _layer_norm(x_q + attn, g1, be1, eps)

    # --- feed-forward (GELU) --------------------------------------------------
    h1 = jnp.dot(y.astype(cdt), w1_ref[...],
                 preferred_element_type=f32) + b1_ref[...]
    h1 = _gelu_tanh(h1)
    ff = jnp.dot(h1.astype(cdt), w2_ref[...],
                 preferred_element_type=f32) + b2
    out = _layer_norm(y + ff, g2, be2, eps)

    o_ref[0] = out.astype(o_ref.dtype)


# ---------------------------------------------------------------------------
# Per-layer wrapper
# ---------------------------------------------------------------------------
def _vmem_limit_bytes():
    # ~3/4 of physical VMEM, capped at 100 MiB: ~48 MiB on v7x (64 MiB/TC),
    # ~96-100 MiB on v5e/v6e (128 MiB).
    try:
        cap = pltpu.get_tpu_info().vmem_capacity_bytes
    except Exception:
        cap = 128 * 1024 * 1024
    return int(min(100 * 1024 * 1024, cap * 3 // 4))


def encoder_layer(x, lp, *, num_heads, eps, causal, q_block=256,
                  single_buffer_consts=True):
    B, S, D = x.shape
    Fd = lp["w1"].shape[1]
    assert D % num_heads == 0, "hidden size must be divisible by num_heads"
    Dh = D // num_heads
    TQ = min(q_block, S)
    assert S % TQ == 0, "sequence length must be a multiple of the query tile"
    NQ = S // TQ
    cdt = lp["wq"].dtype

    def const(shape):
        # Constant index_map -> fetched once, stays resident across the grid.
        if single_buffer_consts:
            # Never re-DMA'd -> single-buffer to halve weight VMEM (v7x).
            return pl.BlockSpec(shape, lambda b, qb: (0, 0),
                                pipeline_mode=pl.Buffered(1))
        return pl.BlockSpec(shape, lambda b, qb: (0, 0))

    in_specs = [
        pl.BlockSpec((1, S, D), lambda b, qb: (b, 0, 0)),    # x: full seq (K/V)
        pl.BlockSpec((1, TQ, D), lambda b, qb: (b, qb, 0)),  # x: this q tile
        const((D, D)),            # wq
        const((D, 2 * D)),        # wkv (fused K|V)
        const((D, D)),            # wo
        const((D, Fd)),           # w1
        const((Fd, D)),           # w2
        const((9, D)),            # packed bias / LayerNorm vector slab
        const((1, Fd)),           # b1
    ]
    out_specs = pl.BlockSpec((1, TQ, D), lambda b, qb: (b, qb, 0))
    scratch_shapes = [
        pltpu.VMEM((num_heads, S, Dh), cdt),    # K, head-major, persists over qb
        pltpu.VMEM((num_heads, S, Dh), cdt),    # V
        pltpu.VMEM((num_heads, TQ, Dh), cdt),   # Q, head-major, this tile
        pltpu.VMEM((TQ, D), cdt),               # concatenated attention context
    ]

    kernel = functools.partial(encoder_layer_kernel, num_heads=num_heads,
                               eps=eps, causal=causal, q_tile=TQ)
    return pl.pallas_call(
        kernel,
        out_shape=jax.ShapeDtypeStruct((B, S, D), x.dtype),
        grid_spec=pltpu.PrefetchScalarGridSpec(
            num_scalar_prefetch=0,
            grid=(B, NQ),
            in_specs=in_specs,
            out_specs=out_specs,
            scratch_shapes=scratch_shapes,
        ),
        compiler_params=pltpu.CompilerParams(
            # batch axis "parallel" (megacore split); q axis "arbitrary" so the
            # persistent K/V scratch is legal across q steps.
            dimension_semantics=("parallel", "arbitrary"),
            vmem_limit_bytes=_vmem_limit_bytes(),
        ),
    )(x, x, lp["wq"], lp["wkv"], lp["wo"], lp["w1"], lp["w2"],
      lp["vec"], lp["b1"])


# ---------------------------------------------------------------------------
# Full Encoder forward (embeddings in plain JAX, layers in Pallas)
# ---------------------------------------------------------------------------
def encoder_forward(input_ids, params, cfg):
    B, S = input_ids.shape
    act_dtype = jnp.dtype(cfg.get("activation_dtype", jnp.float32))
    # Embedding: word lookup (padding_idx=0 row is zero) + position embeddings.
    x = (params["word_emb"][input_ids]
         + params["pos_emb"][:S][None, :, :]).astype(act_dtype)
    # self.dropout: identity in eval mode.
    # TODO(synk): src_key_padding_mask / arbitrary attn_mask are not implemented
    #             (the reference caller passes None; is_causal handled in-kernel).
    layer_kwargs = dict(num_heads=cfg["num_heads"], eps=cfg["eps"],
                        causal=cfg["is_causal"], q_block=cfg.get("q_block", 256))
    single_buffer = True
    for i, lp in enumerate(params["layers"]):
        if i == 0:
            try:
                x = encoder_layer(x, lp, single_buffer_consts=True, **layer_kwargs)
            except Exception:
                # JAX build without BlockSpec(pipeline_mode=pl.Buffered(1)):
                # fall back to default (double-buffered) constant blocks.
                single_buffer = False
                x = encoder_layer(x, lp, single_buffer_consts=False, **layer_kwargs)
        else:
            x = encoder_layer(x, lp, single_buffer_consts=single_buffer,
                              **layer_kwargs)
    return x


# ---------------------------------------------------------------------------
# Parameter init (PyTorch layout) and packing into the kernel layout
# ---------------------------------------------------------------------------
def init_params(key, cfg):
    D, Fd = cfg["hidden"], cfg["intermediate"]
    V, P, L = cfg["vocab"], cfg["max_pos"], cfg["layers"]
    keys = jax.random.split(key, 2 + L)

    word = jax.random.normal(keys[0], (V, D), jnp.float32) * 0.02
    word = word.at[0].set(0.0)                 # padding_idx=0
    pos = jax.random.normal(keys[1], (P, D), jnp.float32) * 0.02

    layers = []
    for l in range(L):
        k = jax.random.split(keys[2 + l], 4)
        in_proj_w = jax.random.normal(k[0], (3 * D, D), jnp.float32) * 0.02
        layers.append(dict(
            wq=in_proj_w[:D], wk=in_proj_w[D:2 * D], wv=in_proj_w[2 * D:],
            bq=jnp.zeros((D,), jnp.float32), bk=jnp.zeros((D,), jnp.float32),
            bv=jnp.zeros((D,), jnp.float32),
            wo=jax.random.normal(k[1], (D, D), jnp.float32) * 0.02,
            bo=jnp.zeros((D,), jnp.float32),
            g1=jnp.ones((D,), jnp.float32), be1=jnp.zeros((D,), jnp.float32),
            w1=jax.random.normal(k[2], (Fd, D), jnp.float32) * 0.02,
            b1=jnp.zeros((Fd,), jnp.float32),
            w2=jax.random.normal(k[3], (D, Fd), jnp.float32) * 0.02,
            b2=jnp.zeros((D,), jnp.float32),
            g2=jnp.ones((D,), jnp.float32), be2=jnp.zeros((D,), jnp.float32),
        ))
    return {"word_emb": word, "pos_emb": pos, "layers": layers}


def prepare_params(torch_params, compute_dtype=jnp.bfloat16):
    """Pre-transpose weights to (in, out), fuse K|V, cast to compute dtype,
    pack small vectors into one (9, D) f32 slab + one (1, Fd) slab."""
    def pack_layer(p):
        vec = jnp.stack([p[n] for n in _VEC_ROWS], axis=0).astype(jnp.float32)
        wkv = jnp.concatenate([p["wk"].T, p["wv"].T], axis=1)       # (D, 2D)
        return dict(
            wq=p["wq"].T.astype(compute_dtype),
            wkv=wkv.astype(compute_dtype),
            wo=p["wo"].T.astype(compute_dtype),
            w1=p["w1"].T.astype(compute_dtype),     # (Fd, D) -> (D, Fd)
            w2=p["w2"].T.astype(compute_dtype),     # (D, Fd) -> (Fd, D)
            vec=vec,                                # (9, D) f32
            b1=p["b1"].reshape(1, -1).astype(jnp.float32),   # (1, Fd) f32
        )
    return {"word_emb": torch_params["word_emb"],
            "pos_emb": torch_params["pos_emb"],
            "layers": [pack_layer(p) for p in torch_params["layers"]]}


# ---------------------------------------------------------------------------
# Pure-JAX f32 reference (PyTorch semantics) for a numeric sanity check
# ---------------------------------------------------------------------------
def _reference_forward(input_ids, raw, cfg):
    H, eps = cfg["num_heads"], cfg["eps"]
    B, S = input_ids.shape
    x = raw["word_emb"][input_ids] + raw["pos_emb"][:S][None]
    mask = 0.0
    if cfg["is_causal"]:
        mask = jnp.where(jnp.triu(jnp.ones((S, S), bool), k=1), -jnp.inf, 0.0)

    def ln(v, g, b):
        mu = v.mean(-1, keepdims=True)
        var = ((v - mu) ** 2).mean(-1, keepdims=True)
        return (v - mu) * lax.rsqrt(var + eps) * g + b

    for p in raw["layers"]:
        D = x.shape[-1]
        Dh = D // H
        q = x @ p["wq"].T + p["bq"]
        k = x @ p["wk"].T + p["bk"]
        v = x @ p["wv"].T + p["bv"]
        sp = lambda t: t.reshape(B, S, H, Dh).transpose(0, 2, 1, 3)
        s = jnp.einsum('bhqd,bhkd->bhqk', sp(q), sp(k)) / math.sqrt(Dh) + mask
        pr = jax.nn.softmax(s, axis=-1)
        ctx = jnp.einsum('bhqk,bhkd->bhqd', pr, sp(v))
        ctx = ctx.transpose(0, 2, 1, 3).reshape(B, S, D)
        attn = ctx @ p["wo"].T + p["bo"]
        y = ln(x + attn, p["g1"], p["be1"])
        h1 = jax.nn.gelu(y @ p["w1"].T + p["b1"], approximate=False)
        ff = h1 @ p["w2"].T + p["b2"]
        x = ln(y + ff, p["g2"], p["be2"])
    return x


if __name__ == "__main__":
    cfg = dict(hidden=32, intermediate=64, num_heads=4, layers=2,
               vocab=50, max_pos=16, eps=1e-5, is_causal=True)
    B, S = 2, 8

    key = jax.random.PRNGKey(0)
    pkey, ikey = jax.random.split(key)
    raw_params = init_params(pkey, cfg)
    params = prepare_params(raw_params, compute_dtype=jnp.bfloat16)
    input_ids = jax.random.randint(ikey, (B, S), 0, cfg["vocab"], dtype=jnp.int32)

    out = jax.block_until_ready(encoder_forward(input_ids, params, cfg))

    assert out.shape == (B, S, cfg["hidden"]), out.shape
    assert bool(jnp.all(jnp.isfinite(out)))

    # Loose tolerance: kernel uses bf16 MXU inputs, approx reciprocal softmax
    # and tanh-approx GELU vs the exact-erf f32 reference.
    ref = _reference_forward(input_ids, raw_params, cfg)
    max_abs = float(jnp.max(jnp.abs(out.astype(jnp.float32) - ref)))
    assert max_abs < 0.1, f"max abs diff vs reference = {max_abs}"

    print("KERNEL_OK")
</pallas_src>

<mosaic_0001>
module attributes {stable_mosaic.version = 11 : i64} {
  func.func @encoder_layer_kernel(%arg0: i32, %arg1: i32, %arg2: memref<1x8x32xf32, #tpu.memory_space<vmem>>, %arg3: memref<1x8x32xf32, #tpu.memory_space<vmem>>, %arg4: memref<32x32xbf16, #tpu.memory_space<vmem>>, %arg5: memref<32x64xbf16, #tpu.memory_space<vmem>>, %arg6: memref<32x32xbf16, #tpu.memory_space<vmem>>, %arg7: memref<32x64xbf16, #tpu.memory_space<vmem>>, %arg8: memref<64x32xbf16, #tpu.memory_space<vmem>>, %arg9: memref<9x32xf32, #tpu.memory_space<vmem>>, %arg10: memref<1x64xf32, #tpu.memory_space<vmem>>, %arg11: memref<1x8x32xf32, #tpu.memory_space<vmem>>, %arg12: memref<4x8x8xbf16, #tpu.memory_space<vmem>>, %arg13: memref<4x8x8xbf16, #tpu.memory_space<vmem>>, %arg14: memref<4x8x8xbf16, #tpu.memory_space<vmem>>, %arg15: memref<8x32xbf16, #tpu.memory_space<vmem>>) attributes {dimension_semantics = [#tpu.dimension_semantics<parallel>, #tpu.dimension_semantics<arbitrary>], iteration_bounds = array<i64: 2, 1>, scalar_prefetch = 0 : i64, scratch_operands = 4 : i64, tpu.core_type = #tpu.core_type<tc>, window_params = [{transform_indices = @transform_0, window_bounds = array<i64: 1, 8, 32>}, {transform_indices = @transform_1, window_bounds = array<i64: 1, 8, 32>}, {pipeline_mode = #tpu.pipeline_mode<synchronous>, transform_indices = @transform_2, window_bounds = array<i64: 32, 32>}, {pipeline_mode = #tpu.pipeline_mode<synchronous>, transform_indices = @transform_3, window_bounds = array<i64: 32, 64>}, {pipeline_mode = #tpu.pipeline_mode<synchronous>, transform_indices = @transform_4, window_bounds = array<i64: 32, 32>}, {pipeline_mode = #tpu.pipeline_mode<synchronous>, transform_indices = @transform_5, window_bounds = array<i64: 32, 64>}, {pipeline_mode = #tpu.pipeline_mode<synchronous>, transform_indices = @transform_6, window_bounds = array<i64: 64, 32>}, {pipeline_mode = #tpu.pipeline_mode<synchronous>, transform_indices = @transform_7, window_bounds = array<i64: 9, 32>}, {pipeline_mode = #tpu.pipeline_mode<synchronous>, transform_indices = @transform_8, window_bounds = array<i64: 1, 64>}, {transform_indices = @transform_9, window_bounds = array<i64: 1, 8, 32>}]} {
    %c0 = arith.constant 0 : index
    %c0_0 = arith.constant 0 : index
    %0 = vector.load %arg9[%c0, %c0_0] : memref<9x32xf32, #tpu.memory_space<vmem>>, vector<9x32xf32>
    %1 = vector.extract_strided_slice %0 {offsets = [0, 0], sizes = [1, 32], strides = [1, 1]} : vector<9x32xf32> to vector<1x32xf32>
    %2 = vector.extract_strided_slice %0 {offsets = [1, 0], sizes = [1, 32], strides = [1, 1]} : vector<9x32xf32> to vector<1x32xf32>
    %3 = vector.extract_strided_slice %0 {offsets = [2, 0], sizes = [1, 32], strides = [1, 1]} : vector<9x32xf32> to vector<1x32xf32>
    %4 = vector.extract_strided_slice %0 {offsets = [3, 0], sizes = [1, 32], strides = [1, 1]} : vector<9x32xf32> to vector<1x32xf32>
    %5 = vector.extract_strided_slice %0 {offsets = [4, 0], sizes = [1, 32], strides = [1, 1]} : vector<9x32xf32> to vector<1x32xf32>
    %6 = vector.extract_strided_slice %0 {offsets = [5, 0], sizes = [1, 32], strides = [1, 1]} : vector<9x32xf32> to vector<1x32xf32>
    %7 = vector.extract_strided_slice %0 {offsets = [6, 0], sizes = [1, 32], strides = [1, 1]} : vector<9x32xf32> to vector<1x32xf32>
    %8 = vector.extract_strided_slice %0 {offsets = [7, 0], sizes = [1, 32], strides = [1, 1]} : vector<9x32xf32> to vector<1x32xf32>
    %9 = vector.extract_strided_slice %0 {offsets = [8, 0], sizes = [1, 32], strides = [1, 1]} : vector<9x32xf32> to vector<1x32xf32>
    %c0_i32 = arith.constant 0 : i32
    %10 = arith.cmpi eq, %arg1, %c0_i32 : i32
    %11 = arith.extui %10 : i1 to i32
    %c0_i32_1 = arith.constant 0 : i32
    %12 = arith.cmpi ne, %11, %c0_i32_1 : i32
    scf.if %12 {
      %c0_67 = arith.constant 0 : index
      %c0_68 = arith.constant 0 : index
      %c0_69 = arith.constant 0 : index
      %160 = vector.load %arg2[%c0_67, %c0_68, %c0_69] : memref<1x8x32xf32, #tpu.memory_space<vmem>>, vector<1x8x32xf32>
      %161 = vector.shape_cast %160 : vector<1x8x32xf32> to vector<8x32xf32>
      %162 = arith.truncf %161 : vector<8x32xf32> to vector<8x32xbf16>
      %c0_70 = arith.constant 0 : index
      %c0_71 = arith.constant 0 : index
      %163 = vector.load %arg5[%c0_70, %c0_71] : memref<32x64xbf16, #tpu.memory_space<vmem>>, vector<32x64xbf16>
      %cst_72 = arith.constant dense<0.000000e+00> : vector<8x64xf32>
      %164 = tpu.matmul %162, %163, %cst_72 {dimension_numbers = #tpu.dot_dimension_numbers<[1], [0], [0], [1], [0, 0, 1, 1], [], []>} : vector<8x32xbf16>, vector<32x64xbf16>, vector<8x64xf32> -> vector<8x64xf32>
      %165 = vector.extract_strided_slice %164 {offsets = [0, 0], sizes = [8, 8], strides = [1, 1]} : vector<8x64xf32> to vector<8x8xf32>
      %166 = vector.extract_strided_slice %2 {offsets = [0, 0], sizes = [1, 8], strides = [1, 1]} : vector<1x32xf32> to vector<1x8xf32>
      %167 = vector.broadcast %166 : vector<1x8xf32> to vector<8x8xf32>
      %168 = arith.addf %165, %167 : vector<8x8xf32>
      %169 = arith.truncf %168 : vector<8x8xf32> to vector<8x8xbf16>
      %c0_73 = arith.constant 0 : index
      %c0_74 = arith.constant 0 : index
      %c0_75 = arith.constant 0 : index
      %170 = vector.load %arg12[%c0_73, %c0_74, %c0_75] : memref<4x8x8xbf16, #tpu.memory_space<vmem>>, vector<1x8x8xbf16>
      %171 = vector.shape_cast %170 : vector<1x8x8xbf16> to vector<8x8xbf16>
      %172 = vector.shape_cast %169 : vector<8x8xbf16> to vector<1x8x8xbf16>
      tpu.vector_store %arg12[%c0_73, %c0_74, %c0_75], %172 {strides = array<i32>} : memref<4x8x8xbf16, #tpu.memory_space<vmem>>, vector<1x8x8xbf16>,
      %173 = vector.extract_strided_slice %164 {offsets = [0, 32], sizes = [8, 8], strides = [1, 1]} : vector<8x64xf32> to vector<8x8xf32>
      %174 = vector.extract_strided_slice %3 {offsets = [0, 0], sizes = [1, 8], strides = [1, 1]} : vector<1x32xf32> to vector<1x8xf32>
      %175 = vector.broadcast %174 : vector<1x8xf32> to vector<8x8xf32>
      %176 = arith.addf %173, %175 : vector<8x8xf32>
      %177 = arith.truncf %176 : vector<8x8xf32> to vector<8x8xbf16>
      %c0_76 = arith.constant 0 : index
      %c0_77 = arith.constant 0 : index
      %c0_78 = arith.constant 0 : index
      %178 = vector.load %arg13[%c0_76, %c0_77, %c0_78] : memref<4x8x8xbf16, #tpu.memory_space<vmem>>, vector<1x8x8xbf16>
      %179 = vector.shape_cast %178 : vector<1x8x8xbf16> to vector<8x8xbf16>
      %180 = vector.shape_cast %177 : vector<8x8xbf16> to vector<1x8x8xbf16>
      tpu.vector_store %arg13[%c0_76, %c0_77, %c0_78], %180 {strides = array<i32>} : memref<4x8x8xbf16, #tpu.memory_space<vmem>>, vector<1x8x8xbf16>,
      %181 = vector.extract_strided_slice %164 {offsets = [0, 8], sizes = [8, 8], strides = [1, 1]} : vector<8x64xf32> to vector<8x8xf32>
      %182 = vector.extract_strided_slice %2 {offsets = [0, 8], sizes = [1, 8], strides = [1, 1]} : vector<1x32xf32> to vector<1x8xf32>
      %183 = vector.broadcast %182 : vector<1x8xf32> to vector<8x8xf32>
      %184 = arith.addf %181, %183 : vector<8x8xf32>
      %185 = arith.truncf %184 : vector<8x8xf32> to vector<8x8xbf16>
      %c1_79 = arith.constant 1 : index
      %c0_80 = arith.constant 0 : index
      %c0_81 = arith.constant 0 : index
      %186 = vector.load %arg12[%c1_79, %c0_80, %c0_81] : memref<4x8x8xbf16, #tpu.memory_space<vmem>>, vector<1x8x8xbf16>
      %187 = vector.shape_cast %186 : vector<1x8x8xbf16> to vector<8x8xbf16>
      %188 = vector.shape_cast %185 : vector<8x8xbf16> to vector<1x8x8xbf16>
      tpu.vector_store %arg12[%c1_79, %c0_80, %c0_81], %188 {strides = array<i32>} : memref<4x8x8xbf16, #tpu.memory_space<vmem>>, vector<1x8x8xbf16>,
      %189 = vector.extract_strided_slice %164 {offsets = [0, 40], sizes = [8, 8], strides = [1, 1]} : vector<8x64xf32> to vector<8x8xf32>
      %190 = vector.extract_strided_slice %3 {offsets = [0, 8], sizes = [1, 8], strides = [1, 1]} : vector<1x32xf32> to vector<1x8xf32>
      %191 = vector.broadcast %190 : vector<1x8xf32> to vector<8x8xf32>
      %192 = arith.addf %189, %191 : vector<8x8xf32>
      %193 = arith.truncf %192 : vector<8x8xf32> to vector<8x8xbf16>
      %c1_82 = arith.constant 1 : index
      %c0_83 = arith.constant 0 : index
      %c0_84 = arith.constant 0 : index
      %194 = vector.load %arg13[%c1_82, %c0_83, %c0_84] : memref<4x8x8xbf16, #tpu.memory_space<vmem>>, vector<1x8x8xbf16>
      %195 = vector.shape_cast %194 : vector<1x8x8xbf16> to vector<8x8xbf16>
      %196 = vector.shape_cast %193 : vector<8x8xbf16> to vector<1x8x8xbf16>
      tpu.vector_store %arg13[%c1_82, %c0_83, %c0_84], %196 {strides = array<i32>} : memref<4x8x8xbf16, #tpu.memory_space<vmem>>, vector<1x8x8xbf16>,
      %197 = vector.extract_strided_slice %164 {offsets = [0, 16], sizes = [8, 8], strides = [1, 1]} : vector<8x64xf32> to vector<8x8xf32>
      %198 = vector.extract_strided_slice %2 {offsets = [0, 16], sizes = [1, 8], strides = [1, 1]} : vector<1x32xf32> to vector<1x8xf32>
      %199 = vector.broadcast %198 : vector<1x8xf32> to vector<8x8xf32>
      %200 = arith.addf %197, %199 : vector<8x8xf32>
      %201 = arith.truncf %200 : vector<8x8xf32> to vector<8x8xbf16>
      %c2_85 = arith.constant 2 : index
      %c0_86 = arith.constant 0 : index
      %c0_87 = arith.constant 0 : index
      %202 = vector.load %arg12[%c2_85, %c0_86, %c0_87] : memref<4x8x8xbf16, #tpu.memory_space<vmem>>, vector<1x8x8xbf16>
      %203 = vector.shape_cast %202 : vector<1x8x8xbf16> to vector<8x8xbf16>
      %204 = vector.shape_cast %201 : vector<8x8xbf16> to vector<1x8x8xbf16>
      tpu.vector_store %arg12[%c2_85, %c0_86, %c0_87], %204 {strides = array<i32>} : memref<4x8x8xbf16, #tpu.memory_space<vmem>>, vector<1x8x8xbf16>,
      %205 = vector.extract_strided_slice %164 {offsets = [0, 48], sizes = [8, 8], strides = [1, 1]} : vector<8x64xf32> to vector<8x8xf32>
      %206 = vector.extract_strided_slice %3 {offsets = [0, 16], sizes = [1, 8], strides = [1, 1]} : vector<1x32xf32> to vector<1x8xf32>
      %207 = vector.broadcast %206 : vector<1x8xf32> to vector<8x8xf32>
      %208 = arith.addf %205, %207 : vector<8x8xf32>
      %209 = arith.truncf %208 : vector<8x8xf32> to vector<8x8xbf16>
      %c2_88 = arith.constant 2 : index
      %c0_89 = arith.constant 0 : index
      %c0_90 = arith.constant 0 : index
      %210 = vector.load %arg13[%c2_88, %c0_89, %c0_90] : memref<4x8x8xbf16, #tpu.memory_space<vmem>>, vector<1x8x8xbf16>
      %211 = vector.shape_cast %210 : vector<1x8x8xbf16> to vector<8x8xbf16>
      %212 = vector.shape_cast %209 : vector<8x8xbf16> to vector<1x8x8xbf16>
      tpu.vector_store %arg13[%c2_88, %c0_89, %c0_90], %212 {strides = array<i32>} : memref<4x8x8xbf16, #tpu.memory_space<vmem>>, vector<1x8x8xbf16>,
      %213 = vector.extract_strided_slice %164 {offsets = [0, 24], sizes = [8, 8], strides = [1, 1]} : vector<8x64xf32> to vector<8x8xf32>
      %214 = vector.extract_strided_slice %2 {offsets = [0, 24], sizes = [1, 8], strides = [1, 1]} : vector<1x32xf32> to vector<1x8xf32>
      %215 = vector.broadcast %214 : vector<1x8xf32> to vector<8x8xf32>
      %216 = arith.addf %213, %215 : vector<8x8xf32>
      %217 = arith.truncf %216 : vector<8x8xf32> to vector<8x8xbf16>
      %c3_91 = arith.constant 3 : index
      %c0_92 = arith.constant 0 : index
      %c0_93 = arith.constant 0 : index
      %218 = vector.load %arg12[%c3_91, %c0_92, %c0_93] : memref<4x8x8xbf16, #tpu.memory_space<vmem>>, vector<1x8x8xbf16>
      %219 = vector.shape_cast %218 : vector<1x8x8xbf16> to vector<8x8xbf16>
      %220 = vector.shape_cast %217 : vector<8x8xbf16> to vector<1x8x8xbf16>
      tpu.vector_store %arg12[%c3_91, %c0_92, %c0_93], %220 {strides = array<i32>} : memref<4x8x8xbf16, #tpu.memory_space<vmem>>, vector<1x8x8xbf16>,
      %221 = vector.extract_strided_slice %164 {offsets = [0, 56], sizes = [8, 8], strides = [1, 1]} : vector<8x64xf32> to vector<8x8xf32>
      %222 = vector.extract_strided_slice %3 {offsets = [0, 24], sizes = [1, 8], strides = [1, 1]} : vector<1x32xf32> to vector<1x8xf32>
      %223 = vector.broadcast %222 : vector<1x8xf32> to vector<8x8xf32>
      %224 = arith.addf %221, %223 : vector<8x8xf32>
      %225 = arith.truncf %224 : vector<8x8xf32> to vector<8x8xbf16>
      %c3_94 = arith.constant 3 : index
      %c0_95 = arith.constant 0 : index
      %c0_96 = arith.constant 0 : index
      %226 = vector.load %arg13[%c3_94, %c0_95, %c0_96] : memref<4x8x8xbf16, #tpu.memory_space<vmem>>, vector<1x8x8xbf16>
      %227 = vector.shape_cast %226 : vector<1x8x8xbf16> to vector<8x8xbf16>
      %228 = vector.shape_cast %225 : vector<8x8xbf16> to vector<1x8x8xbf16>
      tpu.vector_store %arg13[%c3_94, %c0_95, %c0_96], %228 {strides = array<i32>} : memref<4x8x8xbf16, #tpu.memory_space<vmem>>, vector<1x8x8xbf16>,
    } else {
    }
    %c0_2 = arith.constant 0 : index
    %c0_3 = arith.constant 0 : index
    %c0_4 = arith.constant 0 : index
    %13 = vector.load %arg3[%c0_2, %c0_3, %c0_4] : memref<1x8x32xf32, #tpu.memory_space<vmem>>, vector<1x8x32xf32>
    %14 = vector.shape_cast %13 : vector<1x8x32xf32> to vector<8x32xf32>
    %15 = arith.truncf %14 : vector<8x32xf32> to vector<8x32xbf16>
    %c0_5 = arith.constant 0 : index
    %c0_6 = arith.constant 0 : index
    %16 = vector.load %arg4[%c0_5, %c0_6] : memref<32x32xbf16, #tpu.memory_space<vmem>>, vector<32x32xbf16>
    %cst = arith.constant dense<0.000000e+00> : vector<8x32xf32>
    %17 = tpu.matmul %15, %16, %cst {dimension_numbers = #tpu.dot_dimension_numbers<[1], [0], [0], [1], [0, 0, 1, 1], [], []>} : vector<8x32xbf16>, vector<32x32xbf16>, vector<8x32xf32> -> vector<8x32xf32>
    %18 = vector.broadcast %1 : vector<1x32xf32> to vector<8x32xf32>
    %19 = arith.addf %17, %18 : vector<8x32xf32>
    %20 = vector.extract_strided_slice %19 {offsets = [0, 0], sizes = [8, 8], strides = [1, 1]} : vector<8x32xf32> to vector<8x8xf32>
    %21 = arith.truncf %20 : vector<8x8xf32> to vector<8x8xbf16>
    %c0_7 = arith.constant 0 : index
    %c0_8 = arith.constant 0 : index
    %c0_9 = arith.constant 0 : index
    %22 = vector.load %arg14[%c0_7, %c0_8, %c0_9] : memref<4x8x8xbf16, #tpu.memory_space<vmem>>, vector<1x8x8xbf16>
    %23 = vector.shape_cast %22 : vector<1x8x8xbf16> to vector<8x8xbf16>
    %24 = vector.shape_cast %21 : vector<8x8xbf16> to vector<1x8x8xbf16>
    tpu.vector_store %arg14[%c0_7, %c0_8, %c0_9], %24 {strides = array<i32>} : memref<4x8x8xbf16, #tpu.memory_space<vmem>>, vector<1x8x8xbf16>,
    %25 = vector.extract_strided_slice %19 {offsets = [0, 8], sizes = [8, 8], strides = [1, 1]} : vector<8x32xf32> to vector<8x8xf32>
    %26 = arith.truncf %25 : vector<8x8xf32> to vector<8x8xbf16>
    %c1 = arith.constant 1 : index
    %c0_10 = arith.constant 0 : index
    %c0_11 = arith.constant 0 : index
    %27 = vector.load %arg14[%c1, %c0_10, %c0_11] : memref<4x8x8xbf16, #tpu.memory_space<vmem>>, vector<1x8x8xbf16>
    %28 = vector.shape_cast %27 : vector<1x8x8xbf16> to vector<8x8xbf16>
    %29 = vector.shape_cast %26 : vector<8x8xbf16> to vector<1x8x8xbf16>
    tpu.vector_store %arg14[%c1, %c0_10, %c0_11], %29 {strides = array<i32>} : memref<4x8x8xbf16, #tpu.memory_space<vmem>>, vector<1x8x8xbf16>,
    %30 = vector.extract_strided_slice %19 {offsets = [0, 16], sizes = [8, 8], strides = [1, 1]} : vector<8x32xf32> to vector<8x8xf32>
    %31 = arith.truncf %30 : vector<8x8xf32> to vector<8x8xbf16>
    %c2 = arith.constant 2 : index
    %c0_12 = arith.constant 0 : index
    %c0_13 = arith.constant 0 : index
    %32 = vector.load %arg14[%c2, %c0_12, %c0_13] : memref<4x8x8xbf16, #tpu.memory_space<vmem>>, vector<1x8x8xbf16>
    %33 = vector.shape_cast %32 : vector<1x8x8xbf16> to vector<8x8xbf16>
    %34 = vector.shape_cast %31 : vector<8x8xbf16> to vector<1x8x8xbf16>
    tpu.vector_store %arg14[%c2, %c0_12, %c0_13], %34 {strides = array<i32>} : memref<4x8x8xbf16, #tpu.memory_space<vmem>>, vector<1x8x8xbf16>,
    %35 = vector.extract_strided_slice %19 {offsets = [0, 24], sizes = [8, 8], strides = [1, 1]} : vector<8x32xf32> to vector<8x8xf32>
    %36 = arith.truncf %35 : vector<8x8xf32> to vector<8x8xbf16>
    %c3 = arith.constant 3 : index
    %c0_14 = arith.constant 0 : index
    %c0_15 = arith.constant 0 : index
    %37 = vector.load %arg14[%c3, %c0_14, %c0_15] : memref<4x8x8xbf16, #tpu.memory_space<vmem>>, vector<1x8x8xbf16>
    %38 = vector.shape_cast %37 : vector<1x8x8xbf16> to vector<8x8xbf16>
    %39 = vector.shape_cast %36 : vector<8x8xbf16> to vector<1x8x8xbf16>
    tpu.vector_store %arg14[%c3, %c0_14, %c0_15], %39 {strides = array<i32>} : memref<4x8x8xbf16, #tpu.memory_space<vmem>>, vector<1x8x8xbf16>,
    %c0_16 = arith.constant 0 : index
    %c0_17 = arith.constant 0 : index
    %c0_18 = arith.constant 0 : index
    %40 = vector.load %arg14[%c0_16, %c0_17, %c0_18] : memref<4x8x8xbf16, #tpu.memory_space<vmem>>, vector<4x8x8xbf16>
    %c0_19 = arith.constant 0 : index
    %c0_20 = arith.constant 0 : index
    %c0_21 = arith.constant 0 : index
    %41 = vector.load %arg12[%c0_19, %c0_20, %c0_21] : memref<4x8x8xbf16, #tpu.memory_space<vmem>>, vector<4x8x8xbf16>
    %c0_22 = arith.constant 0 : index
    %c0_23 = arith.constant 0 : index
    %c0_24 = arith.constant 0 : index
    %42 = vector.load %arg13[%c0_22, %c0_23, %c0_24] : memref<4x8x8xbf16, #tpu.memory_space<vmem>>, vector<4x8x8xbf16>
    "tpu.trace_start"() <{level = 10 : i32, message = "hqd,hkd->hqk"}> : () -> ()
    %cst_25 = arith.constant dense<0.000000e+00> : vector<4x8x8xf32>
    %43 = tpu.matmul %40, %41, %cst_25 {dimension_numbers = #tpu.dot_dimension_numbers<[2], [2], [1], [1], [0, 0, 0, 1, 1, 1], [0], [0]>} : vector<4x8x8xbf16>, vector<4x8x8xbf16>, vector<4x8x8xf32> -> vector<4x8x8xf32>
    "tpu.trace_stop"() : () -> ()
    %cst_26 = arith.constant 0.353553385 : f32
    %44 = vector.broadcast %cst_26 : f32 to vector<4x8x8xf32>
    %45 = arith.mulf %43, %44 : vector<4x8x8xf32>
    %c8_i32 = arith.constant 8 : i32
    %46 = arith.muli %arg1, %c8_i32 : i32
    %47 = tpu.iota {dimensions = array<i32: 0>} : vector<8x8xi32>
    %48 = vector.broadcast %46 : i32 to vector<8x8xi32>
    %49 = arith.addi %48, %47 : vector<8x8xi32>
    %50 = tpu.iota {dimensions = array<i32: 1>} : vector<8x8xi32>
    %51 = arith.cmpi sgt, %50, %49 : vector<8x8xi32>
    %cst_27 = arith.constant -1.000000e+30 : f32
    %cst_28 = arith.constant 0.000000e+00 : f32
    %52 = vector.broadcast %cst_27 : f32 to vector<8x8xf32>
    %53 = vector.broadcast %cst_28 : f32 to vector<8x8xf32>
    %54 = arith.select %51, %52, %53 : vector<8x8xi1>, vector<8x8xf32>
    %55 = vector.shape_cast %54 : vector<8x8xf32> to vector<1x8x8xf32>
    %56 = vector.broadcast %55 : vector<1x8x8xf32> to vector<4x8x8xf32>
    %57 = arith.addf %45, %56 : vector<4x8x8xf32>
    %cst_29 = arith.constant dense<0xFF800000> : vector<4x8xf32>
    %58 = vector.multi_reduction <maximumf>, %57, %cst_29 [2] : vector<4x8x8xf32> to vector<4x8xf32>
    %59 = vector.shape_cast %58 : vector<4x8xf32> to vector<4x8x1xf32>
    %60 = vector.broadcast %59 : vector<4x8x1xf32> to vector<4x8x8xf32>
    %61 = arith.subf %57, %60 : vector<4x8x8xf32>
    %62 = math.exp %61 : vector<4x8x8xf32>
    %cst_30 = arith.constant dense<0.000000e+00> : vector<4x8xf32>
    %63 = vector.multi_reduction <add>, %62, %cst_30 [2] : vector<4x8x8xf32> to vector<4x8xf32>
    %64 = vector.shape_cast %63 : vector<4x8xf32> to vector<4x8x1xf32>
    %65 = tpu.reciprocal %64 {approx = true} : vector<4x8x1xf32> -> vector<4x8x1xf32>
    %66 = vector.broadcast %65 : vector<4x8x1xf32> to vector<4x8x8xf32>
    %67 = arith.mulf %62, %66 : vector<4x8x8xf32>
    %68 = arith.truncf %67 : vector<4x8x8xf32> to vector<4x8x8xbf16>
    "tpu.trace_start"() <{level = 10 : i32, message = "hqk,hkd->hqd"}> : () -> ()
    %cst_31 = arith.constant dense<0.000000e+00> : vector<4x8x8xf32>
    %69 = tpu.matmul %68, %42, %cst_31 {dimension_numbers = #tpu.dot_dimension_numbers<[2], [1], [1], [2], [0, 0, 0, 1, 1, 2], [0], [0]>} : vector<4x8x8xbf16>, vector<4x8x8xbf16>, vector<4x8x8xf32> -> vector<4x8x8xf32>
    "tpu.trace_stop"() : () -> ()
    %70 = vector.extract_strided_slice %69 {offsets = [0, 0, 0], sizes = [1, 8, 8], strides = [1, 1, 1]} : vector<4x8x8xf32> to vector<1x8x8xf32>
    %71 = vector.shape_cast %70 : vector<1x8x8xf32> to vector<8x8xf32>
    %72 = arith.truncf %71 : vector<8x8xf32> to vector<8x8xbf16>
    %c0_32 = arith.constant 0 : index
    %c0_33 = arith.constant 0 : index
    %73 = vector.load %arg15[%c0_32, %c0_33] : memref<8x32xbf16, #tpu.memory_space<vmem>>, vector<8x8xbf16>
    tpu.vector_store %arg15[%c0_32, %c0_33], %72 {strides = array<i32>} : memref<8x32xbf16, #tpu.memory_space<vmem>>, vector<8x8xbf16>,
    %74 = vector.extract_strided_slice %69 {offsets = [1, 0, 0], sizes = [1, 8, 8], strides = [1, 1, 1]} : vector<4x8x8xf32> to vector<1x8x8xf32>
    %75 = vector.shape_cast %74 : vector<1x8x8xf32> to vector<8x8xf32>
    %76 = arith.truncf %75 : vector<8x8xf32> to vector<8x8xbf16>
    %c0_34 = arith.constant 0 : index
    %c8 = arith.constant 8 : index
    %77 = vector.load %arg15[%c0_34, %c8] : memref<8x32xbf16, #tpu.memory_space<vmem>>, vector<8x8xbf16>
    tpu.vector_store %arg15[%c0_34, %c8], %76 {strides = array<i32>} : memref<8x32xbf16, #tpu.memory_space<vmem>>, vector<8x8xbf16>,
    %78 = vector.extract_strided_slice %69 {offsets = [2, 0, 0], sizes = [1, 8, 8], strides = [1, 1, 1]} : vector<4x8x8xf32> to vector<1x8x8xf32>
    %79 = vector.shape_cast %78 : vector<1x8x8xf32> to vector<8x8xf32>
    %80 = arith.truncf %79 : vector<8x8xf32> to vector<8x8xbf16>
    %c0_35 = arith.constant 0 : index
    %c16 = arith.constant 16 : index
    %81 = vector.load %arg15[%c0_35, %c16] : memref<8x32xbf16, #tpu.memory_space<vmem>>, vector<8x8xbf16>
    tpu.vector_store %arg15[%c0_35, %c16], %80 {strides = array<i32>} : memref<8x32xbf16, #tpu.memory_space<vmem>>, vector<8x8xbf16>,
    %82 = vector.extract_strided_slice %69 {offsets = [3, 0, 0], sizes = [1, 8, 8], strides = [1, 1, 1]} : vector<4x8x8xf32> to vector<1x8x8xf32>
    %83 = vector.shape_cast %82 : vector<1x8x8xf32> to vector<8x8xf32>
    %84 = arith.truncf %83 : vector<8x8xf32> to vector<8x8xbf16>
    %c0_36 = arith.constant 0 : index
    %c24 = arith.constant 24 : index
    %85 = vector.load %arg15[%c0_36, %c24] : memref<8x32xbf16, #tpu.memory_space<vmem>>, vector<8x8xbf16>
    tpu.vector_store %arg15[%c0_36, %c24], %84 {strides = array<i32>} : memref<8x32xbf16, #tpu.memory_space<vmem>>, vector<8x8xbf16>,
    %c0_37 = arith.constant 0 : index
    %c0_38 = arith.constant 0 : index
    %86 = vector.load %arg15[%c0_37, %c0_38] : memref<8x32xbf16, #tpu.memory_space<vmem>>, vector<8x32xbf16>
    %c0_39 = arith.constant 0 : index
    %c0_40 = arith.constant 0 : index
    %87 = vector.load %arg6[%c0_39, %c0_40] : memref<32x32xbf16, #tpu.memory_space<vmem>>, vector<32x32xbf16>
    %cst_41 = arith.constant dense<0.000000e+00> : vector<8x32xf32>
    %88 = tpu.matmul %86, %87, %cst_41 {dimension_numbers = #tpu.dot_dimension_numbers<[1], [0], [0], [1], [0, 0, 1, 1], [], []>} : vector<8x32xbf16>, vector<32x32xbf16>, vector<8x32xf32> -> vector<8x32xf32>
    %89 = vector.broadcast %4 : vector<1x32xf32> to vector<8x32xf32>
    %90 = arith.addf %88, %89 : vector<8x32xf32>
    %91 = arith.addf %14, %90 : vector<8x32xf32>
    %cst_42 = arith.constant dense<0.000000e+00> : vector<8xf32>
    %92 = vector.multi_reduction <add>, %91, %cst_42 [1] : vector<8x32xf32> to vector<8xf32>
    %93 = vector.shape_cast %92 : vector<8xf32> to vector<8x1xf32>
    %cst_43 = arith.constant 3.200000e+01 : f32
    %94 = vector.broadcast %cst_43 : f32 to vector<8x1xf32>
    %95 = arith.divf %93, %94 : vector<8x1xf32>
    %96 = vector.broadcast %95 : vector<8x1xf32> to vector<8x32xf32>
    %97 = arith.subf %91, %96 : vector<8x32xf32>
    %98 = arith.mulf %97, %97 : vector<8x32xf32>
    %cst_44 = arith.constant dense<0.000000e+00> : vector<8xf32>
    %99 = vector.multi_reduction <add>, %98, %cst_44 [1] : vector<8x32xf32> to vector<8xf32>
    %100 = vector.shape_cast %99 : vector<8xf32> to vector<8x1xf32>
    %cst_45 = arith.constant 3.200000e+01 : f32
    %101 = vector.broadcast %cst_45 : f32 to vector<8x1xf32>
    %102 = arith.divf %100, %101 : vector<8x1xf32>
    %cst_46 = arith.constant 9.99999974E-6 : f32
    %103 = vector.broadcast %cst_46 : f32 to vector<8x1xf32>
    %104 = arith.addf %102, %103 : vector<8x1xf32>
    %105 = math.rsqrt %104 : vector<8x1xf32>
    %106 = vector.broadcast %105 : vector<8x1xf32> to vector<8x32xf32>
    %107 = arith.mulf %97, %106 : vector<8x32xf32>
    %108 = vector.broadcast %5 : vector<1x32xf32> to vector<8x32xf32>
    %109 = arith.mulf %107, %108 : vector<8x32xf32>
    %110 = vector.broadcast %6 : vector<1x32xf32> to vector<8x32xf32>
    %111 = arith.addf %109, %110 : vector<8x32xf32>
    %112 = arith.truncf %111 : vector<8x32xf32> to vector<8x32xbf16>
    %c0_47 = arith.constant 0 : index
    %c0_48 = arith.constant 0 : index
    %113 = vector.load %arg7[%c0_47, %c0_48] : memref<32x64xbf16, #tpu.memory_space<vmem>>, vector<32x64xbf16>
    %cst_49 = arith.constant dense<0.000000e+00> : vector<8x64xf32>
    %114 = tpu.matmul %112, %113, %cst_49 {dimension_numbers = #tpu.dot_dimension_numbers<[1], [0], [0], [1], [0, 0, 1, 1], [], []>} : vector<8x32xbf16>, vector<32x64xbf16>, vector<8x64xf32> -> vector<8x64xf32>
    %c0_50 = arith.constant 0 : index
    %c0_51 = arith.constant 0 : index
    %115 = vector.load %arg10[%c0_50, %c0_51] : memref<1x64xf32, #tpu.memory_space<vmem>>, vector<1x64xf32>
    %116 = vector.broadcast %115 : vector<1x64xf32> to vector<8x64xf32>
    %117 = arith.addf %114, %116 : vector<8x64xf32>
    %cst_52 = arith.constant 5.000000e-01 : f32
    %118 = vector.broadcast %cst_52 : f32 to vector<8x64xf32>
    %119 = arith.mulf %118, %117 : vector<8x64xf32>
    %120 = arith.mulf %117, %117 : vector<8x64xf32>
    %121 = arith.mulf %120, %117 : vector<8x64xf32>
    %cst_53 = arith.constant 4.471500e-02 : f32
    %122 = vector.broadcast %cst_53 : f32 to vector<8x64xf32>
    %123 = arith.mulf %122, %121 : vector<8x64xf32>
    %124 = arith.addf %117, %123 : vector<8x64xf32>
    %cst_54 = arith.constant 0.797884583 : f32
    %125 = vector.broadcast %cst_54 : f32 to vector<8x64xf32>
    %126 = arith.mulf %125, %124 : vector<8x64xf32>
    %127 = math.tanh %126 : vector<8x64xf32>
    %cst_55 = arith.constant 1.000000e+00 : f32
    %128 = vector.broadcast %cst_55 : f32 to vector<8x64xf32>
    %129 = arith.addf %128, %127 : vector<8x64xf32>
    %130 = arith.mulf %119, %129 : vector<8x64xf32>
    %131 = arith.truncf %130 : vector<8x64xf32> to vector<8x64xbf16>
    %c0_56 = arith.constant 0 : index
    %c0_57 = arith.constant 0 : index
    %132 = vector.load %arg8[%c0_56, %c0_57] : memref<64x32xbf16, #tpu.memory_space<vmem>>, vector<64x32xbf16>
    %cst_58 = arith.constant dense<0.000000e+00> : vector<8x32xf32>
    %133 = tpu.matmul %131, %132, %cst_58 {dimension_numbers = #tpu.dot_dimension_numbers<[1], [0], [0], [1], [0, 0, 1, 1], [], []>} : vector<8x64xbf16>, vector<64x32xbf16>, vector<8x32xf32> -> vector<8x32xf32>
    %134 = vector.broadcast %7 : vector<1x32xf32> to vector<8x32xf32>
    %135 = arith.addf %133, %134 : vector<8x32xf32>
    %136 = arith.addf %111, %135 : vector<8x32xf32>
    %cst_59 = arith.constant dense<0.000000e+00> : vector<8xf32>
    %137 = vector.multi_reduction <add>, %136, %cst_59 [1] : vector<8x32xf32> to vector<8xf32>
    %138 = vector.shape_cast %137 : vector<8xf32> to vector<8x1xf32>
    %cst_60 = arith.constant 3.200000e+01 : f32
    %139 = vector.broadcast %cst_60 : f32 to vector<8x1xf32>
    %140 = arith.divf %138, %139 : vector<8x1xf32>
    %141 = vector.broadcast %140 : vector<8x1xf32> to vector<8x32xf32>
    %142 = arith.subf %136, %141 : vector<8x32xf32>
    %143 = arith.mulf %142, %142 : vector<8x32xf32>
    %cst_61 = arith.constant dense<0.000000e+00> : vector<8xf32>
    %144 = vector.multi_reduction <add>, %143, %cst_61 [1] : vector<8x32xf32> to vector<8xf32>
    %145 = vector.shape_cast %144 : vector<8xf32> to vector<8x1xf32>
    %cst_62 = arith.constant 3.200000e+01 : f32
    %146 = vector.broadcast %cst_62 : f32 to vector<8x1xf32>
    %147 = arith.divf %145, %146 : vector<8x1xf32>
    %cst_63 = arith.constant 9.99999974E-6 : f32
    %148 = vector.broadcast %cst_63 : f32 to vector<8x1xf32>
    %149 = arith.addf %147, %148 : vector<8x1xf32>
    %150 = math.rsqrt %149 : vector<8x1xf32>
    %151 = vector.broadcast %150 : vector<8x1xf32> to vector<8x32xf32>
    %152 = arith.mulf %142, %151 : vector<8x32xf32>
    %153 = vector.broadcast %8 : vector<1x32xf32> to vector<8x32xf32>
    %154 = arith.mulf %152, %153 : vector<8x32xf32>
    %155 = vector.broadcast %9 : vector<1x32xf32> to vector<8x32xf32>
    %156 = arith.addf %154, %155 : vector<8x32xf32>
    %c0_64 = arith.constant 0 : index
    %c0_65 = arith.constant 0 : index
    %c0_66 = arith.constant 0 : index
    %157 = vector.load %arg11[%c0_64, %c0_65, %c0_66] : memref<1x8x32xf32, #tpu.memory_space<vmem>>, vector<1x8x32xf32>
    %158 = vector.shape_cast %157 : vector<1x8x32xf32> to vector<8x32xf32>
    %159 = vector.shape_cast %156 : vector<8x32xf32> to vector<1x8x32xf32>
    tpu.vector_store %arg11[%c0_64, %c0_65, %c0_66], %159 {strides = array<i32>} : memref<1x8x32xf32, #tpu.memory_space<vmem>>, vector<1x8x32xf32>,
    return
  }
  func.func @transform_0(%arg0: i32, %arg1: i32) -> (i32, i32, i32) {
    %c0_i32 = arith.constant 0 : i32
    %c0_i32_0 = arith.constant 0 : i32
    %c0_i32_1 = arith.constant 0 : i32
    return %arg0, %c0_i32, %c0_i32_0 : i32, i32, i32
  }
  func.func @transform_1(%arg0: i32, %arg1: i32) -> (i32, i32, i32) {
    %c0_i32 = arith.constant 0 : i32
    %c0_i32_0 = arith.constant 0 : i32
    return %arg0, %arg1, %c0_i32 : i32, i32, i32
  }
  func.func @transform_2(%arg0: i32, %arg1: i32) -> (i32, i32) {
    %c0_i32 = arith.constant 0 : i32
    %c0_i32_0 = arith.constant 0 : i32
    %c0_i32_1 = arith.constant 0 : i32
    return %c0_i32, %c0_i32_0 : i32, i32
  }
  func.func @transform_3(%arg0: i32, %arg1: i32) -> (i32, i32) {
    %c0_i32 = arith.constant 0 : i32
    %c0_i32_0 = arith.constant 0 : i32
    %c0_i32_1 = arith.constant 0 : i32
    return %c0_i32, %c0_i32_0 : i32, i32
  }
  func.func @transform_4(%arg0: i32, %arg1: i32) -> (i32, i32) {
    %c0_i32 = arith.constant 0 : i32
    %c0_i32_0 = arith.constant 0 : i32
    %c0_i32_1 = arith.constant 0 : i32
    return %c0_i32, %c0_i32_0 : i32, i32
  }
  func.func @transform_5(%arg0: i32, %arg1: i32) -> (i32, i32) {
    %c0_i32 = arith.constant 0 : i32
    %c0_i32_0 = arith.constant 0 : i32
    %c0_i32_1 = arith.constant 0 : i32
    return %c0_i32, %c0_i32_0 : i32, i32
  }
  func.func @transform_6(%arg0: i32, %arg1: i32) -> (i32, i32) {
    %c0_i32 = arith.constant 0 : i32
    %c0_i32_0 = arith.constant 0 : i32
    %c0_i32_1 = arith.constant 0 : i32
    return %c0_i32, %c0_i32_0 : i32, i32
  }
  func.func @transform_7(%arg0: i32, %arg1: i32) -> (i32, i32) {
    %c0_i32 = arith.constant 0 : i32
    %c0_i32_0 = arith.constant 0 : i32
    %c0_i32_1 = arith.constant 0 : i32
    return %c0_i32, %c0_i32_0 : i32, i32
  }
  func.func @transform_8(%arg0: i32, %arg1: i32) -> (i32, i32) {
    %c0_i32 = arith.constant 0 : i32
    %c0_i32_0 = arith.constant 0 : i32
    %c0_i32_1 = arith.constant 0 : i32
    return %c0_i32, %c0_i32_0 : i32, i32
  }
  func.func @transform_9(%arg0: i32, %arg1: i32) -> (i32, i32, i32) {
    %c0_i32 = arith.constant 0 : i32
    %c0_i32_0 = arith.constant 0 : i32
    return %arg0, %arg1, %c0_i32 : i32, i32, i32
  }
}

module attributes {stable_mosaic.version = 11 : i64} {
  func.func @encoder_layer_kernel(%arg0: i32, %arg1: i32, %arg2: memref<1x8x32xf32, #tpu.memory_space<vmem>>, %arg3: memref<1x8x32xf32, #tpu.memory_space<vmem>>, %arg4: memref<32x32xbf16, #tpu.memory_space<vmem>>, %arg5: memref<32x64xbf16, #tpu.memory_space<vmem>>, %arg6: memref<32x32xbf16, #tpu.memory_space<vmem>>, %arg7: memref<32x64xbf16, #tpu.memory_space<vmem>>, %arg8: memref<64x32xbf16, #tpu.memory_space<vmem>>, %arg9: memref<9x32xf32, #tpu.memory_space<vmem>>, %arg10: memref<1x64xf32, #tpu.memory_space<vmem>>, %arg11: memref<1x8x32xf32, #tpu.memory_space<vmem>>, %arg12: memref<4x8x8xbf16, #tpu.memory_space<vmem>>, %arg13: memref<4x8x8xbf16, #tpu.memory_space<vmem>>, %arg14: memref<4x8x8xbf16, #tpu.memory_space<vmem>>, %arg15: memref<8x32xbf16, #tpu.memory_space<vmem>>) attributes {dimension_semantics = [#tpu.dimension_semantics<parallel>, #tpu.dimension_semantics<arbitrary>], iteration_bounds = array<i64: 2, 1>, scalar_prefetch = 0 : i64, scratch_operands = 4 : i64, tpu.core_type = #tpu.core_type<tc>, window_params = [{transform_indices = @transform_0, window_bounds = array<i64: 1, 8, 32>}, {transform_indices = @transform_1, window_bounds = array<i64: 1, 8, 32>}, {pipeline_mode = #tpu.pipeline_mode<synchronous>, transform_indices = @transform_2, window_bounds = array<i64: 32, 32>}, {pipeline_mode = #tpu.pipeline_mode<synchronous>, transform_indices = @transform_3, window_bounds = array<i64: 32, 64>}, {pipeline_mode = #tpu.pipeline_mode<synchronous>, transform_indices = @transform_4, window_bounds = array<i64: 32, 32>}, {pipeline_mode = #tpu.pipeline_mode<synchronous>, transform_indices = @transform_5, window_bounds = array<i64: 32, 64>}, {pipeline_mode = #tpu.pipeline_mode<synchronous>, transform_indices = @transform_6, window_bounds = array<i64: 64, 32>}, {pipeline_mode = #tpu.pipeline_mode<synchronous>, transform_indices = @transform_7, window_bounds = array<i64: 9, 32>}, {pipeline_mode = #tpu.pipeline_mode<synchronous>, transform_indices = @transform_8, window_bounds = array<i64: 1, 64>}, {transform_indices = @transform_9, window_bounds = array<i64: 1, 8, 32>}]} {
    %c0 = arith.constant 0 : index
    %c0_0 = arith.constant 0 : index
    %0 = vector.load %arg9[%c0, %c0_0] : memref<9x32xf32, #tpu.memory_space<vmem>>, vector<9x32xf32>
    %1 = vector.extract_strided_slice %0 {offsets = [0, 0], sizes = [1, 32], strides = [1, 1]} : vector<9x32xf32> to vector<1x32xf32>
    %2 = vector.extract_strided_slice %0 {offsets = [1, 0], sizes = [1, 32], strides = [1, 1]} : vector<9x32xf32> to vector<1x32xf32>
    %3 = vector.extract_strided_slice %0 {offsets = [2, 0], sizes = [1, 32], strides = [1, 1]} : vector<9x32xf32> to vector<1x32xf32>
    %4 = vector.extract_strided_slice %0 {offsets = [3, 0], sizes = [1, 32], strides = [1, 1]} : vector<9x32xf32> to vector<1x32xf32>
    %5 = vector.extract_strided_slice %0 {offsets = [4, 0], sizes = [1, 32], strides = [1, 1]} : vector<9x32xf32> to vector<1x32xf32>
    %6 = vector.extract_strided_slice %0 {offsets = [5, 0], sizes = [1, 32], strides = [1, 1]} : vector<9x32xf32> to vector<1x32xf32>
    %7 = vector.extract_strided_slice %0 {offsets = [6, 0], sizes = [1, 32], strides = [1, 1]} : vector<9x32xf32> to vector<1x32xf32>
    %8 = vector.extract_strided_slice %0 {offsets = [7, 0], sizes = [1, 32], strides = [1, 1]} : vector<9x32xf32> to vector<1x32xf32>
    %9 = vector.extract_strided_slice %0 {offsets = [8, 0], sizes = [1, 32], strides = [1, 1]} : vector<9x32xf32> to vector<1x32xf32>
    %c0_i32 = arith.constant 0 : i32
    %10 = arith.cmpi eq, %arg1, %c0_i32 : i32
    %11 = arith.extui %10 : i1 to i32
    %c0_i32_1 = arith.constant 0 : i32
    %12 = arith.cmpi ne, %11, %c0_i32_1 : i32
    scf.if %12 {
      %c0_67 = arith.constant 0 : index
      %c0_68 = arith.constant 0 : index
      %c0_69 = arith.constant 0 : index
      %160 = vector.load %arg2[%c0_67, %c0_68, %c0_69] : memref<1x8x32xf32, #tpu.memory_space<vmem>>, vector<1x8x32xf32>
      %161 = vector.shape_cast %160 : vector<1x8x32xf32> to vector<8x32xf32>
      %162 = arith.truncf %161 : vector<8x32xf32> to vector<8x32xbf16>
      %c0_70 = arith.constant 0 : index
      %c0_71 = arith.constant 0 : index
      %163 = vector.load %arg5[%c0_70, %c0_71] : memref<32x64xbf16, #tpu.memory_space<vmem>>, vector<32x64xbf16>
      %cst_72 = arith.constant dense<0.000000e+00> : vector<8x64xf32>
      %164 = tpu.matmul %162, %163, %cst_72 {dimension_numbers = #tpu.dot_dimension_numbers<[1], [0], [0], [1], [0, 0, 1, 1], [], []>} : vector<8x32xbf16>, vector<32x64xbf16>, vector<8x64xf32> -> vector<8x64xf32>
      %165 = vector.extract_strided_slice %164 {offsets = [0, 0], sizes = [8, 8], strides = [1, 1]} : vector<8x64xf32> to vector<8x8xf32>
      %166 = vector.extract_strided_slice %2 {offsets = [0, 0], sizes = [1, 8], strides = [1, 1]} : vector<1x32xf32> to vector<1x8xf32>
      %167 = vector.broadcast %166 : vector<1x8xf32> to vector<8x8xf32>
      %168 = arith.addf %165, %167 : vector<8x8xf32>
      %169 = arith.truncf %168 : vector<8x8xf32> to vector<8x8xbf16>
      %c0_73 = arith.constant 0 : index
      %c0_74 = arith.constant 0 : index
      %c0_75 = arith.constant 0 : index
      %170 = vector.load %arg12[%c0_73, %c0_74, %c0_75] : memref<4x8x8xbf16, #tpu.memory_space<vmem>>, vector<1x8x8xbf16>
      %171 = vector.shape_cast %170 : vector<1x8x8xbf16> to vector<8x8xbf16>
      %172 = vector.shape_cast %169 : vector<8x8xbf16> to vector<1x8x8xbf16>
      tpu.vector_store %arg12[%c0_73, %c0_74, %c0_75], %172 {strides = array<i32>} : memref<4x8x8xbf16, #tpu.memory_space<vmem>>, vector<1x8x8xbf16>,
      %173 = vector.extract_strided_slice %164 {offsets = [0, 32], sizes = [8, 8], strides = [1, 1]} : vector<8x64xf32> to vector<8x8xf32>
      %174 = vector.extract_strided_slice %3 {offsets = [0, 0], sizes = [1, 8], strides = [1, 1]} : vector<1x32xf32> to vector<1x8xf32>
      %175 = vector.broadcast %174 : vector<1x8xf32> to vector<8x8xf32>
      %176 = arith.addf %173, %175 : vector<8x8xf32>
      %177 = arith.truncf %176 : vector<8x8xf32> to vector<8x8xbf16>
      %c0_76 = arith.constant 0 : index
      %c0_77 = arith.constant 0 : index
      %c0_78 = arith.constant 0 : index
      %178 = vector.load %arg13[%c0_76, %c0_77, %c0_78] : memref<4x8x8xbf16, #tpu.memory_space<vmem>>, vector<1x8x8xbf16>
      %179 = vector.shape_cast %178 : vector<1x8x8xbf16> to vector<8x8xbf16>
      %180 = vector.shape_cast %177 : vector<8x8xbf16> to vector<1x8x8xbf16>
      tpu.vector_store %arg13[%c0_76, %c0_77, %c0_78], %180 {strides = array<i32>} : memref<4x8x8xbf16, #tpu.memory_space<vmem>>, vector<1x8x8xbf16>,
      %181 = vector.extract_strided_slice %164 {offsets = [0, 8], sizes = [8, 8], strides = [1, 1]} : vector<8x64xf32> to vector<8x8xf32>
      %182 = vector.extract_strided_slice %2 {offsets = [0, 8], sizes = [1, 8], strides = [1, 1]} : vector<1x32xf32> to vector<1x8xf32>
      %183 = vector.broadcast %182 : vector<1x8xf32> to vector<8x8xf32>
      %184 = arith.addf %181, %183 : vector<8x8xf32>
      %185 = arith.truncf %184 : vector<8x8xf32> to vector<8x8xbf16>
      %c1_79 = arith.constant 1 : index
      %c0_80 = arith.constant 0 : index
      %c0_81 = arith.constant 0 : index
      %186 = vector.load %arg12[%c1_79, %c0_80, %c0_81] : memref<4x8x8xbf16, #tpu.memory_space<vmem>>, vector<1x8x8xbf16>
      %187 = vector.shape_cast %186 : vector<1x8x8xbf16> to vector<8x8xbf16>
      %188 = vector.shape_cast %185 : vector<8x8xbf16> to vector<1x8x8xbf16>
      tpu.vector_store %arg12[%c1_79, %c0_80, %c0_81], %188 {strides = array<i32>} : memref<4x8x8xbf16, #tpu.memory_space<vmem>>, vector<1x8x8xbf16>,
      %189 = vector.extract_strided_slice %164 {offsets = [0, 40], sizes = [8, 8], strides = [1, 1]} : vector<8x64xf32> to vector<8x8xf32>
      %190 = vector.extract_strided_slice %3 {offsets = [0, 8], sizes = [1, 8], strides = [1, 1]} : vector<1x32xf32> to vector<1x8xf32>
      %191 = vector.broadcast %190 : vector<1x8xf32> to vector<8x8xf32>
      %192 = arith.addf %189, %191 : vector<8x8xf32>
      %193 = arith.truncf %192 : vector<8x8xf32> to vector<8x8xbf16>
      %c1_82 = arith.constant 1 : index
      %c0_83 = arith.constant 0 : index
      %c0_84 = arith.constant 0 : index
      %194 = vector.load %arg13[%c1_82, %c0_83, %c0_84] : memref<4x8x8xbf16, #tpu.memory_space<vmem>>, vector<1x8x8xbf16>
      %195 = vector.shape_cast %194 : vector<1x8x8xbf16> to vector<8x8xbf16>
      %196 = vector.shape_cast %193 : vector<8x8xbf16> to vector<1x8x8xbf16>
      tpu.vector_store %arg13[%c1_82, %c0_83, %c0_84], %196 {strides = array<i32>} : memref<4x8x8xbf16, #tpu.memory_space<vmem>>, vector<1x8x8xbf16>,
      %197 = vector.extract_strided_slice %164 {offsets = [0, 16], sizes = [8, 8], strides = [1, 1]} : vector<8x64xf32> to vector<8x8xf32>
      %198 = vector.extract_strided_slice %2 {offsets = [0, 16], sizes = [1, 8], strides = [1, 1]} : vector<1x32xf32> to vector<1x8xf32>
      %199 = vector.broadcast %198 : vector<1x8xf32> to vector<8x8xf32>
      %200 = arith.addf %197, %199 : vector<8x8xf32>
      %201 = arith.truncf %200 : vector<8x8xf32> to vector<8x8xbf16>
      %c2_85 = arith.constant 2 : index
      %c0_86 = arith.constant 0 : index
      %c0_87 = arith.constant 0 : index
      %202 = vector.load %arg12[%c2_85, %c0_86, %c0_87] : memref<4x8x8xbf16, #tpu.memory_space<vmem>>, vector<1x8x8xbf16>
      %203 = vector.shape_cast %202 : vector<1x8x8xbf16> to vector<8x8xbf16>
      %204 = vector.shape_cast %201 : vector<8x8xbf16> to vector<1x8x8xbf16>
      tpu.vector_store %arg12[%c2_85, %c0_86, %c0_87], %204 {strides = array<i32>} : memref<4x8x8xbf16, #tpu.memory_space<vmem>>, vector<1x8x8xbf16>,
      %205 = vector.extract_strided_slice %164 {offsets = [0, 48], sizes = [8, 8], strides = [1, 1]} : vector<8x64xf32> to vector<8x8xf32>
      %206 = vector.extract_strided_slice %3 {offsets = [0, 16], sizes = [1, 8], strides = [1, 1]} : vector<1x32xf32> to vector<1x8xf32>
      %207 = vector.broadcast %206 : vector<1x8xf32> to vector<8x8xf32>
      %208 = arith.addf %205, %207 : vector<8x8xf32>
      %209 = arith.truncf %208 : vector<8x8xf32> to vector<8x8xbf16>
      %c2_88 = arith.constant 2 : index
      %c0_89 = arith.constant 0 : index
      %c0_90 = arith.constant 0 : index
      %210 = vector.load %arg13[%c2_88, %c0_89, %c0_90] : memref<4x8x8xbf16, #tpu.memory_space<vmem>>, vector<1x8x8xbf16>
      %211 = vector.shape_cast %210 : vector<1x8x8xbf16> to vector<8x8xbf16>
      %212 = vector.shape_cast %209 : vector<8x8xbf16> to vector<1x8x8xbf16>
      tpu.vector_store %arg13[%c2_88, %c0_89, %c0_90], %212 {strides = array<i32>} : memref<4x8x8xbf16, #tpu.memory_space<vmem>>, vector<1x8x8xbf16>,
      %213 = vector.extract_strided_slice %164 {offsets = [0, 24], sizes = [8, 8], strides = [1, 1]} : vector<8x64xf32> to vector<8x8xf32>
      %214 = vector.extract_strided_slice %2 {offsets = [0, 24], sizes = [1, 8], strides = [1, 1]} : vector<1x32xf32> to vector<1x8xf32>
      %215 = vector.broadcast %214 : vector<1x8xf32> to vector<8x8xf32>
      %216 = arith.addf %213, %215 : vector<8x8xf32>
      %217 = arith.truncf %216 : vector<8x8xf32> to vector<8x8xbf16>
      %c3_91 = arith.constant 3 : index
      %c0_92 = arith.constant 0 : index
      %c0_93 = arith.constant 0 : index
      %218 = vector.load %arg12[%c3_91, %c0_92, %c0_93] : memref<4x8x8xbf16, #tpu.memory_space<vmem>>, vector<1x8x8xbf16>
      %219 = vector.shape_cast %218 : vector<1x8x8xbf16> to vector<8x8xbf16>
      %220 = vector.shape_cast %217 : vector<8x8xbf16> to vector<1x8x8xbf16>
      tpu.vector_store %arg12[%c3_91, %c0_92, %c0_93], %220 {strides = array<i32>} : memref<4x8x8xbf16, #tpu.memory_space<vmem>>, vector<1x8x8xbf16>,
      %221 = vector.extract_strided_slice %164 {offsets = [0, 56], sizes = [8, 8], strides = [1, 1]} : vector<8x64xf32> to vector<8x8xf32>
      %222 = vector.extract_strided_slice %3 {offsets = [0, 24], sizes = [1, 8], strides = [1, 1]} : vector<1x32xf32> to vector<1x8xf32>
      %223 = vector.broadcast %222 : vector<1x8xf32> to vector<8x8xf32>
      %224 = arith.addf %221, %223 : vector<8x8xf32>
      %225 = arith.truncf %224 : vector<8x8xf32> to vector<8x8xbf16>
      %c3_94 = arith.constant 3 : index
      %c0_95 = arith.constant 0 : index
      %c0_96 = arith.constant 0 : index
      %226 = vector.load %arg13[%c3_94, %c0_95, %c0_96] : memref<4x8x8xbf16, #tpu.memory_space<vmem>>, vector<1x8x8xbf16>
      %227 = vector.shape_cast %226 : vector<1x8x8xbf16> to vector<8x8xbf16>
      %228 = vector.shape_cast %225 : vector<8x8xbf16> to vector<1x8x8xbf16>
      tpu.vector_store %arg13[%c3_94, %c0_95, %c0_96], %228 {strides = array<i32>} : memref<4x8x8xbf16, #tpu.memory_space<vmem>>, vector<1x8x8xbf16>,
    } else {
    }
    %c0_2 = arith.constant 0 : index
    %c0_3 = arith.constant 0 : index
    %c0_4 = arith.constant 0 : index
    %13 = vector.load %arg3[%c0_2, %c0_3, %c0_4] : memref<1x8x32xf32, #tpu.memory_space<vmem>>, vector<1x8x32xf32>
    %14 = vector.shape_cast %13 : vector<1x8x32xf32> to vector<8x32xf32>
    %15 = arith.truncf %14 : vector<8x32xf32> to vector<8x32xbf16>
    %c0_5 = arith.constant 0 : index
    %c0_6 = arith.constant 0 : index
    %16 = vector.load %arg4[%c0_5, %c0_6] : memref<32x32xbf16, #tpu.memory_space<vmem>>, vector<32x32xbf16>
    %cst = arith.constant dense<0.000000e+00> : vector<8x32xf32>
    %17 = tpu.matmul %15, %16, %cst {dimension_numbers = #tpu.dot_dimension_numbers<[1], [0], [0], [1], [0, 0, 1, 1], [], []>} : vector<8x32xbf16>, vector<32x32xbf16>, vector<8x32xf32> -> vector<8x32xf32>
    %18 = vector.broadcast %1 : vector<1x32xf32> to vector<8x32xf32>
    %19 = arith.addf %17, %18 : vector<8x32xf32>
    %20 = vector.extract_strided_slice %19 {offsets = [0, 0], sizes = [8, 8], strides = [1, 1]} : vector<8x32xf32> to vector<8x8xf32>
    %21 = arith.truncf %20 : vector<8x8xf32> to vector<8x8xbf16>
    %c0_7 = arith.constant 0 : index
    %c0_8 = arith.constant 0 : index
    %c0_9 = arith.constant 0 : index
    %22 = vector.load %arg14[%c0_7, %c0_8, %c0_9] : memref<4x8x8xbf16, #tpu.memory_space<vmem>>, vector<1x8x8xbf16>
    %23 = vector.shape_cast %22 : vector<1x8x8xbf16> to vector<8x8xbf16>
    %24 = vector.shape_cast %21 : vector<8x8xbf16> to vector<1x8x8xbf16>
    tpu.vector_store %arg14[%c0_7, %c0_8, %c0_9], %24 {strides = array<i32>} : memref<4x8x8xbf16, #tpu.memory_space<vmem>>, vector<1x8x8xbf16>,
    %25 = vector.extract_strided_slice %19 {offsets = [0, 8], sizes = [8, 8], strides = [1, 1]} : vector<8x32xf32> to vector<8x8xf32>
    %26 = arith.truncf %25 : vector<8x8xf32> to vector<8x8xbf16>
    %c1 = arith.constant 1 : index
    %c0_10 = arith.constant 0 : index
    %c0_11 = arith.constant 0 : index
    %27 = vector.load %arg14[%c1, %c0_10, %c0_11] : memref<4x8x8xbf16, #tpu.memory_space<vmem>>, vector<1x8x8xbf16>
    %28 = vector.shape_cast %27 : vector<1x8x8xbf16> to vector<8x8xbf16>
    %29 = vector.shape_cast %26 : vector<8x8xbf16> to vector<1x8x8xbf16>
    tpu.vector_store %arg14[%c1, %c0_10, %c0_11], %29 {strides = array<i32>} : memref<4x8x8xbf16, #tpu.memory_space<vmem>>, vector<1x8x8xbf16>,
    %30 = vector.extract_strided_slice %19 {offsets = [0, 16], sizes = [8, 8], strides = [1, 1]} : vector<8x32xf32> to vector<8x8xf32>
    %31 = arith.truncf %30 : vector<8x8xf32> to vector<8x8xbf16>
    %c2 = arith.constant 2 : index
    %c0_12 = arith.constant 0 : index
    %c0_13 = arith.constant 0 : index
    %32 = vector.load %arg14[%c2, %c0_12, %c0_13] : memref<4x8x8xbf16, #tpu.memory_space<vmem>>, vector<1x8x8xbf16>
    %33 = vector.shape_cast %32 : vector<1x8x8xbf16> to vector<8x8xbf16>
    %34 = vector.shape_cast %31 : vector<8x8xbf16> to vector<1x8x8xbf16>
    tpu.vector_store %arg14[%c2, %c0_12, %c0_13], %34 {strides = array<i32>} : memref<4x8x8xbf16, #tpu.memory_space<vmem>>, vector<1x8x8xbf16>,
    %35 = vector.extract_strided_slice %19 {offsets = [0, 24], sizes = [8, 8], strides = [1, 1]} : vector<8x32xf32> to vector<8x8xf32>
    %36 = arith.truncf %35 : vector<8x8xf32> to vector<8x8xbf16>
    %c3 = arith.constant 3 : index
    %c0_14 = arith.constant 0 : index
    %c0_15 = arith.constant 0 : index
    %37 = vector.load %arg14[%c3, %c0_14, %c0_15] : memref<4x8x8xbf16, #tpu.memory_space<vmem>>, vector<1x8x8xbf16>
    %38 = vector.shape_cast %37 : vector<1x8x8xbf16> to vector<8x8xbf16>
    %39 = vector.shape_cast %36 : vector<8x8xbf16> to vector<1x8x8xbf16>
    tpu.vector_store %arg14[%c3, %c0_14, %c0_15], %39 {strides = array<i32>} : memref<4x8x8xbf16, #tpu.memory_space<vmem>>, vector<1x8x8xbf16>,
    %c0_16 = arith.constant 0 : index
    %c0_17 = arith.constant 0 : index
    %c0_18 = arith.constant 0 : index
    %40 = vector.load %arg14[%c0_16, %c0_17, %c0_18] : memref<4x8x8xbf16, #tpu.memory_space<vmem>>, vector<4x8x8xbf16>
    %c0_19 = arith.constant 0 : index
    %c0_20 = arith.constant 0 : index
    %c0_21 = arith.constant 0 : index
    %41 = vector.load %arg12[%c0_19, %c0_20, %c0_21] : memref<4x8x8xbf16, #tpu.memory_space<vmem>>, vector<4x8x8xbf16>
    %c0_22 = arith.constant 0 : index
    %c0_23 = arith.constant 0 : index
    %c0_24 = arith.constant 0 : index
    %42 = vector.load %arg13[%c0_22, %c0_23, %c0_24] : memref<4x8x8xbf16, #tpu.memory_space<vmem>>, vector<4x8x8xbf16>
    "tpu.trace_start"() <{level = 10 : i32, message = "hqd,hkd->hqk"}> : () -> ()
    %cst_25 = arith.constant dense<0.000000e+00> : vector<4x8x8xf32>
    %43 = tpu.matmul %40, %41, %cst_25 {dimension_numbers = #tpu.dot_dimension_numbers<[2], [2], [1], [1], [0, 0, 0, 1, 1, 1], [0], [0]>} : vector<4x8x8xbf16>, vector<4x8x8xbf16>, vector<4x8x8xf32> -> vector<4x8x8xf32>
    "tpu.trace_stop"() : () -> ()
    %cst_26 = arith.constant 0.353553385 : f32
    %44 = vector.broadcast %cst_26 : f32 to vector<4x8x8xf32>
    %45 = arith.mulf %43, %44 : vector<4x8x8xf32>
    %c8_i32 = arith.constant 8 : i32
    %46 = arith.muli %arg1, %c8_i32 : i32
    %47 = tpu.iota {dimensions = array<i32: 0>} : vector<8x8xi32>
    %48 = vector.broadcast %46 : i32 to vector<8x8xi32>
    %49 = arith.addi %48, %47 : vector<8x8xi32>
    %50 = tpu.iota {dimensions = array<i32: 1>} : vector<8x8xi32>
    %51 = arith.cmpi sgt, %50, %49 : vector<8x8xi32>
    %cst_27 = arith.constant -1.000000e+30 : f32
    %cst_28 = arith.constant 0.000000e+00 : f32
    %52 = vector.broadcast %cst_27 : f32 to vector<8x8xf32>
    %53 = vector.broadcast %cst_28 : f32 to vector<8x8xf32>
    %54 = arith.select %51, %52, %53 : vector<8x8xi1>, vector<8x8xf32>
    %55 = vector.shape_cast %54 : vector<8x8xf32> to vector<1x8x8xf32>
    %56 = vector.broadcast %55 : vector<1x8x8xf32> to vector<4x8x8xf32>
    %57 = arith.addf %45, %56 : vector<4x8x8xf32>
    %cst_29 = arith.constant dense<0xFF800000> : vector<4x8xf32>
    %58 = vector.multi_reduction <maximumf>, %57, %cst_29 [2] : vector<4x8x8xf32> to vector<4x8xf32>
    %59 = vector.shape_cast %58 : vector<4x8xf32> to vector<4x8x1xf32>
    %60 = vector.broadcast %59 : vector<4x8x1xf32> to vector<4x8x8xf32>
    %61 = arith.subf %57, %60 : vector<4x8x8xf32>
    %62 = math.exp %61 : vector<4x8x8xf32>
    %cst_30 = arith.constant dense<0.000000e+00> : vector<4x8xf32>
    %63 = vector.multi_reduction <add>, %62, %cst_30 [2] : vector<4x8x8xf32> to vector<4x8xf32>
    %64 = vector.shape_cast %63 : vector<4x8xf32> to vector<4x8x1xf32>
    %65 = tpu.reciprocal %64 {approx = true} : vector<4x8x1xf32> -> vector<4x8x1xf32>
    %66 = vector.broadcast %65 : vector<4x8x1xf32> to vector<4x8x8xf32>
    %67 = arith.mulf %62, %66 : vector<4x8x8xf32>
    %68 = arith.truncf %67 : vector<4x8x8xf32> to vector<4x8x8xbf16>
    "tpu.trace_start"() <{level = 10 : i32, message = "hqk,hkd->hqd"}> : () -> ()
    %cst_31 = arith.constant dense<0.000000e+00> : vector<4x8x8xf32>
    %69 = tpu.matmul %68, %42, %cst_31 {dimension_numbers = #tpu.dot_dimension_numbers<[2], [1], [1], [2], [0, 0, 0, 1, 1, 2], [0], [0]>} : vector<4x8x8xbf16>, vector<4x8x8xbf16>, vector<4x8x8xf32> -> vector<4x8x8xf32>
    "tpu.trace_stop"() : () -> ()
    %70 = vector.extract_strided_slice %69 {offsets = [0, 0, 0], sizes = [1, 8, 8], strides = [1, 1, 1]} : vector<4x8x8xf32> to vector<1x8x8xf32>
    %71 = vector.shape_cast %70 : vector<1x8x8xf32> to vector<8x8xf32>
    %72 = arith.truncf %71 : vector<8x8xf32> to vector<8x8xbf16>
    %c0_32 = arith.constant 0 : index
    %c0_33 = arith.constant 0 : index
    %73 = vector.load %arg15[%c0_32, %c0_33] : memref<8x32xbf16, #tpu.memory_space<vmem>>, vector<8x8xbf16>
    tpu.vector_store %arg15[%c0_32, %c0_33], %72 {strides = array<i32>} : memref<8x32xbf16, #tpu.memory_space<vmem>>, vector<8x8xbf16>,
    %74 = vector.extract_strided_slice %69 {offsets = [1, 0, 0], sizes = [1, 8, 8], strides = [1, 1, 1]} : vector<4x8x8xf32> to vector<1x8x8xf32>
    %75 = vector.shape_cast %74 : vector<1x8x8xf32> to vector<8x8xf32>
    %76 = arith.truncf %75 : vector<8x8xf32> to vector<8x8xbf16>
    %c0_34 = arith.constant 0 : index
    %c8 = arith.constant 8 : index
    %77 = vector.load %arg15[%c0_34, %c8] : memref<8x32xbf16, #tpu.memory_space<vmem>>, vector<8x8xbf16>
    tpu.vector_store %arg15[%c0_34, %c8], %76 {strides = array<i32>} : memref<8x32xbf16, #tpu.memory_space<vmem>>, vector<8x8xbf16>,
    %78 = vector.extract_strided_slice %69 {offsets = [2, 0, 0], sizes = [1, 8, 8], strides = [1, 1, 1]} : vector<4x8x8xf32> to vector<1x8x8xf32>
    %79 = vector.shape_cast %78 : vector<1x8x8xf32> to vector<8x8xf32>
    %80 = arith.truncf %79 : vector<8x8xf32> to vector<8x8xbf16>
    %c0_35 = arith.constant 0 : index
    %c16 = arith.constant 16 : index
    %81 = vector.load %arg15[%c0_35, %c16] : memref<8x32xbf16, #tpu.memory_space<vmem>>, vector<8x8xbf16>
    tpu.vector_store %arg15[%c0_35, %c16], %80 {strides = array<i32>} : memref<8x32xbf16, #tpu.memory_space<vmem>>, vector<8x8xbf16>,
    %82 = vector.extract_strided_slice %69 {offsets = [3, 0, 0], sizes = [1, 8, 8], strides = [1, 1, 1]} : vector<4x8x8xf32> to vector<1x8x8xf32>
    %83 = vector.shape_cast %82 : vector<1x8x8xf32> to vector<8x8xf32>
    %84 = arith.truncf %83 : vector<8x8xf32> to vector<8x8xbf16>
    %c0_36 = arith.constant 0 : index
    %c24 = arith.constant 24 : index
    %85 = vector.load %arg15[%c0_36, %c24] : memref<8x32xbf16, #tpu.memory_space<vmem>>, vector<8x8xbf16>
    tpu.vector_store %arg15[%c0_36, %c24], %84 {strides = array<i32>} : memref<8x32xbf16, #tpu.memory_space<vmem>>, vector<8x8xbf16>,
    %c0_37 = arith.constant 0 : index
    %c0_38 = arith.constant 0 : index
    %86 = vector.load %arg15[%c0_37, %c0_38] : memref<8x32xbf16, #tpu.memory_space<vmem>>, vector<8x32xbf16>
    %c0_39 = arith.constant 0 : index
    %c0_40 = arith.constant 0 : index
    %87 = vector.load %arg6[%c0_39, %c0_40] : memref<32x32xbf16, #tpu.memory_space<vmem>>, vector<32x32xbf16>
    %cst_41 = arith.constant dense<0.000000e+00> : vector<8x32xf32>
    %88 = tpu.matmul %86, %87, %cst_41 {dimension_numbers = #tpu.dot_dimension_numbers<[1], [0], [0], [1], [0, 0, 1, 1], [], []>} : vector<8x32xbf16>, vector<32x32xbf16>, vector<8x32xf32> -> vector<8x32xf32>
    %89 = vector.broadcast %4 : vector<1x32xf32> to vector<8x32xf32>
    %90 = arith.addf %88, %89 : vector<8x32xf32>
    %91 = arith.addf %14, %90 : vector<8x32xf32>
    %cst_42 = arith.constant dense<0.000000e+00> : vector<8xf32>
    %92 = vector.multi_reduction <add>, %91, %cst_42 [1] : vector<8x32xf32> to vector<8xf32>
    %93 = vector.shape_cast %92 : vector<8xf32> to vector<8x1xf32>
    %cst_43 = arith.constant 3.200000e+01 : f32
    %94 = vector.broadcast %cst_43 : f32 to vector<8x1xf32>
    %95 = arith.divf %93, %94 : vector<8x1xf32>
    %96 = vector.broadcast %95 : vector<8x1xf32> to vector<8x32xf32>
    %97 = arith.subf %91, %96 : vector<8x32xf32>
    %98 = arith.mulf %97, %97 : vector<8x32xf32>
    %cst_44 = arith.constant dense<0.000000e+00> : vector<8xf32>
    %99 = vector.multi_reduction <add>, %98, %cst_44 [1] : vector<8x32xf32> to vector<8xf32>
    %100 = vector.shape_cast %99 : vector<8xf32> to vector<8x1xf32>
    %cst_45 = arith.constant 3.200000e+01 : f32
    %101 = vector.broadcast %cst_45 : f32 to vector<8x1xf32>
    %102 = arith.divf %100, %101 : vector<8x1xf32>
    %cst_46 = arith.constant 9.99999974E-6 : f32
    %103 = vector.broadcast %cst_46 : f32 to vector<8x1xf32>
    %104 = arith.addf %102, %103 : vector<8x1xf32>
    %105 = math.rsqrt %104 : vector<8x1xf32>
    %106 = vector.broadcast %105 : vector<8x1xf32> to vector<8x32xf32>
    %107 = arith.mulf %97, %106 : vector<8x32xf32>
    %108 = vector.broadcast %5 : vector<1x32xf32> to vector<8x32xf32>
    %109 = arith.mulf %107, %108 : vector<8x32xf32>
    %110 = vector.broadcast %6 : vector<1x32xf32> to vector<8x32xf32>
    %111 = arith.addf %109, %110 : vector<8x32xf32>
    %112 = arith.truncf %111 : vector<8x32xf32> to vector<8x32xbf16>
    %c0_47 = arith.constant 0 : index
    %c0_48 = arith.constant 0 : index
    %113 = vector.load %arg7[%c0_47, %c0_48] : memref<32x64xbf16, #tpu.memory_space<vmem>>, vector<32x64xbf16>
    %cst_49 = arith.constant dense<0.000000e+00> : vector<8x64xf32>
    %114 = tpu.matmul %112, %113, %cst_49 {dimension_numbers = #tpu.dot_dimension_numbers<[1], [0], [0], [1], [0, 0, 1, 1], [], []>} : vector<8x32xbf16>, vector<32x64xbf16>, vector<8x64xf32> -> vector<8x64xf32>
    %c0_50 = arith.constant 0 : index
    %c0_51 = arith.constant 0 : index
    %115 = vector.load %arg10[%c0_50, %c0_51] : memref<1x64xf32, #tpu.memory_space<vmem>>, vector<1x64xf32>
    %116 = vector.broadcast %115 : vector<1x64xf32> to vector<8x64xf32>
    %117 = arith.addf %114, %116 : vector<8x64xf32>
    %cst_52 = arith.constant 5.000000e-01 : f32
    %118 = vector.broadcast %cst_52 : f32 to vector<8x64xf32>
    %119 = arith.mulf %118, %117 : vector<8x64xf32>
    %120 = arith.mulf %117, %117 : vector<8x64xf32>
    %121 = arith.mulf %120, %117 : vector<8x64xf32>
    %cst_53 = arith.constant 4.471500e-02 : f32
    %122 = vector.broadcast %cst_53 : f32 to vector<8x64xf32>
    %123 = arith.mulf %122, %121 : vector<8x64xf32>
    %124 = arith.addf %117, %123 : vector<8x64xf32>
    %cst_54 = arith.constant 0.797884583 : f32
    %125 = vector.broadcast %cst_54 : f32 to vector<8x64xf32>
    %126 = arith.mulf %125, %124 : vector<8x64xf32>
    %127 = math.tanh %126 : vector<8x64xf32>
    %cst_55 = arith.constant 1.000000e+00 : f32
    %128 = vector.broadcast %cst_55 : f32 to vector<8x64xf32>
    %129 = arith.addf %128, %127 : vector<8x64xf32>
    %130 = arith.mulf %119, %129 : vector<8x64xf32>
    %131 = arith.truncf %130 : vector<8x64xf32> to vector<8x64xbf16>
    %c0_56 = arith.constant 0 : index
    %c0_57 = arith.constant 0 : index
    %132 = vector.load %arg8[%c0_56, %c0_57] : memref<64x32xbf16, #tpu.memory_space<vmem>>, vector<64x32xbf16>
    %cst_58 = arith.constant dense<0.000000e+00> : vector<8x32xf32>
    %133 = tpu.matmul %131, %132, %cst_58 {dimension_numbers = #tpu.dot_dimension_numbers<[1], [0], [0], [1], [0, 0, 1, 1], [], []>} : vector<8x64xbf16>, vector<64x32xbf16>, vector<8x32xf32> -> vector<8x32xf32>
    %134 = vector.broadcast %7 : vector<1x32xf32> to vector<8x32xf32>
    %135 = arith.addf %133, %134 : vector<8x32xf32>
    %136 = arith.addf %111, %135 : vector<8x32xf32>
    %cst_59 = arith.constant dense<0.000000e+00> : vector<8xf32>
    %137 = vector.multi_reduction <add>, %136, %cst_59 [1] : vector<8x32xf32> to vector<8xf32>
    %138 = vector.shape_cast %137 : vector<8xf32> to vector<8x1xf32>
    %cst_60 = arith.constant 3.200000e+01 : f32
    %139 = vector.broadcast %cst_60 : f32 to vector<8x1xf32>
    %140 = arith.divf %138, %139 : vector<8x1xf32>
    %141 = vector.broadcast %140 : vector<8x1xf32> to vector<8x32xf32>
    %142 = arith.subf %136, %141 : vector<8x32xf32>
    %143 = arith.mulf %142, %142 : vector<8x32xf32>
    %cst_61 = arith.constant dense<0.000000e+00> : vector<8xf32>
    %144 = vector.multi_reduction <add>, %143, %cst_61 [1] : vector<8x32xf32> to vector<8xf32>
    %145 = vector.shape_cast %144 : vector<8xf32> to vector<8x1xf32>
    %cst_62 = arith.constant 3.200000e+01 : f32
    %146 = vector.broadcast %cst_62 : f32 to vector<8x1xf32>
    %147 = arith.divf %145, %146 : vector<8x1xf32>
    %cst_63 = arith.constant 9.99999974E-6 : f32
    %148 = vector.broadcast %cst_63 : f32 to vector<8x1xf32>
    %149 = arith.addf %147, %148 : vector<8x1xf32>
    %150 = math.rsqrt %149 : vector<8x1xf32>
    %151 = vector.broadcast %150 : vector<8x1xf32> to vector<8x32xf32>
    %152 = arith.mulf %142, %151 : vector<8x32xf32>
    %153 = vector.broadcast %8 : vector<1x32xf32> to vector<8x32xf32>
    %154 = arith.mulf %152, %153 : vector<8x32xf32>
    %155 = vector.broadcast %9 : vector<1x32xf32> to vector<8x32xf32>
    %156 = arith.addf %154, %155 : vector<8x32xf32>
    %c0_64 = arith.constant 0 : index
    %c0_65 = arith.constant 0 : index
    %c0_66 = arith.constant 0 : index
    %157 = vector.load %arg11[%c0_64, %c0_65, %c0_66] : memref<1x8x32xf32, #tpu.memory_space<vmem>>, vector<1x8x32xf32>
    %158 = vector.shape_cast %157 : vector<1x8x32xf32> to vector<8x32xf32>
    %159 = vector.shape_cast %156 : vector<8x32xf32> to vector<1x8x32xf32>
    tpu.vector_store %arg11[%c0_64, %c0_65, %c0_66], %159 {strides = array<i32>} : memref<1x8x32xf32, #tpu.memory_space<vmem>>, vector<1x8x32xf32>,
    return
  }
  func.func @transform_0(%arg0: i32, %arg1: i32) -> (i32, i32, i32) {
    %c0_i32 = arith.constant 0 : i32
    %c0_i32_0 = arith.constant 0 : i32
    %c0_i32_1 = arith.constant 0 : i32
    return %arg0, %c0_i32, %c0_i32_0 : i32, i32, i32
  }
  func.func @transform_1(%arg0: i32, %arg1: i32) -> (i32, i32, i32) {
    %c0_i32 = arith.constant 0 : i32
    %c0_i32_0 = arith.constant 0 : i32
    return %arg0, %arg1, %c0_i32 : i32, i32, i32
  }
  func.func @transform_2(%arg0: i32, %arg1: i32) -> (i32, i32) {
    %c0_i32 = arith.constant 0 : i32
    %c0_i32_0 = arith.constant 0 : i32
    %c0_i32_1 = arith.constant 0 : i32
    return %c0_i32, %c0_i32_0 : i32, i32
  }
  func.func @transform_3(%arg0: i32, %arg1: i32) -> (i32, i32) {
    %c0_i32 = arith.constant 0 : i32
    %c0_i32_0 = arith.constant 0 : i32
    %c0_i32_1 = arith.constant 0 : i32
    return %c0_i32, %c0_i32_0 : i32, i32
  }
  func.func @transform_4(%arg0: i32, %arg1: i32) -> (i32, i32) {
    %c0_i32 = arith.constant 0 : i32
    %c0_i32_0 = arith.constant 0 : i32
    %c0_i32_1 = arith.constant 0 : i32
    return %c0_i32, %c0_i32_0 : i32, i32
  }
  func.func @transform_5(%arg0: i32, %arg1: i32) -> (i32, i32) {
    %c0_i32 = arith.constant 0 : i32
    %c0_i32_0 = arith.constant 0 : i32
    %c0_i32_1 = arith.constant 0 : i32
    return %c0_i32, %c0_i32_0 : i32, i32
  }
  func.func @transform_6(%arg0: i32, %arg1: i32) -> (i32, i32) {
    %c0_i32 = arith.constant 0 : i32
    %c0_i32_0 = arith.constant 0 : i32
    %c0_i32_1 = arith.constant 0 : i32
    return %c0_i32, %c0_i32_0 : i32, i32
  }
  func.func @transform_7(%arg0: i32, %arg1: i32) -> (i32, i32) {
    %c0_i32 = arith.constant 0 : i32
    %c0_i32_0 = arith.constant 0 : i32
    %c0_i32_1 = arith.constant 0 : i32
    return %c0_i32, %c0_i32_0 : i32, i32
  }
  func.func @transform_8(%arg0: i32, %arg1: i32) -> (i32, i32) {
    %c0_i32 = arith.constant 0 : i32
    %c0_i32_0 = arith.constant 0 : i32
    %c0_i32_1 = arith.constant 0 : i32
    return %c0_i32, %c0_i32_0 : i32, i32
  }
  func.func @transform_9(%arg0: i32, %arg1: i32) -> (i32, i32, i32) {
    %c0_i32 = arith.constant 0 : i32
    %c0_i32_0 = arith.constant 0 : i32
    return %arg0, %arg1, %c0_i32 : i32, i32, i32
  }
}

</mosaic_0001>

<bundles_post_ra>
// kernel: tpu_custom_call.1
= control target key start
LH: loop header
LB: loop body
LE: loop exit
PB: predicated region body
PF: predicated region fallthrough
CT: control target
= control target key end

     0   :  { %s2447_s0 = inlined_call_operand.vmem [shape: f32[2,8,32], index: 0, kind: input, shape index: {}]   ;;  %s2448_s1 = inlined_call_operand.vmem [shape: f32[2,8,32], index: 1, kind: input, shape index: {}]   ;;  %s2449_s2 = inlined_call_operand.vmem [shape: bf16[32,32], index: 2, kind: input, shape index: {}]   ;;  %s2450_s3 = inlined_call_operand.hbm [shape: bf16[32,64], index: 3, kind: input, shape index: {}]   ;;  %s2451_s4 = inlined_call_operand.hbm [shape: bf16[32,32], index: 4, kind: input, shape index: {}]   ;;  %s2452_s5 = inlined_call_operand.hbm [shape: bf16[32,64], index: 5, kind: input, shape index: {}]   ;;  %s2453_s6 = inlined_call_operand.vmem [shape: bf16[64,32], index: 6, kind: input, shape index: {}]   ;;  %s2454_s7 = inlined_call_operand.hbm [shape: f32[9,32], index: 7, kind: input, shape index: {}]   ;;  %s2455_s8 = inlined_call_operand.vmem [shape: f32[1,64], index: 8, kind: input, shape index: {}]   ;;  %s2456_s9 = inlined_call_operand.hbm [shape: f32[2,8,32], index: 9, kind: output, shape index: {}]  }
   0x1   :  { %2459 = sst [smem:[#allocation21_spill]] %s2451_s4 }
   0x2   :  { %14 = vsyncpa [#allocation7], 0 }
   0x3   :  { %15 = vsyncpa [#allocation10], 0 }
   0x4   :  { %16 = vsyncpa [#allocation13], 0 }
   0x5   :  { %17 = vsyncpa [#allocation8], 0 }
   0x6   :  { %19 = vsyncpa [#allocation8 + $0x1], 0  ;;  %s2126_s30 = smov 0   ;;  %s2128_s10 = smov 0  }
   0x7   :  { %s2130_s11 = smov 0   ;;  %s2132_s12 = smov 0  }
   0x8   :  { %s2134_s13 = smov 0   ;;  %s2136_s14 = smov 0  }
   0x9 LB: > { %2460 = sst [smem:[#allocation19_spill]] %s2048_s13  ;;  %s1529_s15 = sadd.s32 4294967295, %s2052_s14   ;;  %s2052_s14 = sphi %s2136_s14, %s25_s14   ;;  %s2048_s13 = sphi %s2134_s13, %s2469_s13   ;;  %s2044_s12 = sphi %s2132_s12, %s2468_s12   ;;  %s2040_s11 = sphi %s2130_s11, %s2472_s11   ;;  %s2036_s10 = sphi %s2128_s10, %s2471_s10   ;;  %s2032_s30 = sphi %s2126_s30, %s2470_s30  }
   0xa   : > { %s1530_s16 = sadd.s32 4294967294, %s2052_s14   ;;  %s37_s17 = sadd.s32 1, %s2048_s13 }
   0xb   : > { %s247_s18 = sadd.s32 1, %s2040_s11  ;;  %p39_p0 = scmp.ge.s32.totalorder %s37_s17, 2 }
   0xc   : > { %p257_p1 = scmp.ne.s32.totalorder %s2040_s11, %s2036_s10  ;;  %p258_p2 = scmp.eq.s32.totalorder %s1529_s15, 1 }
   0xd   : > { %p263_p3 = scmp.ne.s32.totalorder %s2036_s10, %s2032_s30  ;;  %s2474_s17 = smov (%p39_p0, %s37_s17), 0 }
   0xe   : > { %2461 = sst [smem:[#allocation20_spill]] %s2474_s17  ;;  %p2166_p4 = por %p258_p2, %p257_p1 }
   0xf   : > { %p264_p5 = scmp.eq.s32.totalorder %s1530_s16, 1  ;;  %s242_s20 = ssub.s32 %s2048_s13, %s2474_s17 }
  0x10   : > { %p1531_p6 = scmp.ge.s32.totalorder %s2052_s14, 1  ;;  %p245_p7 = scmp.eq.s32.totalorder %s242_s20, 0 }
  0x11   : > { %p2173_p8 = por %p264_p5, %p263_p3  ;;  %p271_p9 = scmp.lt.s32.totalorder %s2052_s14, 3 }
  0x12   : > { %s2179_s22 = scalar_select %p245_p7, %s2040_s11, %s247_s18  }
  0x13   : > { %p2181_p10 = pnand %p1531_p6, %p271_p9  ;;  %p2185_p11 = scmp.eq.s32.totalorder %s1529_s15, 0 }
  0x14   : > { %s2054_s25 = smov [#allocation9]   ;;  %s2055_s28 = smov [#allocation6]  }
  0x15   : > { %p1731_p12 = pneg %p2181_p10  ;;  %s299_s26 = sshll.u32 %s2054_s25, 4  ;;  %s300_s26 = int_to_ptr.vmem [resolvable:$true] %s299_s26 }
  0x16   : > { %s286_s29 = sshll.u32 %s2055_s28, 4  ;;  %s1871_s15 = scalar_lea.vmem %s300_s26, 256  ;;  %s287_s29 = int_to_ptr.vmem [resolvable:$true] %s286_s29 }
  0x17   : > { %p2193_p13 = pnand %p2185_p11, %p1731_p12  ;;  %p1872_p1 = scmp.ne.s32.totalorder %s300_s26, %s1871_s15 }
  0x18   : > { %p1879_p5 = scmp.lt.s32.totalorder %s300_s26, %s300_s26  ;;  %p1880_p6 = scmp.lt.s32.totalorder %s1871_s15, %s1871_s15 }
  0x19   : > { %p1862_p0 = pneg %p2193_p13 }
  0x1a   : > { %p1881_p7 = por %p1880_p6, %p1879_p5 }
  0x1b   : > { %p1874_p2 = pnand %p1872_p1, %p1862_p0 }
  0x1d   : > { %p1875_p3 = pneg %p1874_p2 }
  0x1f   : > { %p1882_p9 = pnand %p1881_p7, %p1875_p3 }
  0x21   : > { %1885 = shalt.err (!%p1882_p9)
}
  0x22   : > { %s2056_s16 = smov 64   ;;  %s2057_s18 = smov 4  }
  0x23   : > { %s2467_s4 = sld [smem:[#allocation21_spill]]  ;;  %s1897_s28 = scalar_lea.vmem %s287_s29, 256 }
  0x24   : > { %p1898_p12 = scmp.ne.s32.totalorder %s287_s29, %s1897_s28  ;;  %p1905_p3 = scmp.lt.s32.totalorder %s287_s29, %s287_s29 }
  0x25   : > { %p1906_p5 = scmp.lt.s32.totalorder %s1897_s28, %s1897_s28 }
  0x26   : > { %p1900_p1 = pnand %p1898_p12, %p1862_p0 }
  0x27   : > { %p1907_p6 = por %p1906_p5, %p1905_p3 }
  0x28   : > { %p1901_p2 = pneg %p1900_p1 }
  0x29   : > { %1737 = dma.hbm_to_vmem [thread:$0]  (!%p2193_p13), %s2467_s4, 256, %s300_s26, [#allocation10], %s2056_s16, %s2056_s16, %s2057_s18  }
  0x2a   : > { %p1908_p7 = pnand %p1907_p6, %p1901_p2 }
  0x2c   : > { %1911 = shalt.err (!%p1908_p7)
}
  0x2d   : > { %1734 = dma.hbm_to_vmem [thread:$0]  (!%p2193_p13), %s2450_s3, 256, %s287_s29, [#allocation7], %s2056_s16, %s2056_s16, %s2057_s18  }
  0x2e   : > { %s2058_s26 = smov [#allocation11]   ;;  %s2059_s4 = smov [#allocation12]  }
  0x2f   : > { %s312_s25 = sshll.u32 %s2058_s26, 4  ;;  %s328_s17 = sshll.u32 %s2059_s4, 4  ;;  %s313_s25 = int_to_ptr.vmem [resolvable:$true] %s312_s25  ;;  %s329_s17 = int_to_ptr.vmem [resolvable:$true] %s328_s17 }
  0x30   : > { %s1923_s13 = scalar_lea.vmem %s313_s25, 256  ;;  %p1931_p2 = scmp.lt.s32.totalorder %s313_s25, %s313_s25 }
  0x31   : > { %p1924_p9 = scmp.ne.s32.totalorder %s313_s25, %s1923_s13  ;;  %p1932_p3 = scmp.lt.s32.totalorder %s1923_s13, %s1923_s13 }
  0x33   : > { %p1926_p12 = pnand %p1924_p9, %p1862_p0  ;;  %p1933_p5 = por %p1932_p3, %p1931_p2 }
  0x35   : > { %p1927_p1 = pneg %p1926_p12 }
  0x37   : > { %p1934_p6 = pnand %p1933_p5, %p1927_p1 }
  0x39   : > { %1937 = shalt.err (!%p1934_p6)
}
  0x3a   : > { %1740 = dma.hbm_to_vmem [thread:$0]  (!%p2193_p13), %s2452_s5, 256, %s313_s25, [#allocation10], %s2056_s16, %s2056_s16, %s2057_s18  }
  0x3b   : > { %s1949_s4 = scalar_lea.vmem %s329_s17, 256  ;;  %p1957_p2 = scmp.lt.s32.totalorder %s329_s17, %s329_s17 }
  0x3c   : > { %p1950_p7 = scmp.ne.s32.totalorder %s329_s17, %s1949_s4  ;;  %p1958_p1 = scmp.lt.s32.totalorder %s1949_s4, %s1949_s4 }
  0x3e   : > { %p1952_p9 = pnand %p1950_p7, %p1862_p0  ;;  %p1959_p3 = por %p1958_p1, %p1957_p2 }
  0x40   : > { %p1953_p12 = pneg %p1952_p9 }
  0x42   : > { %p1960_p5 = pnand %p1959_p3, %p1953_p12 }
  0x44   : > { %1963 = shalt.err (!%p1960_p5)
}
  0x45   : > { %s2060_s13 = smov 128   ;;  %s2061_s15 = smov 8  }
  0x46   : > { %1743 = dma.hbm_to_vmem [thread:$0]  (!%p2193_p13), %s2454_s7, 256, %s329_s17, [#allocation13], %s2060_s13, %s2060_s13, %s2061_s15  }
  0x47   : > { %364 = sbr.rel (%p2181_p10) target bundleno = 2512 (0x9d0), region = 56 }
  0x4c   : > { %2015 = dma.done.wait (%p2185_p11), [#allocation7], 256  }
  0x4d   : > { %2017 = vsyncadd (%p2185_p11), [#allocation7], 4294967040 }
  0x4e   : > { %2019 = dma.done.wait (%p2185_p11), [#allocation10], 512  }
  0x4f   : > { %2021 = vsyncadd (%p2185_p11), [#allocation10], 4294966784 }
  0x50   : > { %2023 = dma.done.wait (%p2185_p11), [#allocation13], 256  }
  0x51   : > { %2025 = vsyncadd (%p2185_p11), [#allocation13], 4294967040  ;;  %p418_p10 = scmp.lt.s32.totalorder %s2044_s12, 1  ;;  %v2062_v0 = vmov 0.0   ;;  %vm2063_vm0 = vmmov 0   ;;  %v1826_v1 = vld [vmem:[#allocation6 + $0x8] sm:$0xff]   ;;  %v498_v9 = vlaneseq }
  0x52   : > { %1621 = vmatprep.subr.bf16.mxu1 %v2062_v0  ;;  %1625 = vmatprep.mubr.msk.bf16.mxu1 %vm2063_vm0, %v2062_v0  ;;  %v1827_v2 = vld [vmem:[#allocation6] sm:$0xff]   ;;  %vm454_vm1 = vcmask 261120   ;;  %v1828_v4 = vld [vmem:[%s2449_s2 + $0x8] sm:$0xff]   ;;  %v1829_v7 = vld [vmem:[%s2449_s2] sm:$0xff]   ;;  %vm504_vm2 = vcmask 60416   ;;  %s2064_s20 = smov 104  }
  0x53   : > { %s419_s17 = scalar_select %p418_p10, %s2044_s12, 1  ;;  %1637 = vmatprep.subr.bf16.mxu0 %v2062_v0  ;;  %1639 = vmatprep.mubr.msk.bf16.mxu0 %vm2063_vm0, %v2062_v0  ;;  %v2289_v10 = vshrl.u32 %v498_v9, 7  ;;  %v2292_v12 = vld [vmem:[#allocation12] sm:$0xff]  ;;  %vm655_vm3 = vcmask 64512   ;;  %v850_v46 = vand.u32 127, %v498_v9  ;;  %vm908_vm5 = vcmask 1043456  }
  0x54   : > { %1622 = vmatpush3.bf16.msra.mxu1 %v1826_v1  ;;  %s2065_s26 = smov 120   ;;  %s2068_s27 = smov 96   ;;  %vm1099_vm6 = vcmask 126016   ;;  %vm1108_vm7 = vcmask 191616   ;;  %vm1117_vm8 = vcmask 257216   ;;  %vm1321_vm9 = vcmask 523264  }
  0x55   : > { %s1543_s23 = sshll.u32 %s419_s17, 3  ;;  %1623 = vmatprep.subr.bf16.mxu1 %v2062_v0  ;;  %v500_v11 = vsub.s32 1, %v2289_v10  ;;  %v564_v16 = vsub.s32 0, %v2289_v10  ;;  %s2066_s17 = smov 112   ;;  %vm851_vm4 = vcmp.gt.s32.totalorder %v850_v46, %v2289_v10 }
  0x56   : > { %s421_s16 = scalar_lea.vmem %s2447_s0, %s1543_s23  ;;  %s428_s4 = scalar_lea.vmem %s2448_s1, %s1543_s23  ;;  %v852_v48 = vsel %vm851_vm4, -1e+30, %v2062_v0 }
  0x57   : > { %v436_v3 = vld [vmem:[%s421_s16] sm:$0xff]  ;;  %v501_v13 = vrot.slane %v2292_v12, %v500_v11  ;;  %v565_v20 = vrot.slane %v2292_v12, %v564_v16  ;;  %s2067_s23 = smov 32   ;;  %s2069_s24 = smov 80  }
  0x58   : > { %v437_v5 = vpack.c.bf16 %v436_v3, %v436_v3  ;;  %1624 = vmatpush3.bf16.msra.mxu1 %v1827_v2  ;;  %v2274_v6 = vld [vmem:[%s428_s4] sm:$0xff]  ;;  %s2070_s16 = smov 72   ;;  %s2071_s18 = smov 88  }
  0x59   : > { %1629 = vmatprep.subr.bf16.mxu1 %v2062_v0  ;;  %v557_v8 = vpack.c.bf16 %v2274_v6, %v2274_v6  ;;  %s2072_s25 = smov 8   ;;  %s2073_s29 = smov 16  }
  0x5a   : > { %s2074_s28 = smov 24  }
  0x5b   : > { %1626 = vmatmul.mubr.msk.bf16.vlgmr.msra.gmra.mxu1 %vm454_vm1, %v437_v5 }
  0x5c   : > { %1630 = vmatpush3.bf16.msra.mxu1 %v1828_v4  ;;  %1633 = vmatprep.mubr.msk.bf16.mxu1 %vm2063_vm0, %v2062_v0 }
  0x5d   : > { %1631 = vmatprep.subr.bf16.mxu1 %v2062_v0 }
  0x60   : > { %1632 = vmatpush3.bf16.msra.mxu1 %v1829_v7 }
  0x61   : > { %1643 = vmatprep.subr.bf16.mxu1 %v2062_v0 }
  0x63   : > { %1634 = vmatmul.mubr.msk.bf16.vlgmr.msra.gmra.mxu1 %vm454_vm1, %v557_v8 }
  0x64   : > { %1645 = vmatprep.mubr.msk.bf16.mxu1 %vm2063_vm0, %v2062_v0 }
 0x11b   : > { %v2295_v14 = vpop.f32.mrf.mxu1 }
 0x11c   : > { %v502_v15 = vadd.f32 %v501_v13, %v2295_v14 }
 0x11d   : > { %v1627_v17 = vpop.f32.mrf.mxu1 }
 0x11e   : > { %v503_v18 = vpack.c.bf16 %v502_v15, %v502_v15  ;;  %v508_v17 = vsub.s32 2, %v2289_v10 }
 0x11f   : > { %v495_v19 = vpop.f32.mrf.mxu1 }
 0x120   : > { %505 = vst.msk [vmem:[#allocation2] sm:$0xf] %vm504_vm2, %v503_v18  ;;  %546 = vrot.lane.b32.xlu1 %v503_v18, %s2064_s20  ;;  %526 = vrot.lane.b32.xlu0 %v503_v18, %s2065_s26 }
 0x121   : > { %v1628_v21 = vpop.f32.mrf.mxu1 }
 0x123   : > { %v616_v22 = vpop.f32.mrf.mxu1 }
 0x124   : > { %v617_v23 = vadd.f32 %v616_v22, %v565_v20  ;;  %536 = vrot.lane.b32.xlu0 %v503_v18, %s2066_s17  ;;  %v509_v18 = vrot.slane %v2292_v12, %v508_v17  ;;  %v1831_v17 = vld [vmem:[#allocation9] sm:$0xff]  }
 0x125   : > { %v1635_v24 = vpop.f32.mrf.mxu1 }
 0x126   : > { %v622_v25 = vpack.c.bf16 %v617_v23, %v617_v23 }
 0x127   : > { %v619_v26 = vpop.f32.mrf.mxu1  ;;  %v647_v27 = vld [vmem:[#allocation2] sm:$0xf] }
 0x128   : > { %624 = vst.msk [vmem:[#allocation4] sm:$0xf] %vm504_vm2, %v622_v25  ;;  %628 = vrot.lane.b32.xlu1 %v622_v25, %s2065_s26  ;;  %633 = vrot.lane.b32.xlu0 %v622_v25, %s2066_s17  ;;  %v660_v28 = vsel %vm655_vm3, %v647_v27, 0 }
 0x129   : > { %v1636_v29 = vpop.f32.mrf.mxu1  ;;  %1638 = vmatpush3.bf16.xpose.msra.mxu0 %v660_v28 }
 0x12a   : > { %1649 = vmatprep.subr.bf16.mxu0 %v2062_v0 }
 0x12c   : > { %638 = vrot.lane.b32.xlu1 %v622_v25, %s2064_s20 }
 0x12f   : > { %v643_v30 = vld [vmem:[#allocation4] sm:$0xf] }
 0x130   : > { %1640 = vmatmul.mubr.msk.bf16.vlgmr.msra.gmra.mxu0 %vm655_vm3, %v643_v30 }
 0x131   : > { %1651 = vmatprep.mubr.msk.bf16.mxu0 %vm2063_vm0, %v2062_v0 }
 0x192   : > { %v547_v31 = vpop.permute.xlu1 %546  ;;  %v527_v32 = vpop.permute.xlu0 %526 }
 0x193   : > { %550 = vst.msk [vmem:[#allocation2 + $0xc] sm:$0xf] %vm504_vm2, %v547_v31  ;;  %530 = vst.msk [vmem:[#allocation2 + $0x4] sm:$0xf] %vm504_vm2, %v527_v32 }
 0x196   : > { %v537_v33 = vpop.permute.xlu0 %536 }
 0x197   : > { %540 = vst.msk [vmem:[#allocation2 + $0x8] sm:$0xf] %vm504_vm2, %v537_v33 }
 0x19a   : > { %v629_v34 = vpop.permute.xlu1 %628  ;;  %v634_v35 = vpop.permute.xlu0 %633  ;;  %v648_v36 = vld [vmem:[#allocation2 + $0x4] sm:$0xf]  ;;  %v650_v41 = vld [vmem:[#allocation2 + $0xc] sm:$0xf] }
 0x19b   : > { %632 = vst.msk [vmem:[#allocation4 + $0x4] sm:$0xf] %vm504_vm2, %v629_v34  ;;  %637 = vst.msk [vmem:[#allocation4 + $0x8] sm:$0xf] %vm504_vm2, %v634_v35  ;;  %v706_v37 = vsel %vm655_vm3, %v648_v36, 0  ;;  %v798_v43 = vsel %vm655_vm3, %v650_v41, 0 }
 0x19c   : > { %1644 = vmatpush3.bf16.xpose.msra.mxu1 %v706_v37 }
 0x19d   : > { %1655 = vmatprep.subr.bf16.mxu1 %v2062_v0 }
 0x19e   : > { %v639_v38 = vpop.permute.xlu1 %638  ;;  %v649_v39 = vld [vmem:[#allocation2 + $0x8] sm:$0xf] }
 0x19f   : > { %642 = vst.msk [vmem:[#allocation4 + $0xc] sm:$0xf] %vm504_vm2, %v639_v38  ;;  %v752_v40 = vsel %vm655_vm3, %v649_v39, 0 }
 0x1a0   : > { %1650 = vmatpush3.bf16.xpose.msra.mxu0 %v752_v40 }
 0x1a1   : > { %1661 = vmatprep.subr.bf16.mxu0 %v2062_v0 }
 0x1a2   : > { %v644_v42 = vld [vmem:[#allocation4 + $0x4] sm:$0xf]  ;;  %v645_v44 = vld [vmem:[#allocation4 + $0x8] sm:$0xf] }
 0x1a3   : > { %1646 = vmatmul.mubr.msk.bf16.vlgmr.msra.gmra.mxu1 %vm655_vm3, %v644_v42 }
 0x1a4   : > { %1656 = vmatpush3.bf16.xpose.msra.mxu1 %v798_v43  ;;  %1657 = vmatprep.mubr.msk.bf16.mxu1 %vm2063_vm0, %v2062_v0 }
 0x1a5   : > { %1667 = vmatprep.subr.bf16.mxu1 %v2062_v0 }
 0x1a6   : > { %v646_v45 = vld [vmem:[#allocation4 + $0xc] sm:$0xf] }
 0x1a7   : > { %1652 = vmatmul.mubr.msk.bf16.vlgmr.msra.gmra.mxu0 %vm655_vm3, %v645_v44 }
 0x1a8   : > { %1663 = vmatprep.mubr.msk.bf16.mxu0 %vm2063_vm0, %v2062_v0 }
 0x1ab   : > { %1658 = vmatmul.mubr.msk.bf16.vlgmr.msra.gmra.mxu1 %vm655_vm3, %v646_v45 }
 0x1ac   : > { %1669 = vmatprep.mubr.msk.bf16.mxu1 %vm2063_vm0, %v2062_v0 }
 0x1f0   : > { %v696_v47 = vpop.f32.mrf.mxu0 }
 0x1f1   : > { %v840_v49 = vmul.f32 0.35355338, %v696_v47 }
 0x1f2   : > { %v1641_v50 = vpop.f32.mrf.mxu0 }
 0x1f3   : > { %v853_v51 = vadd.f32 %v852_v48, %v840_v49 }
 0x1f4   : > { %v699_v52 = vpop.f32.mrf.mxu0 }
 0x1f5   : > { %v857_v53 = vsel %vm655_vm3, %v853_v51, -inf }
 0x1f6   : > { %858 = vmax.xlane.f32.xlu0 %v857_v53  ;;  %v1642_v54 = vpop.f32.mrf.mxu0 }
 0x263   : > { %v742_v55 = vpop.f32.mrf.mxu1 }
 0x264   : > { %v841_v56 = vmul.f32 0.35355338, %v742_v55 }
 0x265   : > { %v1647_v57 = vpop.f32.mrf.mxu1 }
 0x266   : > { %v854_v58 = vadd.f32 %v852_v48, %v841_v56 }
 0x267   : > { %v745_v59 = vpop.f32.mrf.mxu1  ;;  %v788_v60 = vpop.f32.mrf.mxu0 }
 0x268   : > { %v842_v61 = vmul.f32 0.35355338, %v788_v60  ;;  %v860_v62 = vsel %vm655_vm3, %v854_v58, -inf }
 0x269   : > { %861 = vmax.xlane.f32.xlu1 %v860_v62  ;;  %v1648_v63 = vpop.f32.mrf.mxu1  ;;  %v1653_v1 = vpop.f32.mrf.mxu0 }
 0x26a   : > { %v855_v2 = vadd.f32 %v852_v48, %v842_v61 }
 0x26b   : > { %v791_v3 = vpop.f32.mrf.mxu0  ;;  %v834_v4 = vpop.f32.mrf.mxu1 }
 0x26c   : > { %v843_v5 = vmul.f32 0.35355338, %v834_v4  ;;  %v863_v7 = vsel %vm655_vm3, %v855_v2, -inf }
 0x26d   : > { %v1659_v8 = vpop.f32.mrf.mxu1  ;;  %864 = vmax.xlane.f32.xlu0 %v863_v7  ;;  %v1654_v9 = vpop.f32.mrf.mxu0 }
 0x26e   : > { %v856_v11 = vadd.f32 %v852_v48, %v843_v5 }
 0x26f   : > { %v837_v13 = vpop.f32.mrf.mxu1 }
 0x270   : > { %v866_v15 = vsel %vm655_vm3, %v856_v11, -inf }
 0x271   : > { %v1660_v16 = vpop.f32.mrf.mxu1  ;;  %867 = vmax.xlane.f32.xlu0 %v866_v15  ;;  %v1830_v15 = vld [vmem:[#allocation9 + $0x8] sm:$0xff]  }
 0x27a   : > { %511 = vrot.lane.b32.xlu1 %v509_v18, %s2067_s23  ;;  %s2075_s23 = smov [#allocation14]  }
 0x27f   : > { %v859_v19 = vpop.xlane.xlu0 %858 }
 0x280   : > { %v869_v20 = vsub.f32 %v853_v51, %v859_v19 }
 0x282   : > { %v873_v21 = vmul.f32 1.442695, %v869_v20 }
 0x284   : > { %1838 = vpow2.f32 %v873_v21 }
 0x291   : > { %v1839_v22 = vpop.eup %1838 }
 0x292   : > { %v881_v23 = vsel %vm655_vm3, %v1839_v22, 0.0 }
 0x293   : > { %882 = vadd.xlane.f32.xlu0 %v881_v23 }
 0x2f2   : > { %v862_v24 = vpop.xlane.xlu1 %861 }
 0x2f3   : > { %v870_v25 = vsub.f32 %v854_v58, %v862_v24 }
 0x2f5   : > { %v875_v26 = vmul.f32 1.442695, %v870_v25 }
 0x2f6   : > { %v512_v27 = vpop.permute.xlu1 %511  ;;  %v865_v28 = vpop.xlane.xlu0 %864 }
 0x2f7   : > { %1840 = vpow2.f32 %v875_v26  ;;  %v514_v29 = vadd.f32 %v512_v27, %v2295_v14  ;;  %v871_v30 = vsub.f32 %v855_v2, %v865_v28 }
 0x2f9   : > { %v1582_v31 = vpack.c.bf16 %v514_v29, %v514_v29  ;;  %v877_v32 = vmul.f32 1.442695, %v871_v30 }
 0x2fa   : > { %v868_v33 = vpop.xlane.xlu0 %867 }
 0x2fb   : > { %1842 = vpow2.f32 %v877_v32  ;;  %v872_v34 = vsub.f32 %v856_v11, %v868_v33  ;;  %519 = vrot.lane.b32.xlu1 %v1582_v31, %s2068_s27  ;;  %s1968_s27 = sshll.u32 %s2075_s23, 4  ;;  %s1969_s27 = int_to_ptr.vmem [resolvable:$false] %s1968_s27 }
 0x2fd   : > { %v879_v35 = vmul.f32 1.442695, %v872_v34 }
 0x2ff   : > { %1844 = vpow2.f32 %v879_v35  ;;  %541 = vrot.lane.b32.xlu1 %v1582_v31, %s2069_s24 }
 0x303   : > { %551 = vrot.lane.b32.xlu1 %v1582_v31, %s2070_s16 }
 0x304   : > { %v1841_v36 = vpop.eup %1840 }
 0x305   : > { %v884_v37 = vsel %vm655_vm3, %v1841_v36, 0.0 }
 0x306   : > { %885 = vadd.xlane.f32.xlu0 %v884_v37 }
 0x308   : > { %v1843_v38 = vpop.eup %1842 }
 0x309   : > { %v887_v14 = vsel %vm655_vm3, %v1843_v38, 0.0 }
 0x30a   : > { %888 = vadd.xlane.f32.xlu0 %v887_v14 }
 0x30c   : > { %v1845_v39 = vpop.eup %1844 }
 0x30d   : > { %v890_v40 = vsel %vm655_vm3, %v1845_v39, 0.0 }
 0x30e   : > { %891 = vadd.xlane.f32.xlu0 %v890_v40 }
 0x31c   : > { %v883_v41 = vpop.xlane.xlu0 %882 }
 0x31d   : > { %1846 = vrcp.f32 %v883_v41 }
 0x324   : > { %531 = vrot.lane.b32.xlu0 %v1582_v31, %s2071_s18  ;;  %s415_s18 = sand.u32 1, %s2036_s10  }
 0x325   : > { %s1391_s26 = scalar_lea.sflag [#allocation8], %s415_s18 }
 0x32a   : > { %v1847_v43 = vpop.eup %1846 }
 0x32b   : > { %v897_v45 = vmul.f32 %v1847_v43, %v1839_v22 }
 0x32d   : > { %v901_v49 = vpack.c.bf16 %v897_v45, %v897_v45 }
 0x36d   : > { %v520_v42 = vpop.permute.xlu1 %519 }
 0x36e   : > { %522 = vst.msk [vmem:[#allocation3] sm:$0xf] %vm504_vm2, %v520_v42 }
 0x371   : > { %v542_v44 = vpop.permute.xlu1 %541 }
 0x372   : > { %545 = vst.msk [vmem:[#allocation3 + $0x8] sm:$0xf] %vm504_vm2, %v542_v44 }
 0x375   : > { %v552_v46 = vpop.permute.xlu1 %551  ;;  %v651_v47 = vld [vmem:[#allocation3] sm:$0xf] }
 0x376   : > { %555 = vst.msk [vmem:[#allocation3 + $0xc] sm:$0xf] %vm504_vm2, %v552_v46  ;;  %v910_v48 = vsel %vm908_vm5, %v651_v47, 0 }
 0x377   : > { %1662 = vmatpush3.bf16.msra.mxu0 %v910_v48 }
 0x378   : > { %1673 = vmatprep.subr.bf16.mxu0 %v2062_v0 }
 0x379   : > { %v653_v50 = vld [vmem:[#allocation3 + $0x8] sm:$0xf] }
 0x37a   : > { %1664 = vmatmul.mubr.msk.bf16.vlgmr.msra.gmra.mxu0 %vm655_vm3, %v901_v49  ;;  %v1002_v51 = vsel %vm908_vm5, %v653_v50, 0  ;;  %v1832_v49 = vld [vmem:[#allocation11 + $0x8] sm:$0xff]   ;;  %v1833_v50 = vld [vmem:[#allocation11] sm:$0xff]  }
 0x37b   : > { %1674 = vmatpush3.bf16.msra.mxu0 %v1002_v51  ;;  %1675 = vmatprep.mubr.msk.bf16.mxu0 %vm2063_vm0, %v2062_v0 }
 0x37c   : > { %1685 = vmatprep.subr.bf16.mxu0 %v2062_v0 }
 0x37d   : > { %v654_v63 = vld [vmem:[#allocation3 + $0xc] sm:$0xf] }
 0x37e   : > { %v1048_v3 = vsel %vm908_vm5, %v654_v63, 0  ;;  %v1835_v63 = vld [vmem:[%s2453_s6 + $0x10] sm:$0xff]  }
 0x38f   : > { %v886_v52 = vpop.xlane.xlu0 %885 }
 0x390   : > { %1848 = vrcp.f32 %v886_v52 }
 0x393   : > { %v889_v53 = vpop.xlane.xlu0 %888 }
 0x394   : > { %1850 = vrcp.f32 %v889_v53  ;;  %v1200_v53 = vsub.s32 4, %v2289_v10 }
 0x397   : > { %v892_v54 = vpop.xlane.xlu0 %891 }
 0x398   : > { %1852 = vrcp.f32 %v892_v54  ;;  %v1205_v54 = vsub.s32 5, %v2289_v10 }
 0x39b   : > { %v532_v55 = vpop.permute.xlu0 %531 }
 0x39c   : > { %535 = vst.msk [vmem:[#allocation3 + $0x4] sm:$0xf] %vm504_vm2, %v532_v55  ;;  %v1201_v55 = vrot.slane %v2292_v12, %v1200_v53 }
 0x39d   : > { %v1849_v56 = vpop.eup %1848 }
 0x39e   : > { %v898_v59 = vmul.f32 %v1849_v56, %v1841_v36  ;;  %v1126_v36 = vsub.s32 3, %v2289_v10 }
 0x3a0   : > { %v902_v1 = vpack.c.bf16 %v898_v59, %v898_v59  ;;  %v1127_v37 = vrot.slane %v2292_v12, %v1126_v36 }
 0x3a1   : > { %v1851_v57 = vpop.eup %1850 }
 0x3a2   : > { %v899_v58 = vmul.f32 %v1851_v57, %v1843_v38 }
 0x3a3   : > { %v652_v60 = vld [vmem:[#allocation3 + $0x4] sm:$0xf] }
 0x3a4   : > { %v956_v61 = vsel %vm908_vm5, %v652_v60, 0  ;;  %v903_v62 = vpack.c.bf16 %v899_v58, %v899_v58  ;;  %v1206_v58 = vrot.slane %v2292_v12, %v1205_v54 }
 0x3a5   : > { %1668 = vmatpush3.bf16.msra.mxu1 %v956_v61  ;;  %v1853_v2 = vpop.eup %1852 }
 0x3a6   : > { %1676 = vmatmul.mubr.msk.bf16.vlgmr.msra.gmra.mxu0 %vm655_vm3, %v903_v62  ;;  %1679 = vmatprep.subr.bf16.mxu1 %v2062_v0  ;;  %v900_v4 = vmul.f32 %v1853_v2, %v1845_v39  ;;  %v1834_v62 = vld [vmem:[%s2453_s6 + $0x18] sm:$0xff]   ;;  %v1837_v2 = vld [vmem:[%s2453_s6] sm:$0xff]  }
 0x3a7   : > { %1689 = vmatprep.mubr.msk.bf16.mxu0 %vm2063_vm0, %v2062_v0  ;;  %1686 = vmatpush3.bf16.msra.mxu0 %v1830_v15 }
 0x3a8   : > { %1670 = vmatmul.mubr.msk.bf16.vlgmr.msra.gmra.mxu1 %vm655_vm3, %v902_v1  ;;  %v904_v5 = vpack.c.bf16 %v900_v4, %v900_v4  ;;  %1687 = vmatprep.subr.bf16.mxu0 %v2062_v0  ;;  %v1836_v1 = vld [vmem:[%s2453_s6 + $0x8] sm:$0xff]  }
 0x3a9   : > { %1680 = vmatpush3.bf16.msra.mxu1 %v1048_v3  ;;  %1681 = vmatprep.mubr.msk.bf16.mxu1 %vm2063_vm0, %v2062_v0  ;;  %v1568_v3 = vld [vmem:[%s2455_s8] ss:$0 sm:$0xff] }
 0x3aa   : > { %1693 = vmatprep.subr.bf16.mxu1 %v2062_v0 }
 0x3ab   : > { %1688 = vmatpush3.bf16.msra.mxu0 %v1831_v17 }
 0x3ac   : > { %1701 = vmatprep.subr.bf16.mxu0 %v2062_v0 }
 0x3b0   : > { %1682 = vmatmul.mubr.msk.bf16.vlgmr.msra.gmra.mxu1 %vm655_vm3, %v904_v5 }
 0x3b1   : > { %1697 = vmatprep.mubr.msk.bf16.mxu1 %vm2063_vm0, %v2062_v0  ;;  %1694 = vmatpush3.bf16.msra.mxu1 %v1832_v49 }
 0x3b2   : > { %1695 = vmatprep.subr.bf16.mxu1 %v2062_v0 }
 0x3b5   : > { %1696 = vmatpush3.bf16.msra.mxu1 %v1833_v50 }
 0x43a   : > { %v946_v7 = vpop.f32.mrf.mxu0 }
 0x43b   : > { %v1090_v8 = vpack.c.bf16 %v946_v7, %v946_v7 }
 0x43c   : > { %v1665_v9 = vpop.f32.mrf.mxu0 }
 0x43d   : > { %1091 = vst.msk [vmem:[#allocation5] sm:$0xf] %vm504_vm2, %v1090_v8 }
 0x43e   : > { %v949_v11 = vpop.f32.mrf.mxu0 }
 0x440   : > { %v1666_v13 = vpop.f32.mrf.mxu0 }
 0x466   : > { %v1038_v16 = vpop.f32.mrf.mxu0 }
 0x467   : > { %v1586_v25 = vpack.c.bf16 %v1038_v16, %v1038_v16 }
 0x468   : > { %v992_v18 = vpop.f32.mrf.mxu1  ;;  %v1677_v19 = vpop.f32.mrf.mxu0 }
 0x469   : > { %v1585_v20 = vpack.c.bf16 %v992_v18, %v992_v18 }
 0x46a   : > { %v1671_v21 = vpop.f32.mrf.mxu1  ;;  %v1041_v22 = vpop.f32.mrf.mxu0 }
 0x46b   : > { %1096 = vrot.lane.b32.xlu1 %v1585_v20, %s2072_s25  ;;  %v1295_v22 = vsub.s32 6, %v2289_v10  ;;  %s1542_s25 = sshll.u32 %s415_s18, 3 }
 0x46c   : > { %v995_v23 = vpop.f32.mrf.mxu1  ;;  %v1678_v24 = vpop.f32.mrf.mxu0 }
 0x46d   : > { %v1296_v23 = vrot.slane %v2292_v12, %v1295_v22 }
 0x46e   : > { %v1672_v26 = vpop.f32.mrf.mxu1 }
 0x46f   : > { %1105 = vrot.lane.b32.xlu1 %v1586_v25, %s2073_s29  ;;  %s1579_s29 = sshll.u32 %s2044_s12, 7  ;;  %s1970_s12 = scalar_lea.vmem %s1969_s27, 256 }
 0x470   : > { %v1084_v27 = vpop.f32.mrf.mxu1  ;;  %s1403_s20 = scalar_lea.hbm %s2456_s9, %s1579_s29 }
 0x471   : > { %v1587_v28 = vpack.c.bf16 %v1084_v27, %v1084_v27 }
 0x472   : > { %v1683_v29 = vpop.f32.mrf.mxu1 }
 0x473   : > { %1114 = vrot.lane.b32.xlu1 %v1587_v28, %s2074_s28  ;;  %s417_s28 = scalar_lea.vmem [#allocation14], %s1542_s25 }
 0x474   : > { %v1087_v30 = vpop.f32.mrf.mxu1  ;;  %s1405_s4 = sshll.u32 %s417_s28, 4  ;;  %s1406_s4 = int_to_ptr.vmem [resolvable:$true] %s1405_s4 }
 0x475   : > { %s1964_s17 = scalar_lea.vmem %s1406_s4, 128  ;;  %p1971_p6 = scmp.lt.s32.totalorder %s1406_s4, %s1969_s27 }
 0x476   : > { %v1684_v31 = vpop.f32.mrf.mxu1  ;;  %p1965_p11 = scmp.ne.s32.totalorder %s1406_s4, %s1964_s17  ;;  %p1972_p7 = scmp.lt.s32.totalorder %s1970_s12, %s1964_s17 }
 0x478   : > { %p1966_p13 = pnand %p1965_p11, %p2166_p4  ;;  %p1973_p9 = por %p1972_p7, %p1971_p6 }
 0x47a   : > { %p1967_p0 = pneg %p1966_p13 }
 0x47c   : > { %p1974_p12 = pnand %p1973_p9, %p1967_p0 }
 0x4dd   : > { %v1097_v32 = vpop.permute.xlu1 %1096 }
 0x4de   : > { %1100 = vst.msk [vmem:[#allocation5] sm:$0xf] %vm1099_vm6, %v1097_v32 }
 0x4e1   : > { %v1106_v33 = vpop.permute.xlu1 %1105 }
 0x4e2   : > { %1109 = vst.msk [vmem:[#allocation5] sm:$0xf] %vm1108_vm7, %v1106_v33 }
 0x4e5   : > { %v1115_v34 = vpop.permute.xlu1 %1114 }
 0x4e6   : > { %1118 = vst.msk [vmem:[#allocation5] sm:$0xf] %vm1117_vm8, %v1115_v34 }
 0x4ed   : > { %v1119_v35 = vld [vmem:[#allocation5] sm:$0xf] }
 0x4ee   : > { %1690 = vmatmul.mubr.msk.bf16.vlgmr.msra.gmra.mxu0 %vm454_vm1, %v1119_v35 }
 0x4ef   : > { %1709 = vmatprep.mubr.msk.bf16.mxu0 %vm2063_vm0, %v2062_v0  ;;  %1702 = vmatpush3.bf16.msra.mxu0 %v1834_v62 }
 0x4f0   : > { %1703 = vmatprep.subr.bf16.mxu0 %v2062_v0 }
 0x4f3   : > { %1704 = vmatpush3.bf16.msra.mxu0 %v1835_v63 }
 0x4f4   : > { %1705 = vmatprep.subr.bf16.mxu0 %v2062_v0 }
 0x4f7   : > { %1706 = vmatpush3.bf16.msra.mxu0 %v1836_v1 }
 0x4f8   : > { %1707 = vmatprep.subr.bf16.mxu0 %v2062_v0 }
 0x4fb   : > { %1708 = vmatpush3.bf16.msra.mxu0 %v1837_v2 }
 0x5ae   : > { %v1177_v38 = vpop.f32.mrf.mxu0 }
 0x5af   : > { %v1178_v14 = vadd.f32 %v1177_v38, %v1127_v37 }
 0x5b0   : > { %v1691_v39 = vpop.f32.mrf.mxu0 }
 0x5b1   : > { %v1183_v40 = vadd.f32 %v1178_v14, %v2274_v6  ;;  %v1381_v14 = vsub.s32 7, %v2289_v10 }
 0x5b2   : > { %v1180_v41 = vpop.f32.mrf.mxu0 }
 0x5b3   : > { %v1184_v42 = vsel %vm454_vm1, %v1183_v40, 0.0  ;;  %v1382_v39 = vrot.slane %v2292_v12, %v1381_v14 }
 0x5b4   : > { %1185 = vadd.xlane.f32.xlu0 %v1184_v42  ;;  %v1692_v43 = vpop.f32.mrf.mxu0  ;;  %v1577_v42 = vld [vmem:[#allocation12 + $0x8] ss:$0 sm:$0xff] }
 0x63d   : > { %v1186_v44 = vpop.xlane.xlu0 %1185 }
 0x63e   : > { %v1188_v45 = vmul.f32 0.03125, %v1186_v44 }
 0x640   : > { %v1189_v46 = vsub.f32 %v1183_v40, %v1188_v45 }
 0x642   : > { %v1190_v47 = vmul.f32 %v1189_v46, %v1189_v46 }
 0x644   : > { %v1191_v48 = vsel %vm454_vm1, %v1190_v47, 0.0 }
 0x645   : > { %1192 = vadd.xlane.f32.xlu1 %v1191_v48 }
 0x6ce   : > { %v1193_v51 = vpop.xlane.xlu1 %1192 }
 0x6cf   : > { %v1194_v6 = vmul.f32 0.03125, %v1193_v51 }
 0x6d1   : > { %v1195_v52 = vadd.f32 1e-05, %v1194_v6 }
 0x6d3   : > { %1854 = vrsqrt.f32 %v1195_v52 }
 0x6e0   : > { %v1855_v56 = vpop.eup %1854 }
 0x6e1   : > { %v1197_v57 = vmul.f32 %v1855_v56, %v1189_v46 }
 0x6e3   : > { %v1202_v59 = vmul.f32 %v1201_v55, %v1197_v57 }
 0x6e5   : > { %v1207_v60 = vadd.f32 %v1206_v58, %v1202_v59 }
 0x6e7   : > { %v1208_v61 = vpack.c.bf16 %v1207_v60, %v1207_v60 }
 0x6e9   : > { %1698 = vmatmul.mubr.msk.bf16.vlgmr.msra.gmra.mxu1 %vm454_vm1, %v1208_v61 }
 0x7a9   : > { %v1269_v4 = vpop.f32.mrf.mxu1 }
 0x7aa   : > { %v1270_v5 = vadd.f32 %v1568_v3, %v1269_v4 }
 0x7ab   : > { %v1699_v7 = vpop.f32.mrf.mxu1 }
 0x7ac   : > { %v1276_v8 = vmul.f32 %v1270_v5, %v1270_v5  ;;  %v1275_v18 = vmul.f32 0.5, %v1270_v5 }
 0x7ad   : > { %v1272_v9 = vpop.f32.mrf.mxu1 }
 0x7ae   : > { %v1277_v11 = vmul.f32 %v1276_v8, %v1270_v5 }
 0x7af   : > { %v1700_v13 = vpop.f32.mrf.mxu1 }
 0x7b0   : > { %v1278_v15 = vmul.f32 0.044715, %v1277_v11 }
 0x7b2   : > { %v1279_v16 = vadd.f32 %v1278_v15, %v1270_v5 }
 0x7b4   : > { %v1280_v17 = vmul.f32 0.7978846, %v1279_v16 }
 0x7b6   : > { %1856 = vtanh.f32 %v1280_v17 }
 0x7c3   : > { %v1857_v0 = vpop.eup %1856 }
 0x7c4   : > { %v1282_v19 = vadd.f32 1.0, %v1857_v0 }
 0x7c6   : > { %v1283_v20 = vmul.f32 %v1282_v19, %v1275_v18 }
 0x7c8   : > { %v1284_v21 = vpack.c.bf16 %v1283_v20, %v1283_v20 }
 0x7ca   : > { %1710 = vmatmul.mubr.msk.bf16.vlgmr.msra.gmra.mxu0 %vm1321_vm9, %v1284_v21 }
 0x88a   : > { %v1359_v24 = vpop.f32.mrf.mxu0 }
 0x88b   : > { %v1360_v25 = vadd.f32 %v1359_v24, %v1296_v23 }
 0x88c   : > { %v1711_v26 = vpop.f32.mrf.mxu0 }
 0x88d   : > { %v1365_v27 = vadd.f32 %v1360_v25, %v1207_v60 }
 0x88e   : > { %v1362_v28 = vpop.f32.mrf.mxu0 }
 0x88f   : > { %v1366_v29 = vsel %vm454_vm1, %v1365_v27, 0.0 }
 0x890   : > { %1367 = vadd.xlane.f32.xlu0 %v1366_v29  ;;  %v1712_v30 = vpop.f32.mrf.mxu0 }
 0x919   : > { %v1368_v31 = vpop.xlane.xlu0 %1367 }
 0x91a   : > { %v1369_v32 = vmul.f32 0.03125, %v1368_v31 }
 0x91c   : > { %v1370_v33 = vsub.f32 %v1365_v27, %v1369_v32 }
 0x91e   : > { %v1371_v34 = vmul.f32 %v1370_v33, %v1370_v33 }
 0x920   : > { %v1372_v35 = vsel %vm454_vm1, %v1371_v34, 0.0 }
 0x921   : > { %1373 = vadd.xlane.f32.xlu0 %v1372_v35 }
 0x9aa   : > { %v1374_v36 = vpop.xlane.xlu0 %1373 }
 0x9ab   : > { %v1375_v37 = vmul.f32 0.03125, %v1374_v36 }
 0x9ad   : > { %v1376_v38 = vadd.f32 1e-05, %v1375_v37 }
 0x9af   : > { %1858 = vrsqrt.f32 %v1376_v38 }
 0x9bc   : > { %v1859_v40 = vpop.eup %1858 }
 0x9bd   : > { %v1378_v41 = vmul.f32 %v1859_v40, %v1370_v33 }
 0x9bf   : > { %v1383_v43 = vmul.f32 %v1382_v39, %v1378_v41 }
 0x9c1   : > { %v1388_v44 = vadd.f32 %v1577_v42, %v1383_v43 }
 0x9c3   : > { %1389 = vst.msk [vmem:[%s417_s28] sm:$0xff] %vm454_vm1, %v1388_v44 }
 0x9c4   : > { %1977 = shalt.err (!%p1974_p12)
}
 0x9c5   : > { %s1978_s24 = scalar_lea.hbm %s1403_s20, 128  ;;  %s1982_s25 = scalar_lea.hbm %s2456_s9, 256 }
 0x9c6   : > { %p1979_p2 = scmp.ne.s32.totalorder %s1403_s20, %s1978_s24  ;;  %p1983_p5 = scmp.lt.s32.totalorder %s1403_s20, %s2456_s9 }
 0x9c7   : > { %p1984_p10 = scmp.lt.s32.totalorder %s1982_s25, %s1978_s24 }
 0x9c8   : > { %p1980_p1 = pnand %p1979_p2, %p2166_p4 }
 0x9c9   : > { %p1985_p11 = por %p1984_p10, %p1983_p5 }
 0x9ca   : > { %p1981_p3 = pneg %p1980_p1 }
 0x9cc   : > { %p1986_p13 = pnand %p1985_p11, %p1981_p3 }
 0x9ce   : > { %1989 = shalt.err (!%p1986_p13)
}
 0x9cf   : > { %1729 = dma.vmem_to_hbm [thread:$0]  (%p2166_p4), %s1406_s4, 128, %s1403_s20, %s1391_s26  }
 0x9d0 PF: > { %p1756_p0 = scmp.ge.s32.totalorder %s2052_s14, 2  ;;  %s1417_s13 = sand.u32 1, %s2032_s30  }
 0x9d1   : > { %s1418_s15 = scalar_lea.sflag [#allocation8], %s1417_s13 }
 0x9d2   : > { %p1745_p6 = pnand %p1756_p0, %p2173_p8 }
 0x9d4   : > { %p1746_p7 = pneg %p1745_p6 }
 0x9d6   : > { %2027 = dma.done.wait (%p1746_p7), %s1418_s15, 128  }
 0x9d7   : > { %2029 = vsyncadd (%p1746_p7), %s1418_s15, 4294967168  ;;  %s25_s14 = sadd.s32 1, %s2052_s14   ;;  %s2468_s12 = sld [smem:[#allocation19_spill]] }
 0x9d8   : > { %p22_p9 = scmp.ge.s32.totalorder %s25_s14, 4   ;;  %s2469_s13 = sld [smem:[#allocation20_spill]] }
 0x9d9   : > { %s2470_s30 = smov %s2036_s10  ;;  %s2471_s10 = smov %s2040_s11 }
 0x9da   : > { %s2472_s11 = smov %s2179_s22  ;;  %24 = sbr.rel (!%p22_p9) target bundleno = 9 (0x9), region = 124 }
 0x9df   :  { %1423 = vsyncpa [#allocation7], 1 }
 0x9e0   :  { %1425 = vsyncpa [#allocation7 + $0x1], 1 }
 0x9e1   :  { %1426 = vsyncpa [#allocation10], 1 }
 0x9e2   :  { %1427 = vsyncpa [#allocation13], 1 }
 0x9e3   :  { %1428 = vsyncpa [#allocation8], 1 }
 0x9e4   :  { %1430 = vsyncpa [#allocation8 + $0x1], 1 }

// kernel: tpu_custom_call.1
= control target key start
LH: loop header
LB: loop body
LE: loop exit
PB: predicated region body
PF: predicated region fallthrough
CT: control target
= control target key end

     0   :  { %s2447_s0 = inlined_call_operand.vmem [shape: f32[2,8,32], index: 0, kind: input, shape index: {}]   ;;  %s2448_s1 = inlined_call_operand.vmem [shape: f32[2,8,32], index: 1, kind: input, shape index: {}]   ;;  %s2449_s2 = inlined_call_operand.vmem [shape: bf16[32,32], index: 2, kind: input, shape index: {}]   ;;  %s2450_s3 = inlined_call_operand.hbm [shape: bf16[32,64], index: 3, kind: input, shape index: {}]   ;;  %s2451_s4 = inlined_call_operand.hbm [shape: bf16[32,32], index: 4, kind: input, shape index: {}]   ;;  %s2452_s5 = inlined_call_operand.hbm [shape: bf16[32,64], index: 5, kind: input, shape index: {}]   ;;  %s2453_s6 = inlined_call_operand.vmem [shape: bf16[64,32], index: 6, kind: input, shape index: {}]   ;;  %s2454_s7 = inlined_call_operand.hbm [shape: f32[9,32], index: 7, kind: input, shape index: {}]   ;;  %s2455_s8 = inlined_call_operand.vmem [shape: f32[1,64], index: 8, kind: input, shape index: {}]   ;;  %s2456_s9 = inlined_call_operand.hbm [shape: f32[2,8,32], index: 9, kind: output, shape index: {}]  }
   0x1   :  { %2459 = sst [smem:[#allocation21_spill]] %s2451_s4 }
   0x2   :  { %14 = vsyncpa [#allocation7], 0 }
   0x3   :  { %15 = vsyncpa [#allocation10], 0 }
   0x4   :  { %16 = vsyncpa [#allocation13], 0 }
   0x5   :  { %17 = vsyncpa [#allocation8], 0 }
   0x6   :  { %19 = vsyncpa [#allocation8 + $0x1], 0  ;;  %s2126_s30 = smov 0   ;;  %s2128_s10 = smov 0  }
   0x7   :  { %s2130_s11 = smov 0   ;;  %s2132_s12 = smov 0  }
   0x8   :  { %s2134_s13 = smov 0   ;;  %s2136_s14 = smov 0  }
   0x9 LB: > { %2460 = sst [smem:[#allocation19_spill]] %s2048_s13  ;;  %s1529_s15 = sadd.s32 4294967295, %s2052_s14   ;;  %s2052_s14 = sphi %s2136_s14, %s25_s14   ;;  %s2048_s13 = sphi %s2134_s13, %s2469_s13   ;;  %s2044_s12 = sphi %s2132_s12, %s2468_s12   ;;  %s2040_s11 = sphi %s2130_s11, %s2472_s11   ;;  %s2036_s10 = sphi %s2128_s10, %s2471_s10   ;;  %s2032_s30 = sphi %s2126_s30, %s2470_s30  }
   0xa   : > { %s1530_s16 = sadd.s32 4294967294, %s2052_s14   ;;  %s37_s17 = sadd.s32 1, %s2048_s13 }
   0xb   : > { %s247_s18 = sadd.s32 1, %s2040_s11  ;;  %p39_p0 = scmp.ge.s32.totalorder %s37_s17, 2 }
   0xc   : > { %p257_p1 = scmp.ne.s32.totalorder %s2040_s11, %s2036_s10  ;;  %p258_p2 = scmp.eq.s32.totalorder %s1529_s15, 1 }
   0xd   : > { %p263_p3 = scmp.ne.s32.totalorder %s2036_s10, %s2032_s30  ;;  %s2474_s17 = smov (%p39_p0, %s37_s17), 0 }
   0xe   : > { %2461 = sst [smem:[#allocation20_spill]] %s2474_s17  ;;  %p2166_p4 = por %p258_p2, %p257_p1 }
   0xf   : > { %p264_p5 = scmp.eq.s32.totalorder %s1530_s16, 1  ;;  %s242_s20 = ssub.s32 %s2048_s13, %s2474_s17 }
  0x10   : > { %p1531_p6 = scmp.ge.s32.totalorder %s2052_s14, 1  ;;  %p245_p7 = scmp.eq.s32.totalorder %s242_s20, 0 }
  0x11   : > { %p2173_p8 = por %p264_p5, %p263_p3  ;;  %p271_p9 = scmp.lt.s32.totalorder %s2052_s14, 3 }
  0x12   : > { %s2179_s22 = scalar_select %p245_p7, %s2040_s11, %s247_s18  }
  0x13   : > { %p2181_p10 = pnand %p1531_p6, %p271_p9  ;;  %p2185_p11 = scmp.eq.s32.totalorder %s1529_s15, 0 }
  0x14   : > { %s2054_s25 = smov [#allocation9]   ;;  %s2055_s28 = smov [#allocation6]  }
  0x15   : > { %p1731_p12 = pneg %p2181_p10  ;;  %s299_s26 = sshll.u32 %s2054_s25, 4  ;;  %s300_s26 = int_to_ptr.vmem [resolvable:$true] %s299_s26 }
  0x16   : > { %s286_s29 = sshll.u32 %s2055_s28, 4  ;;  %s1871_s15 = scalar_lea.vmem %s300_s26, 256  ;;  %s287_s29 = int_to_ptr.vmem [resolvable:$true] %s286_s29 }
  0x17   : > { %p2193_p13 = pnand %p2185_p11, %p1731_p12  ;;  %p1872_p1 = scmp.ne.s32.totalorder %s300_s26, %s1871_s15 }
  0x18   : > { %p1879_p5 = scmp.lt.s32.totalorder %s300_s26, %s300_s26  ;;  %p1880_p6 = scmp.lt.s32.totalorder %s1871_s15, %s1871_s15 }
  0x19   : > { %p1862_p0 = pneg %p2193_p13 }
  0x1a   : > { %p1881_p7 = por %p1880_p6, %p1879_p5 }
  0x1b   : > { %p1874_p2 = pnand %p1872_p1, %p1862_p0 }
  0x1d   : > { %p1875_p3 = pneg %p1874_p2 }
  0x1f   : > { %p1882_p9 = pnand %p1881_p7, %p1875_p3 }
  0x21   : > { %1885 = shalt.err (!%p1882_p9)
}
  0x22   : > { %s2056_s16 = smov 64   ;;  %s2057_s18 = smov 4  }
  0x23   : > { %s2467_s4 = sld [smem:[#allocation21_spill]]  ;;  %s1897_s28 = scalar_lea.vmem %s287_s29, 256 }
  0x24   : > { %p1898_p12 = scmp.ne.s32.totalorder %s287_s29, %s1897_s28  ;;  %p1905_p3 = scmp.lt.s32.totalorder %s287_s29, %s287_s29 }
  0x25   : > { %p1906_p5 = scmp.lt.s32.totalorder %s1897_s28, %s1897_s28 }
  0x26   : > { %p1900_p1 = pnand %p1898_p12, %p1862_p0 }
  0x27   : > { %p1907_p6 = por %p1906_p5, %p1905_p3 }
  0x28   : > { %p1901_p2 = pneg %p1900_p1 }
  0x29   : > { %1737 = dma.hbm_to_vmem [thread:$0]  (!%p2193_p13), %s2467_s4, 256, %s300_s26, [#allocation10], %s2056_s16, %s2056_s16, %s2057_s18  }
  0x2a   : > { %p1908_p7 = pnand %p1907_p6, %p1901_p2 }
  0x2c   : > { %1911 = shalt.err (!%p1908_p7)
}
  0x2d   : > { %1734 = dma.hbm_to_vmem [thread:$0]  (!%p2193_p13), %s2450_s3, 256, %s287_s29, [#allocation7], %s2056_s16, %s2056_s16, %s2057_s18  }
  0x2e   : > { %s2058_s26 = smov [#allocation11]   ;;  %s2059_s4 = smov [#allocation12]  }
  0x2f   : > { %s312_s25 = sshll.u32 %s2058_s26, 4  ;;  %s328_s17 = sshll.u32 %s2059_s4, 4  ;;  %s313_s25 = int_to_ptr.vmem [resolvable:$true] %s312_s25  ;;  %s329_s17 = int_to_ptr.vmem [resolvable:$true] %s328_s17 }
  0x30   : > { %s1923_s13 = scalar_lea.vmem %s313_s25, 256  ;;  %p1931_p2 = scmp.lt.s32.totalorder %s313_s25, %s313_s25 }
  0x31   : > { %p1924_p9 = scmp.ne.s32.totalorder %s313_s25, %s1923_s13  ;;  %p1932_p3 = scmp.lt.s32.totalorder %s1923_s13, %s1923_s13 }
  0x33   : > { %p1926_p12 = pnand %p1924_p9, %p1862_p0  ;;  %p1933_p5 = por %p1932_p3, %p1931_p2 }
  0x35   : > { %p1927_p1 = pneg %p1926_p12 }
  0x37   : > { %p1934_p6 = pnand %p1933_p5, %p1927_p1 }
  0x39   : > { %1937 = shalt.err (!%p1934_p6)
}
  0x3a   : > { %1740 = dma.hbm_to_vmem [thread:$0]  (!%p2193_p13), %s2452_s5, 256, %s313_s25, [#allocation10], %s2056_s16, %s2056_s16, %s2057_s18  }
  0x3b   : > { %s1949_s4 = scalar_lea.vmem %s329_s17, 256  ;;  %p1957_p2 = scmp.lt.s32.totalorder %s329_s17, %s329_s17 }
  0x3c   : > { %p1950_p7 = scmp.ne.s32.totalorder %s329_s17, %s1949_s4  ;;  %p1958_p1 = scmp.lt.s32.totalorder %s1949_s4, %s1949_s4 }
  0x3e   : > { %p1952_p9 = pnand %p1950_p7, %p1862_p0  ;;  %p1959_p3 = por %p1958_p1, %p1957_p2 }
  0x40   : > { %p1953_p12 = pneg %p1952_p9 }
  0x42   : > { %p1960_p5 = pnand %p1959_p3, %p1953_p12 }
  0x44   : > { %1963 = shalt.err (!%p1960_p5)
}
  0x45   : > { %s2060_s13 = smov 128   ;;  %s2061_s15 = smov 8  }
  0x46   : > { %1743 = dma.hbm_to_vmem [thread:$0]  (!%p2193_p13), %s2454_s7, 256, %s329_s17, [#allocation13], %s2060_s13, %s2060_s13, %s2061_s15  }
  0x47   : > { %364 = sbr.rel (%p2181_p10) target bundleno = 2512 (0x9d0), region = 56 }
  0x4c   : > { %2015 = dma.done.wait (%p2185_p11), [#allocation7], 256  }
  0x4d   : > { %2017 = vsyncadd (%p2185_p11), [#allocation7], 4294967040 }
  0x4e   : > { %2019 = dma.done.wait (%p2185_p11), [#allocation10], 512  }
  0x4f   : > { %2021 = vsyncadd (%p2185_p11), [#allocation10], 4294966784 }
  0x50   : > { %2023 = dma.done.wait (%p2185_p11), [#allocation13], 256  }
  0x51   : > { %2025 = vsyncadd (%p2185_p11), [#allocation13], 4294967040  ;;  %p418_p10 = scmp.lt.s32.totalorder %s2044_s12, 1  ;;  %v2062_v0 = vmov 0.0   ;;  %vm2063_vm0 = vmmov 0   ;;  %v1826_v1 = vld [vmem:[#allocation6 + $0x8] sm:$0xff]   ;;  %v498_v9 = vlaneseq }
  0x52   : > { %1621 = vmatprep.subr.bf16.mxu1 %v2062_v0  ;;  %1625 = vmatprep.mubr.msk.bf16.mxu1 %vm2063_vm0, %v2062_v0  ;;  %v1827_v2 = vld [vmem:[#allocation6] sm:$0xff]   ;;  %vm454_vm1 = vcmask 261120   ;;  %v1828_v4 = vld [vmem:[%s2449_s2 + $0x8] sm:$0xff]   ;;  %v1829_v7 = vld [vmem:[%s2449_s2] sm:$0xff]   ;;  %vm504_vm2 = vcmask 60416   ;;  %s2064_s20 = smov 104  }
  0x53   : > { %s419_s17 = scalar_select %p418_p10, %s2044_s12, 1  ;;  %1637 = vmatprep.subr.bf16.mxu0 %v2062_v0  ;;  %1639 = vmatprep.mubr.msk.bf16.mxu0 %vm2063_vm0, %v2062_v0  ;;  %v2289_v10 = vshrl.u32 %v498_v9, 7  ;;  %v2292_v12 = vld [vmem:[#allocation12] sm:$0xff]  ;;  %vm655_vm3 = vcmask 64512   ;;  %v850_v46 = vand.u32 127, %v498_v9  ;;  %vm908_vm5 = vcmask 1043456  }
  0x54   : > { %1622 = vmatpush3.bf16.msra.mxu1 %v1826_v1  ;;  %s2065_s26 = smov 120   ;;  %s2068_s27 = smov 96   ;;  %vm1099_vm6 = vcmask 126016   ;;  %vm1108_vm7 = vcmask 191616   ;;  %vm1117_vm8 = vcmask 257216   ;;  %vm1321_vm9 = vcmask 523264  }
  0x55   : > { %s1543_s23 = sshll.u32 %s419_s17, 3  ;;  %1623 = vmatprep.subr.bf16.mxu1 %v2062_v0  ;;  %v500_v11 = vsub.s32 1, %v2289_v10  ;;  %v564_v16 = vsub.s32 0, %v2289_v10  ;;  %s2066_s17 = smov 112   ;;  %vm851_vm4 = vcmp.gt.s32.totalorder %v850_v46, %v2289_v10 }
  0x56   : > { %s421_s16 = scalar_lea.vmem %s2447_s0, %s1543_s23  ;;  %s428_s4 = scalar_lea.vmem %s2448_s1, %s1543_s23  ;;  %v852_v48 = vsel %vm851_vm4, -1e+30, %v2062_v0 }
  0x57   : > { %v436_v3 = vld [vmem:[%s421_s16] sm:$0xff]  ;;  %v501_v13 = vrot.slane %v2292_v12, %v500_v11  ;;  %v565_v20 = vrot.slane %v2292_v12, %v564_v16  ;;  %s2067_s23 = smov 32   ;;  %s2069_s24 = smov 80  }
  0x58   : > { %v437_v5 = vpack.c.bf16 %v436_v3, %v436_v3  ;;  %1624 = vmatpush3.bf16.msra.mxu1 %v1827_v2  ;;  %v2274_v6 = vld [vmem:[%s428_s4] sm:$0xff]  ;;  %s2070_s16 = smov 72   ;;  %s2071_s18 = smov 88  }
  0x59   : > { %1629 = vmatprep.subr.bf16.mxu1 %v2062_v0  ;;  %v557_v8 = vpack.c.bf16 %v2274_v6, %v2274_v6  ;;  %s2072_s25 = smov 8   ;;  %s2073_s29 = smov 16  }
  0x5a   : > { %s2074_s28 = smov 24  }
  0x5b   : > { %1626 = vmatmul.mubr.msk.bf16.vlgmr.msra.gmra.mxu1 %vm454_vm1, %v437_v5 }
  0x5c   : > { %1630 = vmatpush3.bf16.msra.mxu1 %v1828_v4  ;;  %1633 = vmatprep.mubr.msk.bf16.mxu1 %vm2063_vm0, %v2062_v0 }
  0x5d   : > { %1631 = vmatprep.subr.bf16.mxu1 %v2062_v0 }
  0x60   : > { %1632 = vmatpush3.bf16.msra.mxu1 %v1829_v7 }
  0x61   : > { %1643 = vmatprep.subr.bf16.mxu1 %v2062_v0 }
  0x63   : > { %1634 = vmatmul.mubr.msk.bf16.vlgmr.msra.gmra.mxu1 %vm454_vm1, %v557_v8 }
  0x64   : > { %1645 = vmatprep.mubr.msk.bf16.mxu1 %vm2063_vm0, %v2062_v0 }
 0x11b   : > { %v2295_v14 = vpop.f32.mrf.mxu1 }
 0x11c   : > { %v502_v15 = vadd.f32 %v501_v13, %v2295_v14 }
 0x11d   : > { %v1627_v17 = vpop.f32.mrf.mxu1 }
 0x11e   : > { %v503_v18 = vpack.c.bf16 %v502_v15, %v502_v15  ;;  %v508_v17 = vsub.s32 2, %v2289_v10 }
 0x11f   : > { %v495_v19 = vpop.f32.mrf.mxu1 }
 0x120   : > { %505 = vst.msk [vmem:[#allocation2] sm:$0xf] %vm504_vm2, %v503_v18  ;;  %546 = vrot.lane.b32.xlu1 %v503_v18, %s2064_s20  ;;  %526 = vrot.lane.b32.xlu0 %v503_v18, %s2065_s26 }
 0x121   : > { %v1628_v21 = vpop.f32.mrf.mxu1 }
 0x123   : > { %v616_v22 = vpop.f32.mrf.mxu1 }
 0x124   : > { %v617_v23 = vadd.f32 %v616_v22, %v565_v20  ;;  %536 = vrot.lane.b32.xlu0 %v503_v18, %s2066_s17  ;;  %v509_v18 = vrot.slane %v2292_v12, %v508_v17  ;;  %v1831_v17 = vld [vmem:[#allocation9] sm:$0xff]  }
 0x125   : > { %v1635_v24 = vpop.f32.mrf.mxu1 }
 0x126   : > { %v622_v25 = vpack.c.bf16 %v617_v23, %v617_v23 }
 0x127   : > { %v619_v26 = vpop.f32.mrf.mxu1  ;;  %v647_v27 = vld [vmem:[#allocation2] sm:$0xf] }
 0x128   : > { %624 = vst.msk [vmem:[#allocation4] sm:$0xf] %vm504_vm2, %v622_v25  ;;  %628 = vrot.lane.b32.xlu1 %v622_v25, %s2065_s26  ;;  %633 = vrot.lane.b32.xlu0 %v622_v25, %s2066_s17  ;;  %v660_v28 = vsel %vm655_vm3, %v647_v27, 0 }
 0x129   : > { %v1636_v29 = vpop.f32.mrf.mxu1  ;;  %1638 = vmatpush3.bf16.xpose.msra.mxu0 %v660_v28 }
 0x12a   : > { %1649 = vmatprep.subr.bf16.mxu0 %v2062_v0 }
 0x12c   : > { %638 = vrot.lane.b32.xlu1 %v622_v25, %s2064_s20 }
 0x12f   : > { %v643_v30 = vld [vmem:[#allocation4] sm:$0xf] }
 0x130   : > { %1640 = vmatmul.mubr.msk.bf16.vlgmr.msra.gmra.mxu0 %vm655_vm3, %v643_v30 }
 0x131   : > { %1651 = vmatprep.mubr.msk.bf16.mxu0 %vm2063_vm0, %v2062_v0 }
 0x192   : > { %v547_v31 = vpop.permute.xlu1 %546  ;;  %v527_v32 = vpop.permute.xlu0 %526 }
 0x193   : > { %550 = vst.msk [vmem:[#allocation2 + $0xc] sm:$0xf] %vm504_vm2, %v547_v31  ;;  %530 = vst.msk [vmem:[#allocation2 + $0x4] sm:$0xf] %vm504_vm2, %v527_v32 }
 0x196   : > { %v537_v33 = vpop.permute.xlu0 %536 }
 0x197   : > { %540 = vst.msk [vmem:[#allocation2 + $0x8] sm:$0xf] %vm504_vm2, %v537_v33 }
 0x19a   : > { %v629_v34 = vpop.permute.xlu1 %628  ;;  %v634_v35 = vpop.permute.xlu0 %633  ;;  %v648_v36 = vld [vmem:[#allocation2 + $0x4] sm:$0xf]  ;;  %v650_v41 = vld [vmem:[#allocation2 + $0xc] sm:$0xf] }
 0x19b   : > { %632 = vst.msk [vmem:[#allocation4 + $0x4] sm:$0xf] %vm504_vm2, %v629_v34  ;;  %637 = vst.msk [vmem:[#allocation4 + $0x8] sm:$0xf] %vm504_vm2, %v634_v35  ;;  %v706_v37 = vsel %vm655_vm3, %v648_v36, 0  ;;  %v798_v43 = vsel %vm655_vm3, %v650_v41, 0 }
 0x19c   : > { %1644 = vmatpush3.bf16.xpose.msra.mxu1 %v706_v37 }
 0x19d   : > { %1655 = vmatprep.subr.bf16.mxu1 %v2062_v0 }
 0x19e   : > { %v639_v38 = vpop.permute.xlu1 %638  ;;  %v649_v39 = vld [vmem:[#allocation2 + $0x8] sm:$0xf] }
 0x19f   : > { %642 = vst.msk [vmem:[#allocation4 + $0xc] sm:$0xf] %vm504_vm2, %v639_v38  ;;  %v752_v40 = vsel %vm655_vm3, %v649_v39, 0 }
 0x1a0   : > { %1650 = vmatpush3.bf16.xpose.msra.mxu0 %v752_v40 }
 0x1a1   : > { %1661 = vmatprep.subr.bf16.mxu0 %v2062_v0 }
 0x1a2   : > { %v644_v42 = vld [vmem:[#allocation4 + $0x4] sm:$0xf]  ;;  %v645_v44 = vld [vmem:[#allocation4 + $0x8] sm:$0xf] }
 0x1a3   : > { %1646 = vmatmul.mubr.msk.bf16.vlgmr.msra.gmra.mxu1 %vm655_vm3, %v644_v42 }
 0x1a4   : > { %1656 = vmatpush3.bf16.xpose.msra.mxu1 %v798_v43  ;;  %1657 = vmatprep.mubr.msk.bf16.mxu1 %vm2063_vm0, %v2062_v0 }
 0x1a5   : > { %1667 = vmatprep.subr.bf16.mxu1 %v2062_v0 }
 0x1a6   : > { %v646_v45 = vld [vmem:[#allocation4 + $0xc] sm:$0xf] }
 0x1a7   : > { %1652 = vmatmul.mubr.msk.bf16.vlgmr.msra.gmra.mxu0 %vm655_vm3, %v645_v44 }
 0x1a8   : > { %1663 = vmatprep.mubr.msk.bf16.mxu0 %vm2063_vm0, %v2062_v0 }
 0x1ab   : > { %1658 = vmatmul.mubr.msk.bf16.vlgmr.msra.gmra.mxu1 %vm655_vm3, %v646_v45 }
 0x1ac   : > { %1669 = vmatprep.mubr.msk.bf16.mxu1 %vm2063_vm0, %v2062_v0 }
 0x1f0   : > { %v696_v47 = vpop.f32.mrf.mxu0 }
 0x1f1   : > { %v840_v49 = vmul.f32 0.35355338, %v696_v47 }
 0x1f2   : > { %v1641_v50 = vpop.f32.mrf.mxu0 }
 0x1f3   : > { %v853_v51 = vadd.f32 %v852_v48, %v840_v49 }
 0x1f4   : > { %v699_v52 = vpop.f32.mrf.mxu0 }
 0x1f5   : > { %v857_v53 = vsel %vm655_vm3, %v853_v51, -inf }
 0x1f6   : > { %858 = vmax.xlane.f32.xlu0 %v857_v53  ;;  %v1642_v54 = vpop.f32.mrf.mxu0 }
 0x263   : > { %v742_v55 = vpop.f32.mrf.mxu1 }
 0x264   : > { %v841_v56 = vmul.f32 0.35355338, %v742_v55 }
 0x265   : > { %v1647_v57 = vpop.f32.mrf.mxu1 }
 0x266   : > { %v854_v58 = vadd.f32 %v852_v48, %v841_v56 }
 0x267   : > { %v745_v59 = vpop.f32.mrf.mxu1  ;;  %v788_v60 = vpop.f32.mrf.mxu0 }
 0x268   : > { %v842_v61 = vmul.f32 0.35355338, %v788_v60  ;;  %v860_v62 = vsel %vm655_vm3, %v854_v58, -inf }
 0x269   : > { %861 = vmax.xlane.f32.xlu1 %v860_v62  ;;  %v1648_v63 = vpop.f32.mrf.mxu1  ;;  %v1653_v1 = vpop.f32.mrf.mxu0 }
 0x26a   : > { %v855_v2 = vadd.f32 %v852_v48, %v842_v61 }
 0x26b   : > { %v791_v3 = vpop.f32.mrf.mxu0  ;;  %v834_v4 = vpop.f32.mrf.mxu1 }
 0x26c   : > { %v843_v5 = vmul.f32 0.35355338, %v834_v4  ;;  %v863_v7 = vsel %vm655_vm3, %v855_v2, -inf }
 0x26d   : > { %v1659_v8 = vpop.f32.mrf.mxu1  ;;  %864 = vmax.xlane.f32.xlu0 %v863_v7  ;;  %v1654_v9 = vpop.f32.mrf.mxu0 }
 0x26e   : > { %v856_v11 = vadd.f32 %v852_v48, %v843_v5 }
 0x26f   : > { %v837_v13 = vpop.f32.mrf.mxu1 }
 0x270   : > { %v866_v15 = vsel %vm655_vm3, %v856_v11, -inf }
 0x271   : > { %v1660_v16 = vpop.f32.mrf.mxu1  ;;  %867 = vmax.xlane.f32.xlu0 %v866_v15  ;;  %v1830_v15 = vld [vmem:[#allocation9 + $0x8] sm:$0xff]  }
 0x27a   : > { %511 = vrot.lane.b32.xlu1 %v509_v18, %s2067_s23  ;;  %s2075_s23 = smov [#allocation14]  }
 0x27f   : > { %v859_v19 = vpop.xlane.xlu0 %858 }
 0x280   : > { %v869_v20 = vsub.f32 %v853_v51, %v859_v19 }
 0x282   : > { %v873_v21 = vmul.f32 1.442695, %v869_v20 }
 0x284   : > { %1838 = vpow2.f32 %v873_v21 }
 0x291   : > { %v1839_v22 = vpop.eup %1838 }
 0x292   : > { %v881_v23 = vsel %vm655_vm3, %v1839_v22, 0.0 }
 0x293   : > { %882 = vadd.xlane.f32.xlu0 %v881_v23 }
 0x2f2   : > { %v862_v24 = vpop.xlane.xlu1 %861 }
 0x2f3   : > { %v870_v25 = vsub.f32 %v854_v58, %v862_v24 }
 0x2f5   : > { %v875_v26 = vmul.f32 1.442695, %v870_v25 }
 0x2f6   : > { %v512_v27 = vpop.permute.xlu1 %511  ;;  %v865_v28 = vpop.xlane.xlu0 %864 }
 0x2f7   : > { %1840 = vpow2.f32 %v875_v26  ;;  %v514_v29 = vadd.f32 %v512_v27, %v2295_v14  ;;  %v871_v30 = vsub.f32 %v855_v2, %v865_v28 }
 0x2f9   : > { %v1582_v31 = vpack.c.bf16 %v514_v29, %v514_v29  ;;  %v877_v32 = vmul.f32 1.442695, %v871_v30 }
 0x2fa   : > { %v868_v33 = vpop.xlane.xlu0 %867 }
 0x2fb   : > { %1842 = vpow2.f32 %v877_v32  ;;  %v872_v34 = vsub.f32 %v856_v11, %v868_v33  ;;  %519 = vrot.lane.b32.xlu1 %v1582_v31, %s2068_s27  ;;  %s1968_s27 = sshll.u32 %s2075_s23, 4  ;;  %s1969_s27 = int_to_ptr.vmem [resolvable:$false] %s1968_s27 }
 0x2fd   : > { %v879_v35 = vmul.f32 1.442695, %v872_v34 }
 0x2ff   : > { %1844 = vpow2.f32 %v879_v35  ;;  %541 = vrot.lane.b32.xlu1 %v1582_v31, %s2069_s24 }
 0x303   : > { %551 = vrot.lane.b32.xlu1 %v1582_v31, %s2070_s16 }
 0x304   : > { %v1841_v36 = vpop.eup %1840 }
 0x305   : > { %v884_v37 = vsel %vm655_vm3, %v1841_v36, 0.0 }
 0x306   : > { %885 = vadd.xlane.f32.xlu0 %v884_v37 }
 0x308   : > { %v1843_v38 = vpop.eup %1842 }
 0x309   : > { %v887_v14 = vsel %vm655_vm3, %v1843_v38, 0.0 }
 0x30a   : > { %888 = vadd.xlane.f32.xlu0 %v887_v14 }
 0x30c   : > { %v1845_v39 = vpop.eup %1844 }
 0x30d   : > { %v890_v40 = vsel %vm655_vm3, %v1845_v39, 0.0 }
 0x30e   : > { %891 = vadd.xlane.f32.xlu0 %v890_v40 }
 0x31c   : > { %v883_v41 = vpop.xlane.xlu0 %882 }
 0x31d   : > { %1846 = vrcp.f32 %v883_v41 }
 0x324   : > { %531 = vrot.lane.b32.xlu0 %v1582_v31, %s2071_s18  ;;  %s415_s18 = sand.u32 1, %s2036_s10  }
 0x325   : > { %s1391_s26 = scalar_lea.sflag [#allocation8], %s415_s18 }
 0x32a   : > { %v1847_v43 = vpop.eup %1846 }
 0x32b   : > { %v897_v45 = vmul.f32 %v1847_v43, %v1839_v22 }
 0x32d   : > { %v901_v49 = vpack.c.bf16 %v897_v45, %v897_v45 }
 0x36d   : > { %v520_v42 = vpop.permute.xlu1 %519 }
 0x36e   : > { %522 = vst.msk [vmem:[#allocation3] sm:$0xf] %vm504_vm2, %v520_v42 }
 0x371   : > { %v542_v44 = vpop.permute.xlu1 %541 }
 0x372   : > { %545 = vst.msk [vmem:[#allocation3 + $0x8] sm:$0xf] %vm504_vm2, %v542_v44 }
 0x375   : > { %v552_v46 = vpop.permute.xlu1 %551  ;;  %v651_v47 = vld [vmem:[#allocation3] sm:$0xf] }
 0x376   : > { %555 = vst.msk [vmem:[#allocation3 + $0xc] sm:$0xf] %vm504_vm2, %v552_v46  ;;  %v910_v48 = vsel %vm908_vm5, %v651_v47, 0 }
 0x377   : > { %1662 = vmatpush3.bf16.msra.mxu0 %v910_v48 }
 0x378   : > { %1673 = vmatprep.subr.bf16.mxu0 %v2062_v0 }
 0x379   : > { %v653_v50 = vld [vmem:[#allocation3 + $0x8] sm:$0xf] }
 0x37a   : > { %1664 = vmatmul.mubr.msk.bf16.vlgmr.msra.gmra.mxu0 %vm655_vm3, %v901_v49  ;;  %v1002_v51 = vsel %vm908_vm5, %v653_v50, 0  ;;  %v1832_v49 = vld [vmem:[#allocation11 + $0x8] sm:$0xff]   ;;  %v1833_v50 = vld [vmem:[#allocation11] sm:$0xff]  }
 0x37b   : > { %1674 = vmatpush3.bf16.msra.mxu0 %v1002_v51  ;;  %1675 = vmatprep.mubr.msk.bf16.mxu0 %vm2063_vm0, %v2062_v0 }
 0x37c   : > { %1685 = vmatprep.subr.bf16.mxu0 %v2062_v0 }
 0x37d   : > { %v654_v63 = vld [vmem:[#allocation3 + $0xc] sm:$0xf] }
 0x37e   : > { %v1048_v3 = vsel %vm908_vm5, %v654_v63, 0  ;;  %v1835_v63 = vld [vmem:[%s2453_s6 + $0x10] sm:$0xff]  }
 0x38f   : > { %v886_v52 = vpop.xlane.xlu0 %885 }
 0x390   : > { %1848 = vrcp.f32 %v886_v52 }
 0x393   : > { %v889_v53 = vpop.xlane.xlu0 %888 }
 0x394   : > { %1850 = vrcp.f32 %v889_v53  ;;  %v1200_v53 = vsub.s32 4, %v2289_v10 }
 0x397   : > { %v892_v54 = vpop.xlane.xlu0 %891 }
 0x398   : > { %1852 = vrcp.f32 %v892_v54  ;;  %v1205_v54 = vsub.s32 5, %v2289_v10 }
 0x39b   : > { %v532_v55 = vpop.permute.xlu0 %531 }
 0x39c   : > { %535 = vst.msk [vmem:[#allocation3 + $0x4] sm:$0xf] %vm504_vm2, %v532_v55  ;;  %v1201_v55 = vrot.slane %v2292_v12, %v1200_v53 }
 0x39d   : > { %v1849_v56 = vpop.eup %1848 }
 0x39e   : > { %v898_v59 = vmul.f32 %v1849_v56, %v1841_v36  ;;  %v1126_v36 = vsub.s32 3, %v2289_v10 }
 0x3a0   : > { %v902_v1 = vpack.c.bf16 %v898_v59, %v898_v59  ;;  %v1127_v37 = vrot.slane %v2292_v12, %v1126_v36 }
 0x3a1   : > { %v1851_v57 = vpop.eup %1850 }
 0x3a2   : > { %v899_v58 = vmul.f32 %v1851_v57, %v1843_v38 }
 0x3a3   : > { %v652_v60 = vld [vmem:[#allocation3 + $0x4] sm:$0xf] }
 0x3a4   : > { %v956_v61 = vsel %vm908_vm5, %v652_v60, 0  ;;  %v903_v62 = vpack.c.bf16 %v899_v58, %v899_v58  ;;  %v1206_v58 = vrot.slane %v2292_v12, %v1205_v54 }
 0x3a5   : > { %1668 = vmatpush3.bf16.msra.mxu1 %v956_v61  ;;  %v1853_v2 = vpop.eup %1852 }
 0x3a6   : > { %1676 = vmatmul.mubr.msk.bf16.vlgmr.msra.gmra.mxu0 %vm655_vm3, %v903_v62  ;;  %1679 = vmatprep.subr.bf16.mxu1 %v2062_v0  ;;  %v900_v4 = vmul.f32 %v1853_v2, %v1845_v39  ;;  %v1834_v62 = vld [vmem:[%s2453_s6 + $0x18] sm:$0xff]   ;;  %v1837_v2 = vld [vmem:[%s2453_s6] sm:$0xff]  }
 0x3a7   : > { %1689 = vmatprep.mubr.msk.bf16.mxu0 %vm2063_vm0, %v2062_v0  ;;  %1686 = vmatpush3.bf16.msra.mxu0 %v1830_v15 }
 0x3a8   : > { %1670 = vmatmul.mubr.msk.bf16.vlgmr.msra.gmra.mxu1 %vm655_vm3, %v902_v1  ;;  %v904_v5 = vpack.c.bf16 %v900_v4, %v900_v4  ;;  %1687 = vmatprep.subr.bf16.mxu0 %v2062_v0  ;;  %v1836_v1 = vld [vmem:[%s2453_s6 + $0x8] sm:$0xff]  }
 0x3a9   : > { %1680 = vmatpush3.bf16.msra.mxu1 %v1048_v3  ;;  %1681 = vmatprep.mubr.msk.bf16.mxu1 %vm2063_vm0, %v2062_v0  ;;  %v1568_v3 = vld [vmem:[%s2455_s8] ss:$0 sm:$0xff] }
 0x3aa   : > { %1693 = vmatprep.subr.bf16.mxu1 %v2062_v0 }
 0x3ab   : > { %1688 = vmatpush3.bf16.msra.mxu0 %v1831_v17 }
 0x3ac   : > { %1701 = vmatprep.subr.bf16.mxu0 %v2062_v0 }
 0x3b0   : > { %1682 = vmatmul.mubr.msk.bf16.vlgmr.msra.gmra.mxu1 %vm655_vm3, %v904_v5 }
 0x3b1   : > { %1697 = vmatprep.mubr.msk.bf16.mxu1 %vm2063_vm0, %v2062_v0  ;;  %1694 = vmatpush3.bf16.msra.mxu1 %v1832_v49 }
 0x3b2   : > { %1695 = vmatprep.subr.bf16.mxu1 %v2062_v0 }
 0x3b5   : > { %1696 = vmatpush3.bf16.msra.mxu1 %v1833_v50 }
 0x43a   : > { %v946_v7 = vpop.f32.mrf.mxu0 }
 0x43b   : > { %v1090_v8 = vpack.c.bf16 %v946_v7, %v946_v7 }
 0x43c   : > { %v1665_v9 = vpop.f32.mrf.mxu0 }
 0x43d   : > { %1091 = vst.msk [vmem:[#allocation5] sm:$0xf] %vm504_vm2, %v1090_v8 }
 0x43e   : > { %v949_v11 = vpop.f32.mrf.mxu0 }
 0x440   : > { %v1666_v13 = vpop.f32.mrf.mxu0 }
 0x466   : > { %v1038_v16 = vpop.f32.mrf.mxu0 }
 0x467   : > { %v1586_v25 = vpack.c.bf16 %v1038_v16, %v1038_v16 }
 0x468   : > { %v992_v18 = vpop.f32.mrf.mxu1  ;;  %v1677_v19 = vpop.f32.mrf.mxu0 }
 0x469   : > { %v1585_v20 = vpack.c.bf16 %v992_v18, %v992_v18 }
 0x46a   : > { %v1671_v21 = vpop.f32.mrf.mxu1  ;;  %v1041_v22 = vpop.f32.mrf.mxu0 }
 0x46b   : > { %1096 = vrot.lane.b32.xlu1 %v1585_v20, %s2072_s25  ;;  %v1295_v22 = vsub.s32 6, %v2289_v10  ;;  %s1542_s25 = sshll.u32 %s415_s18, 3 }
 0x46c   : > { %v995_v23 = vpop.f32.mrf.mxu1  ;;  %v1678_v24 = vpop.f32.mrf.mxu0 }
 0x46d   : > { %v1296_v23 = vrot.slane %v2292_v12, %v1295_v22 }
 0x46e   : > { %v1672_v26 = vpop.f32.mrf.mxu1 }
 0x46f   : > { %1105 = vrot.lane.b32.xlu1 %v1586_v25, %s2073_s29  ;;  %s1579_s29 = sshll.u32 %s2044_s12, 7  ;;  %s1970_s12 = scalar_lea.vmem %s1969_s27, 256 }
 0x470   : > { %v1084_v27 = vpop.f32.mrf.mxu1  ;;  %s1403_s20 = scalar_lea.hbm %s2456_s9, %s1579_s29 }
 0x471   : > { %v1587_v28 = vpack.c.bf16 %v1084_v27, %v1084_v27 }
 0x472   : > { %v1683_v29 = vpop.f32.mrf.mxu1 }
 0x473   : > { %1114 = vrot.lane.b32.xlu1 %v1587_v28, %s2074_s28  ;;  %s417_s28 = scalar_lea.vmem [#allocation14], %s1542_s25 }
 0x474   : > { %v1087_v30 = vpop.f32.mrf.mxu1  ;;  %s1405_s4 = sshll.u32 %s417_s28, 4  ;;  %s1406_s4 = int_to_ptr.vmem [resolvable:$true] %s1405_s4 }
 0x475   : > { %s1964_s17 = scalar_lea.vmem %s1406_s4, 128  ;;  %p1971_p6 = scmp.lt.s32.totalorder %s1406_s4, %s1969_s27 }
 0x476   : > { %v1684_v31 = vpop.f32.mrf.mxu1  ;;  %p1965_p11 = scmp.ne.s32.totalorder %s1406_s4, %s1964_s17  ;;  %p1972_p7 = scmp.lt.s32.totalorder %s1970_s12, %s1964_s17 }
 0x478   : > { %p1966_p13 = pnand %p1965_p11, %p2166_p4  ;;  %p1973_p9 = por %p1972_p7, %p1971_p6 }
 0x47a   : > { %p1967_p0 = pneg %p1966_p13 }
 0x47c   : > { %p1974_p12 = pnand %p1973_p9, %p1967_p0 }
 0x4dd   : > { %v1097_v32 = vpop.permute.xlu1 %1096 }
 0x4de   : > { %1100 = vst.msk [vmem:[#allocation5] sm:$0xf] %vm1099_vm6, %v1097_v32 }
 0x4e1   : > { %v1106_v33 = vpop.permute.xlu1 %1105 }
 0x4e2   : > { %1109 = vst.msk [vmem:[#allocation5] sm:$0xf] %vm1108_vm7, %v1106_v33 }
 0x4e5   : > { %v1115_v34 = vpop.permute.xlu1 %1114 }
 0x4e6   : > { %1118 = vst.msk [vmem:[#allocation5] sm:$0xf] %vm1117_vm8, %v1115_v34 }
 0x4ed   : > { %v1119_v35 = vld [vmem:[#allocation5] sm:$0xf] }
 0x4ee   : > { %1690 = vmatmul.mubr.msk.bf16.vlgmr.msra.gmra.mxu0 %vm454_vm1, %v1119_v35 }
 0x4ef   : > { %1709 = vmatprep.mubr.msk.bf16.mxu0 %vm2063_vm0, %v2062_v0  ;;  %1702 = vmatpush3.bf16.msra.mxu0 %v1834_v62 }
 0x4f0   : > { %1703 = vmatprep.subr.bf16.mxu0 %v2062_v0 }
 0x4f3   : > { %1704 = vmatpush3.bf16.msra.mxu0 %v1835_v63 }
 0x4f4   : > { %1705 = vmatprep.subr.bf16.mxu0 %v2062_v0 }
 0x4f7   : > { %1706 = vmatpush3.bf16.msra.mxu0 %v1836_v1 }
 0x4f8   : > { %1707 = vmatprep.subr.bf16.mxu0 %v2062_v0 }
 0x4fb   : > { %1708 = vmatpush3.bf16.msra.mxu0 %v1837_v2 }
 0x5ae   : > { %v1177_v38 = vpop.f32.mrf.mxu0 }
 0x5af   : > { %v1178_v14 = vadd.f32 %v1177_v38, %v1127_v37 }
 0x5b0   : > { %v1691_v39 = vpop.f32.mrf.mxu0 }
 0x5b1   : > { %v1183_v40 = vadd.f32 %v1178_v14, %v2274_v6  ;;  %v1381_v14 = vsub.s32 7, %v2289_v10 }
 0x5b2   : > { %v1180_v41 = vpop.f32.mrf.mxu0 }
 0x5b3   : > { %v1184_v42 = vsel %vm454_vm1, %v1183_v40, 0.0  ;;  %v1382_v39 = vrot.slane %v2292_v12, %v1381_v14 }
 0x5b4   : > { %1185 = vadd.xlane.f32.xlu0 %v1184_v42  ;;  %v1692_v43 = vpop.f32.mrf.mxu0  ;;  %v1577_v42 = vld [vmem:[#allocation12 + $0x8] ss:$0 sm:$0xff] }
 0x63d   : > { %v1186_v44 = vpop.xlane.xlu0 %1185 }
 0x63e   : > { %v1188_v45 = vmul.f32 0.03125, %v1186_v44 }
 0x640   : > { %v1189_v46 = vsub.f32 %v1183_v40, %v1188_v45 }
 0x642   : > { %v1190_v47 = vmul.f32 %v1189_v46, %v1189_v46 }
 0x644   : > { %v1191_v48 = vsel %vm454_vm1, %v1190_v47, 0.0 }
 0x645   : > { %1192 = vadd.xlane.f32.xlu1 %v1191_v48 }
 0x6ce   : > { %v1193_v51 = vpop.xlane.xlu1 %1192 }
 0x6cf   : > { %v1194_v6 = vmul.f32 0.03125, %v1193_v51 }
 0x6d1   : > { %v1195_v52 = vadd.f32 1e-05, %v1194_v6 }
 0x6d3   : > { %1854 = vrsqrt.f32 %v1195_v52 }
 0x6e0   : > { %v1855_v56 = vpop.eup %1854 }
 0x6e1   : > { %v1197_v57 = vmul.f32 %v1855_v56, %v1189_v46 }
 0x6e3   : > { %v1202_v59 = vmul.f32 %v1201_v55, %v1197_v57 }
 0x6e5   : > { %v1207_v60 = vadd.f32 %v1206_v58, %v1202_v59 }
 0x6e7   : > { %v1208_v61 = vpack.c.bf16 %v1207_v60, %v1207_v60 }
 0x6e9   : > { %1698 = vmatmul.mubr.msk.bf16.vlgmr.msra.gmra.mxu1 %vm454_vm1, %v1208_v61 }
 0x7a9   : > { %v1269_v4 = vpop.f32.mrf.mxu1 }
 0x7aa   : > { %v1270_v5 = vadd.f32 %v1568_v3, %v1269_v4 }
 0x7ab   : > { %v1699_v7 = vpop.f32.mrf.mxu1 }
 0x7ac   : > { %v1276_v8 = vmul.f32 %v1270_v5, %v1270_v5  ;;  %v1275_v18 = vmul.f32 0.5, %v1270_v5 }
 0x7ad   : > { %v1272_v9 = vpop.f32.mrf.mxu1 }
 0x7ae   : > { %v1277_v11 = vmul.f32 %v1276_v8, %v1270_v5 }
 0x7af   : > { %v1700_v13 = vpop.f32.mrf.mxu1 }
 0x7b0   : > { %v1278_v15 = vmul.f32 0.044715, %v1277_v11 }
 0x7b2   : > { %v1279_v16 = vadd.f32 %v1278_v15, %v1270_v5 }
 0x7b4   : > { %v1280_v17 = vmul.f32 0.7978846, %v1279_v16 }
 0x7b6   : > { %1856 = vtanh.f32 %v1280_v17 }
 0x7c3   : > { %v1857_v0 = vpop.eup %1856 }
 0x7c4   : > { %v1282_v19 = vadd.f32 1.0, %v1857_v0 }
 0x7c6   : > { %v1283_v20 = vmul.f32 %v1282_v19, %v1275_v18 }
 0x7c8   : > { %v1284_v21 = vpack.c.bf16 %v1283_v20, %v1283_v20 }
 0x7ca   : > { %1710 = vmatmul.mubr.msk.bf16.vlgmr.msra.gmra.mxu0 %vm1321_vm9, %v1284_v21 }
 0x88a   : > { %v1359_v24 = vpop.f32.mrf.mxu0 }
 0x88b   : > { %v1360_v25 = vadd.f32 %v1359_v24, %v1296_v23 }
 0x88c   : > { %v1711_v26 = vpop.f32.mrf.mxu0 }
 0x88d   : > { %v1365_v27 = vadd.f32 %v1360_v25, %v1207_v60 }
 0x88e   : > { %v1362_v28 = vpop.f32.mrf.mxu0 }
 0x88f   : > { %v1366_v29 = vsel %vm454_vm1, %v1365_v27, 0.0 }
 0x890   : > { %1367 = vadd.xlane.f32.xlu0 %v1366_v29  ;;  %v1712_v30 = vpop.f32.mrf.mxu0 }
 0x919   : > { %v1368_v31 = vpop.xlane.xlu0 %1367 }
 0x91a   : > { %v1369_v32 = vmul.f32 0.03125, %v1368_v31 }
 0x91c   : > { %v1370_v33 = vsub.f32 %v1365_v27, %v1369_v32 }
 0x91e   : > { %v1371_v34 = vmul.f32 %v1370_v33, %v1370_v33 }
 0x920   : > { %v1372_v35 = vsel %vm454_vm1, %v1371_v34, 0.0 }
 0x921   : > { %1373 = vadd.xlane.f32.xlu0 %v1372_v35 }
 0x9aa   : > { %v1374_v36 = vpop.xlane.xlu0 %1373 }
 0x9ab   : > { %v1375_v37 = vmul.f32 0.03125, %v1374_v36 }
 0x9ad   : > { %v1376_v38 = vadd.f32 1e-05, %v1375_v37 }
 0x9af   : > { %1858 = vrsqrt.f32 %v1376_v38 }
 0x9bc   : > { %v1859_v40 = vpop.eup %1858 }
 0x9bd   : > { %v1378_v41 = vmul.f32 %v1859_v40, %v1370_v33 }
 0x9bf   : > { %v1383_v43 = vmul.f32 %v1382_v39, %v1378_v41 }
 0x9c1   : > { %v1388_v44 = vadd.f32 %v1577_v42, %v1383_v43 }
 0x9c3   : > { %1389 = vst.msk [vmem:[%s417_s28] sm:$0xff] %vm454_vm1, %v1388_v44 }
 0x9c4   : > { %1977 = shalt.err (!%p1974_p12)
}
 0x9c5   : > { %s1978_s24 = scalar_lea.hbm %s1403_s20, 128  ;;  %s1982_s25 = scalar_lea.hbm %s2456_s9, 256 }
 0x9c6   : > { %p1979_p2 = scmp.ne.s32.totalorder %s1403_s20, %s1978_s24  ;;  %p1983_p5 = scmp.lt.s32.totalorder %s1403_s20, %s2456_s9 }
 0x9c7   : > { %p1984_p10 = scmp.lt.s32.totalorder %s1982_s25, %s1978_s24 }
 0x9c8   : > { %p1980_p1 = pnand %p1979_p2, %p2166_p4 }
 0x9c9   : > { %p1985_p11 = por %p1984_p10, %p1983_p5 }
 0x9ca   : > { %p1981_p3 = pneg %p1980_p1 }
 0x9cc   : > { %p1986_p13 = pnand %p1985_p11, %p1981_p3 }
 0x9ce   : > { %1989 = shalt.err (!%p1986_p13)
}
 0x9cf   : > { %1729 = dma.vmem_to_hbm [thread:$0]  (%p2166_p4), %s1406_s4, 128, %s1403_s20, %s1391_s26  }
 0x9d0 PF: > { %p1756_p0 = scmp.ge.s32.totalorder %s2052_s14, 2  ;;  %s1417_s13 = sand.u32 1, %s2032_s30  }
 0x9d1   : > { %s1418_s15 = scalar_lea.sflag [#allocation8], %s1417_s13 }
 0x9d2   : > { %p1745_p6 = pnand %p1756_p0, %p2173_p8 }
 0x9d4   : > { %p1746_p7 = pneg %p1745_p6 }
 0x9d6   : > { %2027 = dma.done.wait (%p1746_p7), %s1418_s15, 128  }
 0x9d7   : > { %2029 = vsyncadd (%p1746_p7), %s1418_s15, 4294967168  ;;  %s25_s14 = sadd.s32 1, %s2052_s14   ;;  %s2468_s12 = sld [smem:[#allocation19_spill]] }
 0x9d8   : > { %p22_p9 = scmp.ge.s32.totalorder %s25_s14, 4   ;;  %s2469_s13 = sld [smem:[#allocation20_spill]] }
 0x9d9   : > { %s2470_s30 = smov %s2036_s10  ;;  %s2471_s10 = smov %s2040_s11 }
 0x9da   : > { %s2472_s11 = smov %s2179_s22  ;;  %24 = sbr.rel (!%p22_p9) target bundleno = 9 (0x9), region = 124 }
 0x9df   :  { %1423 = vsyncpa [#allocation7], 1 }
 0x9e0   :  { %1425 = vsyncpa [#allocation7 + $0x1], 1 }
 0x9e1   :  { %1426 = vsyncpa [#allocation10], 1 }
 0x9e2   :  { %1427 = vsyncpa [#allocation13], 1 }
 0x9e3   :  { %1428 = vsyncpa [#allocation8], 1 }
 0x9e4   :  { %1430 = vsyncpa [#allocation8 + $0x1], 1 }

</bundles_post_ra>
